<compile_context>
chip_gen: v5e
topology: v5e:2x2
jax: 0.10.0
libtpu: 0.0.40
codegen_flags: <defaults>
</compile_context>

<pallas_src>
import functools

import jax
import jax.numpy as jnp
from jax.experimental import pallas as pl
from jax.experimental.pallas import tpu as pltpu

HIDDEN = 512                  # hard-coded in the PyTorch Model
COMPUTE_DTYPE = jnp.bfloat16  # MXU compute dtype (f32 accumulation)


def _round_up(x, m):
    return ((x + m - 1) // m) * m


def _pick_row_tile(m, row_bytes, *, cap=2048, act_budget=6 << 20):
    """Row tile for the M axis of a (M, K) @ (K, N) matmul.

    - full extent for tiny M (block == full dim is always legal),
    - otherwise a multiple of 16 (bf16 sublane packing), capped so the
      double-buffered input tile stays within `act_budget`,
    - split into >= 2 grid steps when M allows so a 2-TC chip (v7x) can shard
      the "parallel" batch axis across both cores.
    """
    if m <= 16:
        return m
    fit = act_budget // max(1, 2 * row_bytes)
    t = max(16, (min(cap, fit) // 16) * 16)
    if t >= m:
        half = _round_up((m + 1) // 2, 16)
        t = half if half < m else m
    return t


# ---------------------------------------------------------------------------
# kernels
# ---------------------------------------------------------------------------
def _linear_kernel(x_ref, w_ref, b_ref, o_ref, *, relu_in, relu_out, cdt):
    x = x_ref[...]
    if relu_in:
        x = jnp.maximum(x, 0)
    if x.dtype != cdt:                       # inputs are already bf16 normally
        x = x.astype(cdt)
    y = jnp.dot(x, w_ref[...], preferred_element_type=jnp.float32)
    y = y + b_ref[...]
    if relu_out:
        y = jnp.maximum(y, 0.0)
    o_ref[...] = y.astype(o_ref.dtype)


def _heads_kernel(x_ref, wfc_ref, bfc_ref,
                  wp0_ref, bp0_ref, wp1_ref, bp1_ref,
                  wc0_ref, bc0_ref, wv_ref, bv_ref,
                  pol_ref, val_ref, *, cdt):
    """Fused: features = flat @ wfc + bfc; policy head; ext/int value head."""
    x = x_ref[...]
    if x.dtype != cdt:
        x = x.astype(cdt)
    feats = jnp.dot(x, wfc_ref[...], preferred_element_type=jnp.float32) + bfc_ref[...]
    # shared act0(features): computed once, ReLU'd once, cast once for the MXU
    xr = jnp.maximum(feats, 0.0).astype(cdt)
    # policy branch: lin0 -> relu -> lin1 (output zero-padded to 128 lanes)
    hp = jnp.dot(xr, wp0_ref[...], preferred_element_type=jnp.float32) + bp0_ref[...]
    hp = jnp.maximum(hp, 0.0).astype(cdt)
    pol = jnp.dot(hp, wp1_ref[...], preferred_element_type=jnp.float32) + bp1_ref[...]
    pol_ref[...] = pol.astype(pol_ref.dtype)
    # critic branch: hidden -> relu -> fused [ext | int | zero-pad] value head
    hc = jnp.dot(xr, wc0_ref[...], preferred_element_type=jnp.float32) + bc0_ref[...]
    hc = jnp.maximum(hc, 0.0).astype(cdt)
    val = jnp.dot(hc, wv_ref[...], preferred_element_type=jnp.float32) + bv_ref[...]
    val_ref[...] = val.astype(val_ref.dtype)


# ---------------------------------------------------------------------------
# pallas_call wrappers
# ---------------------------------------------------------------------------
def linear_pallas(x, w, b, *, relu_in=False, relu_out=False, out_dtype=None,
                  cap=2048):
    """y = act_out(act_in(x) @ w + b); x:(M,K) bf16, w:(K,N) bf16, b:(1,N) f32."""
    m, k = x.shape
    kk, n = w.shape
    assert k == kk and b.shape == (1, n)
    out_dtype = x.dtype if out_dtype is None else out_dtype
    tm = _pick_row_tile(m, k * x.dtype.itemsize, cap=cap)
    grid = (pl.cdiv(m, tm),)
    kern = functools.partial(_linear_kernel, relu_in=relu_in,
                             relu_out=relu_out, cdt=w.dtype)
    cost = pl.CostEstimate(
        flops=2 * m * k * n,
        transcendentals=0,
        bytes_accessed=(m * k * x.dtype.itemsize
                        + k * n * jnp.dtype(w.dtype).itemsize
                        + n * 4
                        + m * n * jnp.dtype(out_dtype).itemsize),
    )
    return pl.pallas_call(
        kern,
        out_shape=jax.ShapeDtypeStruct((m, n), out_dtype),
        grid_spec=pltpu.PrefetchScalarGridSpec(
            num_scalar_prefetch=0,
            grid=grid,
            in_specs=[
                pl.BlockSpec((tm, k), lambda i: (i, 0)),   # streamed rows
                pl.BlockSpec((k, n), lambda i: (0, 0)),    # resident weight
                pl.BlockSpec((1, n), lambda i: (0, 0)),    # resident bias
            ],
            out_specs=pl.BlockSpec((tm, n), lambda i: (i, 0)),
        ),
        compiler_params=pltpu.CompilerParams(
            dimension_semantics=("parallel",)),
        cost_estimate=cost,
    )(x, w, b)


def heads_pallas(flat, params):
    """Fused fc + policy + critic heads; returns (policy_padded, values_padded)."""
    bsz, feat = flat.shape
    wfc, bfc = params["wfc"], params["bfc"]
    wp0, bp0 = params["wp0"], params["bp0"]
    wp1, bp1 = params["wp1"], params["bp1"]
    wc0, bc0 = params["wcr0"], params["bcr0"]
    wv, bv = params["wv"], params["bv"]
    h = wfc.shape[1]
    p_pad = wp1.shape[1]
    v_pad = wv.shape[1]

    wdt = jnp.dtype(wfc.dtype).itemsize
    weight_bytes = (wfc.size + wp0.size + wp1.size + wc0.size + wv.size) * wdt
    bias_bytes = (bfc.size + bp0.size + bp1.size + bc0.size + bv.size) * 4

    tb = _pick_row_tile(bsz, feat * flat.dtype.itemsize, cap=512,
                        act_budget=4 << 20)
    # Pipeline double-buffers every operand by default; make sure that plus the
    # activation / output tiles fits (guards v5e's 16 MiB scoped default when
    # `feat` is large, e.g. 84x84 inputs -> feat=6400).
    vmem_needed = (2 * (weight_bytes + bias_bytes)
                   + 2 * tb * feat * flat.dtype.itemsize
                   + 2 * tb * (p_pad + v_pad) * 4
                   + (2 << 20))
    vmem_limit = int(min(max(vmem_needed, 16 << 20), 40 << 20))

    grid = (pl.cdiv(bsz, tb),)
    cost = pl.CostEstimate(
        flops=2 * bsz * (feat * h + 2 * h * h + h * (p_pad + v_pad)),
        transcendentals=0,
        bytes_accessed=(bsz * feat * flat.dtype.itemsize
                        + weight_bytes + bias_bytes
                        + bsz * (p_pad + v_pad) * 4),
    )
    return pl.pallas_call(
        functools.partial(_heads_kernel, cdt=wfc.dtype),
        out_shape=(jax.ShapeDtypeStruct((bsz, p_pad), jnp.float32),
                   jax.ShapeDtypeStruct((bsz, v_pad), jnp.float32)),
        grid_spec=pltpu.PrefetchScalarGridSpec(
            num_scalar_prefetch=0,
            grid=grid,
            in_specs=[
                pl.BlockSpec((tb, feat), lambda i: (i, 0)),   # flat conv output
                pl.BlockSpec((feat, h), lambda i: (0, 0)),    # fc weight (resident)
                pl.BlockSpec((1, h), lambda i: (0, 0)),
                pl.BlockSpec((h, h), lambda i: (0, 0)),       # policy lin0
                pl.BlockSpec((1, h), lambda i: (0, 0)),
                pl.BlockSpec((h, p_pad), lambda i: (0, 0)),   # policy lin1 (padded)
                pl.BlockSpec((1, p_pad), lambda i: (0, 0)),
                pl.BlockSpec((h, h), lambda i: (0, 0)),       # critic hidden
                pl.BlockSpec((1, h), lambda i: (0, 0)),
                pl.BlockSpec((h, v_pad), lambda i: (0, 0)),   # fused value heads
                pl.BlockSpec((1, v_pad), lambda i: (0, 0)),
            ],
            out_specs=(pl.BlockSpec((tb, p_pad), lambda i: (i, 0)),
                       pl.BlockSpec((tb, v_pad), lambda i: (i, 0))),
        ),
        compiler_params=pltpu.CompilerParams(
            dimension_semantics=("parallel",),
            vmem_limit_bytes=vmem_limit),
        cost_estimate=cost,
    )(flat, wfc, bfc, wp0, bp0, wp1, bp1, wc0, bc0, wv, bv)


# ---------------------------------------------------------------------------
# im2col (layout-only, XLA, bf16) for the 3x3 / stride-2 / pad-1 convolutions
# ---------------------------------------------------------------------------
def _im2col_s2p1(x):
    """x: (B, H, W, C) -> patches (B*Ho*Wo, 9*C) and (B, Ho, Wo)."""
    b, h, w, c = x.shape
    ho, wo = (h + 1) // 2, (w + 1) // 2
    xp = jnp.pad(x, ((0, 0), (1, 1), (1, 1), (0, 0)))
    cols = []
    for ky in range(3):
        for kx in range(3):
            cols.append(xp[:, ky:ky + 2 * ho:2, kx:kx + 2 * wo:2, :])
    patches = jnp.concatenate(cols, axis=-1)          # (B, Ho, Wo, 9*C)
    return patches.reshape(b * ho * wo, 9 * c), (b, ho, wo)


# ---------------------------------------------------------------------------
# parameters (orthogonal init, zero biases, matching PyTorch gains)
# ---------------------------------------------------------------------------
def init_params(key, input_shape, outputs_count, compute_dtype=COMPUTE_DTYPE):
    c, hgt, wid = input_shape
    feat = 64 * (hgt // 8) * (wid // 8)
    ks = jax.random.split(key, 9)

    def ortho_t(k, out_f, in_f, gain):
        wm = jax.nn.initializers.orthogonal(scale=gain)(k, (out_f, in_f), jnp.float32)
        return wm.T                                    # stored as (in, out) for x @ W

    g = 2.0 ** 0.5
    wc1 = ortho_t(ks[0], 32, 9 * c, g)                 # convs in im2col layout
    wc2 = ortho_t(ks[1], 64, 9 * 32, g)
    wc3 = ortho_t(ks[2], 64, 9 * 64, g)
    wfc = ortho_t(ks[3], HIDDEN, feat, g)
    wp0 = ortho_t(ks[4], HIDDEN, HIDDEN, 0.01)         # policy ModelFC
    wp1 = ortho_t(ks[5], outputs_count, HIDDEN, 0.01)
    wcr0 = ortho_t(ks[6], HIDDEN, HIDDEN, 0.1)         # critic hidden
    wext = ortho_t(ks[7], 1, HIDDEN, 0.01)             # ext value head
    wint = ortho_t(ks[8], 1, HIDDEN, 0.01)             # int value head

    # lane-dense (128-multiple) padded head weights; pad columns are zeros
    p_pad = _round_up(outputs_count, 128)
    wp1_p = jnp.zeros((HIDDEN, p_pad), jnp.float32).at[:, :outputs_count].set(wp1)
    v_pad = 128
    wv_p = jnp.zeros((HIDDEN, v_pad), jnp.float32)
    wv_p = wv_p.at[:, 0:1].set(wext).at[:, 1:2].set(wint)

    cdt = compute_dtype
    return {
        "wc1": wc1.astype(cdt), "bc1": jnp.zeros((1, 32), jnp.float32),
        "wc2": wc2.astype(cdt), "bc2": jnp.zeros((1, 64), jnp.float32),
        "wc3": wc3.astype(cdt), "bc3": jnp.zeros((1, 64), jnp.float32),
        "wfc": wfc.astype(cdt), "bfc": jnp.zeros((1, HIDDEN), jnp.float32),
        "wp0": wp0.astype(cdt), "bp0": jnp.zeros((1, HIDDEN), jnp.float32),
        "wp1": wp1_p.astype(cdt), "bp1": jnp.zeros((1, p_pad), jnp.float32),
        "wcr0": wcr0.astype(cdt), "bcr0": jnp.zeros((1, HIDDEN), jnp.float32),
        "wv": wv_p.astype(cdt), "bv": jnp.zeros((1, v_pad), jnp.float32),
    }


# ---------------------------------------------------------------------------
# full model forward
# ---------------------------------------------------------------------------
@functools.partial(jax.jit, static_argnames=("outputs_count",))
def model_forward(state, params, outputs_count):
    """state: (B, C, H, W) (PyTorch layout) -> (policy, ext_value, int_value)."""
    # bf16 once at the source: halves every downstream activation/patch stream.
    x = jnp.transpose(state, (0, 2, 3, 1)).astype(COMPUTE_DTYPE)   # NHWC bf16
    # --- model_features: 3x (conv 3x3/s2/p1 + ReLU) as im2col + Pallas matmul
    p1, (b, h1, w1) = _im2col_s2p1(x)
    y1 = linear_pallas(p1, params["wc1"], params["bc1"], relu_out=True)
    p2, (_, h2, w2) = _im2col_s2p1(y1.reshape(b, h1, w1, 32))
    y2 = linear_pallas(p2, params["wc2"], params["bc2"], relu_out=True)
    p3, (_, h3, w3) = _im2col_s2p1(y2.reshape(b, h2, w2, 64))
    y3 = linear_pallas(p3, params["wc3"], params["bc3"], relu_out=True)
    # TODO(synk): flatten order is NHWC (fixed permutation of PyTorch's NCHW
    # Flatten); semantics are equivalent since the following Linear is
    # initialized here rather than imported from torch.
    flat = y3.reshape(b, h3 * w3 * 64)
    # --- fused fc + policy + critic heads (single Pallas kernel, lane-padded)
    pol_pad, val_pad = heads_pallas(flat, params)
    policy = pol_pad[:, :outputs_count]
    ext_value = val_pad[:, 0:1]
    int_value = val_pad[:, 1:2]
    return policy, ext_value, int_value


# ---------------------------------------------------------------------------
# pure-JAX reference (same bf16 intermediates / f32 accumulation as kernels)
# ---------------------------------------------------------------------------
def _ref_linear(x, w, b, relu_in=False, relu_out=False, out_dtype=None):
    if relu_in:
        x = jnp.maximum(x, 0)
    y = jnp.dot(x.astype(w.dtype), w, preferred_element_type=jnp.float32) + b
    if relu_out:
        y = jnp.maximum(y, 0.0)
    out_dtype = x.dtype if out_dtype is None else out_dtype
    return y.astype(out_dtype)


def reference_forward(state, params, outputs_count):
    x = jnp.transpose(state, (0, 2, 3, 1)).astype(COMPUTE_DTYPE)
    p1, (b, h1, w1) = _im2col_s2p1(x)
    y1 = _ref_linear(p1, params["wc1"], params["bc1"], relu_out=True)
    p2, (_, h2, w2) = _im2col_s2p1(y1.reshape(b, h1, w1, 32))
    y2 = _ref_linear(p2, params["wc2"], params["bc2"], relu_out=True)
    p3, (_, h3, w3) = _im2col_s2p1(y2.reshape(b, h2, w2, 64))
    y3 = _ref_linear(p3, params["wc3"], params["bc3"], relu_out=True)
    flat = y3.reshape(b, h3 * w3 * 64)
    cdt = params["wfc"].dtype
    feats = (jnp.dot(flat.astype(cdt), params["wfc"],
                     preferred_element_type=jnp.float32) + params["bfc"])
    xr = jnp.maximum(feats, 0.0).astype(cdt)
    hp = jnp.maximum(jnp.dot(xr, params["wp0"], preferred_element_type=jnp.float32)
                     + params["bp0"], 0.0).astype(cdt)
    pol = (jnp.dot(hp, params["wp1"], preferred_element_type=jnp.float32)
           + params["bp1"])[:, :outputs_count]
    hc = jnp.maximum(jnp.dot(xr, params["wcr0"], preferred_element_type=jnp.float32)
                     + params["bcr0"], 0.0).astype(cdt)
    val = jnp.dot(hc, params["wv"], preferred_element_type=jnp.float32) + params["bv"]
    return pol, val[:, 0:1], val[:, 1:2]


if __name__ == "__main__":
    batch = 2
    input_shape = (4, 16, 16)      # (C, H, W); H, W multiples of 8
    outputs_count = 6

    key = jax.random.PRNGKey(0)
    kx, kp = jax.random.split(key)
    state = jax.random.normal(kx, (batch,) + input_shape, dtype=jnp.float32)
    params = init_params(kp, input_shape, outputs_count)

    policy, ext_value, int_value = model_forward(state, params, outputs_count)
    policy, ext_value, int_value = jax.block_until_ready((policy, ext_value, int_value))

    assert policy.shape == (batch, outputs_count), policy.shape
    assert ext_value.shape == (batch, 1), ext_value.shape
    assert int_value.shape == (batch, 1), int_value.shape

    pol_ref, ext_ref, int_ref = reference_forward(state, params, outputs_count)
    assert jnp.allclose(policy, pol_ref, atol=2e-4, rtol=2e-2), "policy mismatch"
    assert jnp.allclose(ext_value, ext_ref, atol=2e-4, rtol=2e-2), "ext_value mismatch"
    assert jnp.allclose(int_value, int_ref, atol=2e-4, rtol=2e-2), "int_value mismatch"

    print("KERNEL_OK")
</pallas_src>

<mosaic_0001>
module attributes {stable_mosaic.version = 11 : i64} {
  func.func @_linear_kernel(%arg0: i32, %arg1: memref<64x36xbf16, #tpu.memory_space<vmem>>, %arg2: memref<36x32xbf16, #tpu.memory_space<vmem>>, %arg3: memref<1x32xf32, #tpu.memory_space<vmem>>, %arg4: memref<64x32xbf16, #tpu.memory_space<vmem>>) attributes {dimension_semantics = [#tpu.dimension_semantics<parallel>], iteration_bounds = array<i64: 2>, scalar_prefetch = 0 : i64, scratch_operands = 0 : i64, tpu.core_type = #tpu.core_type<tc>, window_params = [{transform_indices = @transform_0, window_bounds = array<i64: 64, 36>}, {pipeline_mode = #tpu.pipeline_mode<synchronous>, transform_indices = @transform_1, window_bounds = array<i64: 36, 32>}, {pipeline_mode = #tpu.pipeline_mode<synchronous>, transform_indices = @transform_2, window_bounds = array<i64: 1, 32>}, {transform_indices = @transform_3, window_bounds = array<i64: 64, 32>}]} {
    %c0 = arith.constant 0 : index
    %c0_0 = arith.constant 0 : index
    %0 = vector.load %arg1[%c0, %c0_0] : memref<64x36xbf16, #tpu.memory_space<vmem>>, vector<64x36xbf16>
    %c0_1 = arith.constant 0 : index
    %c0_2 = arith.constant 0 : index
    %1 = vector.load %arg2[%c0_1, %c0_2] : memref<36x32xbf16, #tpu.memory_space<vmem>>, vector<36x32xbf16>
    %cst = arith.constant dense<0.000000e+00> : vector<64x32xf32>
    %2 = tpu.matmul %0, %1, %cst {dimension_numbers = #tpu.dot_dimension_numbers<[1], [0], [0], [1], [0, 0, 1, 1], [], []>} : vector<64x36xbf16>, vector<36x32xbf16>, vector<64x32xf32> -> vector<64x32xf32>
    %c0_3 = arith.constant 0 : index
    %c0_4 = arith.constant 0 : index
    %3 = vector.load %arg3[%c0_3, %c0_4] : memref<1x32xf32, #tpu.memory_space<vmem>>, vector<1x32xf32>
    %4 = vector.broadcast %3 : vector<1x32xf32> to vector<64x32xf32>
    %5 = arith.addf %2, %4 : vector<64x32xf32>
    %cst_5 = arith.constant 0.000000e+00 : f32
    %6 = vector.broadcast %cst_5 : f32 to vector<64x32xf32>
    %7 = arith.maximumf %5, %6 : vector<64x32xf32>
    %8 = arith.truncf %7 : vector<64x32xf32> to vector<64x32xbf16>
    %c0_6 = arith.constant 0 : index
    %c0_7 = arith.constant 0 : index
    %9 = vector.load %arg4[%c0_6, %c0_7] : memref<64x32xbf16, #tpu.memory_space<vmem>>, vector<64x32xbf16>
    tpu.vector_store %arg4[%c0_6, %c0_7], %8 {strides = array<i32>} : memref<64x32xbf16, #tpu.memory_space<vmem>>, vector<64x32xbf16>,
    return
  }
  func.func @transform_0(%arg0: i32) -> (i32, i32) {
    %c0_i32 = arith.constant 0 : i32
    %c0_i32_0 = arith.constant 0 : i32
    return %arg0, %c0_i32 : i32, i32
  }
  func.func @transform_1(%arg0: i32) -> (i32, i32) {
    %c0_i32 = arith.constant 0 : i32
    %c0_i32_0 = arith.constant 0 : i32
    %c0_i32_1 = arith.constant 0 : i32
    return %c0_i32, %c0_i32_0 : i32, i32
  }
  func.func @transform_2(%arg0: i32) -> (i32, i32) {
    %c0_i32 = arith.constant 0 : i32
    %c0_i32_0 = arith.constant 0 : i32
    %c0_i32_1 = arith.constant 0 : i32
    return %c0_i32, %c0_i32_0 : i32, i32
  }
  func.func @transform_3(%arg0: i32) -> (i32, i32) {
    %c0_i32 = arith.constant 0 : i32
    %c0_i32_0 = arith.constant 0 : i32
    return %arg0, %c0_i32 : i32, i32
  }
}

module attributes {stable_mosaic.version = 11 : i64} {
  func.func @_linear_kernel(%arg0: i32, %arg1: memref<16x288xbf16, #tpu.memory_space<vmem>>, %arg2: memref<288x64xbf16, #tpu.memory_space<vmem>>, %arg3: memref<1x64xf32, #tpu.memory_space<vmem>>, %arg4: memref<16x64xbf16, #tpu.memory_space<vmem>>) attributes {dimension_semantics = [#tpu.dimension_semantics<parallel>], iteration_bounds = array<i64: 2>, scalar_prefetch = 0 : i64, scratch_operands = 0 : i64, tpu.core_type = #tpu.core_type<tc>, window_params = [{transform_indices = @transform_0, window_bounds = array<i64: 16, 288>}, {pipeline_mode = #tpu.pipeline_mode<synchronous>, transform_indices = @transform_1, window_bounds = array<i64: 288, 64>}, {pipeline_mode = #tpu.pipeline_mode<synchronous>, transform_indices = @transform_2, window_bounds = array<i64: 1, 64>}, {transform_indices = @transform_3, window_bounds = array<i64: 16, 64>}]} {
    %c0 = arith.constant 0 : index
    %c0_0 = arith.constant 0 : index
    %0 = vector.load %arg1[%c0, %c0_0] : memref<16x288xbf16, #tpu.memory_space<vmem>>, vector<16x288xbf16>
    %c0_1 = arith.constant 0 : index
    %c0_2 = arith.constant 0 : index
    %1 = vector.load %arg2[%c0_1, %c0_2] : memref<288x64xbf16, #tpu.memory_space<vmem>>, vector<288x64xbf16>
    %cst = arith.constant dense<0.000000e+00> : vector<16x64xf32>
    %2 = tpu.matmul %0, %1, %cst {dimension_numbers = #tpu.dot_dimension_numbers<[1], [0], [0], [1], [0, 0, 1, 1], [], []>} : vector<16x288xbf16>, vector<288x64xbf16>, vector<16x64xf32> -> vector<16x64xf32>
    %c0_3 = arith.constant 0 : index
    %c0_4 = arith.constant 0 : index
    %3 = vector.load %arg3[%c0_3, %c0_4] : memref<1x64xf32, #tpu.memory_space<vmem>>, vector<1x64xf32>
    %4 = vector.broadcast %3 : vector<1x64xf32> to vector<16x64xf32>
    %5 = arith.addf %2, %4 : vector<16x64xf32>
    %cst_5 = arith.constant 0.000000e+00 : f32
    %6 = vector.broadcast %cst_5 : f32 to vector<16x64xf32>
    %7 = arith.maximumf %5, %6 : vector<16x64xf32>
    %8 = arith.truncf %7 : vector<16x64xf32> to vector<16x64xbf16>
    %c0_6 = arith.constant 0 : index
    %c0_7 = arith.constant 0 : index
    %9 = vector.load %arg4[%c0_6, %c0_7] : memref<16x64xbf16, #tpu.memory_space<vmem>>, vector<16x64xbf16>
    tpu.vector_store %arg4[%c0_6, %c0_7], %8 {strides = array<i32>} : memref<16x64xbf16, #tpu.memory_space<vmem>>, vector<16x64xbf16>,
    return
  }
  func.func @transform_0(%arg0: i32) -> (i32, i32) {
    %c0_i32 = arith.constant 0 : i32
    %c0_i32_0 = arith.constant 0 : i32
    return %arg0, %c0_i32 : i32, i32
  }
  func.func @transform_1(%arg0: i32) -> (i32, i32) {
    %c0_i32 = arith.constant 0 : i32
    %c0_i32_0 = arith.constant 0 : i32
    %c0_i32_1 = arith.constant 0 : i32
    return %c0_i32, %c0_i32_0 : i32, i32
  }
  func.func @transform_2(%arg0: i32) -> (i32, i32) {
    %c0_i32 = arith.constant 0 : i32
    %c0_i32_0 = arith.constant 0 : i32
    %c0_i32_1 = arith.constant 0 : i32
    return %c0_i32, %c0_i32_0 : i32, i32
  }
  func.func @transform_3(%arg0: i32) -> (i32, i32) {
    %c0_i32 = arith.constant 0 : i32
    %c0_i32_0 = arith.constant 0 : i32
    return %arg0, %c0_i32 : i32, i32
  }
}

module attributes {stable_mosaic.version = 11 : i64} {
  func.func @_heads_kernel(%arg0: i32, %arg1: memref<2x256xbf16, #tpu.memory_space<vmem>>, %arg2: memref<256x512xbf16, #tpu.memory_space<vmem>>, %arg3: memref<1x512xf32, #tpu.memory_space<vmem>>, %arg4: memref<512x512xbf16, #tpu.memory_space<vmem>>, %arg5: memref<1x512xf32, #tpu.memory_space<vmem>>, %arg6: memref<512x128xbf16, #tpu.memory_space<vmem>>, %arg7: memref<1x128xf32, #tpu.memory_space<vmem>>, %arg8: memref<512x512xbf16, #tpu.memory_space<vmem>>, %arg9: memref<1x512xf32, #tpu.memory_space<vmem>>, %arg10: memref<512x128xbf16, #tpu.memory_space<vmem>>, %arg11: memref<1x128xf32, #tpu.memory_space<vmem>>, %arg12: memref<2x128xf32, #tpu.memory_space<vmem>>, %arg13: memref<2x128xf32, #tpu.memory_space<vmem>>) attributes {dimension_semantics = [#tpu.dimension_semantics<parallel>], iteration_bounds = array<i64: 1>, scalar_prefetch = 0 : i64, scratch_operands = 0 : i64, tpu.core_type = #tpu.core_type<tc>, window_params = [{transform_indices = @transform_0, window_bounds = array<i64: 2, 256>}, {pipeline_mode = #tpu.pipeline_mode<synchronous>, transform_indices = @transform_1, window_bounds = array<i64: 256, 512>}, {pipeline_mode = #tpu.pipeline_mode<synchronous>, transform_indices = @transform_2, window_bounds = array<i64: 1, 512>}, {pipeline_mode = #tpu.pipeline_mode<synchronous>, transform_indices = @transform_3, window_bounds = array<i64: 512, 512>}, {pipeline_mode = #tpu.pipeline_mode<synchronous>, transform_indices = @transform_4, window_bounds = array<i64: 1, 512>}, {pipeline_mode = #tpu.pipeline_mode<synchronous>, transform_indices = @transform_5, window_bounds = array<i64: 512, 128>}, {pipeline_mode = #tpu.pipeline_mode<synchronous>, transform_indices = @transform_6, window_bounds = array<i64: 1, 128>}, {pipeline_mode = #tpu.pipeline_mode<synchronous>, transform_indices = @transform_7, window_bounds = array<i64: 512, 512>}, {pipeline_mode = #tpu.pipeline_mode<synchronous>, transform_indices = @transform_8, window_bounds = array<i64: 1, 512>}, {pipeline_mode = #tpu.pipeline_mode<synchronous>, transform_indices = @transform_9, window_bounds = array<i64: 512, 128>}, {pipeline_mode = #tpu.pipeline_mode<synchronous>, transform_indices = @transform_10, window_bounds = array<i64: 1, 128>}, {transform_indices = @transform_11, window_bounds = array<i64: 2, 128>}, {transform_indices = @transform_12, window_bounds = array<i64: 2, 128>}]} {
    %c0 = arith.constant 0 : index
    %c0_0 = arith.constant 0 : index
    %0 = vector.load %arg1[%c0, %c0_0] : memref<2x256xbf16, #tpu.memory_space<vmem>>, vector<2x256xbf16>
    %c0_1 = arith.constant 0 : index
    %c0_2 = arith.constant 0 : index
    %1 = vector.load %arg2[%c0_1, %c0_2] : memref<256x512xbf16, #tpu.memory_space<vmem>>, vector<256x512xbf16>
    %cst = arith.constant dense<0.000000e+00> : vector<2x512xf32>
    %2 = tpu.matmul %0, %1, %cst {dimension_numbers = #tpu.dot_dimension_numbers<[1], [0], [0], [1], [0, 0, 1, 1], [], []>} : vector<2x256xbf16>, vector<256x512xbf16>, vector<2x512xf32> -> vector<2x512xf32>
    %c0_3 = arith.constant 0 : index
    %c0_4 = arith.constant 0 : index
    %3 = vector.load %arg3[%c0_3, %c0_4] : memref<1x512xf32, #tpu.memory_space<vmem>>, vector<1x512xf32>
    %4 = vector.broadcast %3 : vector<1x512xf32> to vector<2x512xf32>
    %5 = arith.addf %2, %4 : vector<2x512xf32>
    %cst_5 = arith.constant 0.000000e+00 : f32
    %6 = vector.broadcast %cst_5 : f32 to vector<2x512xf32>
    %7 = arith.maximumf %5, %6 : vector<2x512xf32>
    %8 = arith.truncf %7 : vector<2x512xf32> to vector<2x512xbf16>
    %c0_6 = arith.constant 0 : index
    %c0_7 = arith.constant 0 : index
    %9 = vector.load %arg4[%c0_6, %c0_7] : memref<512x512xbf16, #tpu.memory_space<vmem>>, vector<512x512xbf16>
    %cst_8 = arith.constant dense<0.000000e+00> : vector<2x512xf32>
    %10 = tpu.matmul %8, %9, %cst_8 {dimension_numbers = #tpu.dot_dimension_numbers<[1], [0], [0], [1], [0, 0, 1, 1], [], []>} : vector<2x512xbf16>, vector<512x512xbf16>, vector<2x512xf32> -> vector<2x512xf32>
    %c0_9 = arith.constant 0 : index
    %c0_10 = arith.constant 0 : index
    %11 = vector.load %arg5[%c0_9, %c0_10] : memref<1x512xf32, #tpu.memory_space<vmem>>, vector<1x512xf32>
    %12 = vector.broadcast %11 : vector<1x512xf32> to vector<2x512xf32>
    %13 = arith.addf %10, %12 : vector<2x512xf32>
    %cst_11 = arith.constant 0.000000e+00 : f32
    %14 = vector.broadcast %cst_11 : f32 to vector<2x512xf32>
    %15 = arith.maximumf %13, %14 : vector<2x512xf32>
    %16 = arith.truncf %15 : vector<2x512xf32> to vector<2x512xbf16>
    %c0_12 = arith.constant 0 : index
    %c0_13 = arith.constant 0 : index
    %17 = vector.load %arg6[%c0_12, %c0_13] : memref<512x128xbf16, #tpu.memory_space<vmem>>, vector<512x128xbf16>
    %cst_14 = arith.constant dense<0.000000e+00> : vector<2x128xf32>
    %18 = tpu.matmul %16, %17, %cst_14 {dimension_numbers = #tpu.dot_dimension_numbers<[1], [0], [0], [1], [0, 0, 1, 1], [], []>} : vector<2x512xbf16>, vector<512x128xbf16>, vector<2x128xf32> -> vector<2x128xf32>
    %c0_15 = arith.constant 0 : index
    %c0_16 = arith.constant 0 : index
    %19 = vector.load %arg7[%c0_15, %c0_16] : memref<1x128xf32, #tpu.memory_space<vmem>>, vector<1x128xf32>
    %20 = vector.broadcast %19 : vector<1x128xf32> to vector<2x128xf32>
    %21 = arith.addf %18, %20 : vector<2x128xf32>
    %c0_17 = arith.constant 0 : index
    %c0_18 = arith.constant 0 : index
    %22 = vector.load %arg12[%c0_17, %c0_18] : memref<2x128xf32, #tpu.memory_space<vmem>>, vector<2x128xf32>
    tpu.vector_store %arg12[%c0_17, %c0_18], %21 {strides = array<i32>} : memref<2x128xf32, #tpu.memory_space<vmem>>, vector<2x128xf32>,
    %c0_19 = arith.constant 0 : index
    %c0_20 = arith.constant 0 : index
    %23 = vector.load %arg8[%c0_19, %c0_20] : memref<512x512xbf16, #tpu.memory_space<vmem>>, vector<512x512xbf16>
    %cst_21 = arith.constant dense<0.000000e+00> : vector<2x512xf32>
    %24 = tpu.matmul %8, %23, %cst_21 {dimension_numbers = #tpu.dot_dimension_numbers<[1], [0], [0], [1], [0, 0, 1, 1], [], []>} : vector<2x512xbf16>, vector<512x512xbf16>, vector<2x512xf32> -> vector<2x512xf32>
    %c0_22 = arith.constant 0 : index
    %c0_23 = arith.constant 0 : index
    %25 = vector.load %arg9[%c0_22, %c0_23] : memref<1x512xf32, #tpu.memory_space<vmem>>, vector<1x512xf32>
    %26 = vector.broadcast %25 : vector<1x512xf32> to vector<2x512xf32>
    %27 = arith.addf %24, %26 : vector<2x512xf32>
    %cst_24 = arith.constant 0.000000e+00 : f32
    %28 = vector.broadcast %cst_24 : f32 to vector<2x512xf32>
    %29 = arith.maximumf %27, %28 : vector<2x512xf32>
    %30 = arith.truncf %29 : vector<2x512xf32> to vector<2x512xbf16>
    %c0_25 = arith.constant 0 : index
    %c0_26 = arith.constant 0 : index
    %31 = vector.load %arg10[%c0_25, %c0_26] : memref<512x128xbf16, #tpu.memory_space<vmem>>, vector<512x128xbf16>
    %cst_27 = arith.constant dense<0.000000e+00> : vector<2x128xf32>
    %32 = tpu.matmul %30, %31, %cst_27 {dimension_numbers = #tpu.dot_dimension_numbers<[1], [0], [0], [1], [0, 0, 1, 1], [], []>} : vector<2x512xbf16>, vector<512x128xbf16>, vector<2x128xf32> -> vector<2x128xf32>
    %c0_28 = arith.constant 0 : index
    %c0_29 = arith.constant 0 : index
    %33 = vector.load %arg11[%c0_28, %c0_29] : memref<1x128xf32, #tpu.memory_space<vmem>>, vector<1x128xf32>
    %34 = vector.broadcast %33 : vector<1x128xf32> to vector<2x128xf32>
    %35 = arith.addf %32, %34 : vector<2x128xf32>
    %c0_30 = arith.constant 0 : index
    %c0_31 = arith.constant 0 : index
    %36 = vector.load %arg13[%c0_30, %c0_31] : memref<2x128xf32, #tpu.memory_space<vmem>>, vector<2x128xf32>
    tpu.vector_store %arg13[%c0_30, %c0_31], %35 {strides = array<i32>} : memref<2x128xf32, #tpu.memory_space<vmem>>, vector<2x128xf32>,
    return
  }
  func.func @transform_0(%arg0: i32) -> (i32, i32) {
    %c0_i32 = arith.constant 0 : i32
    %c0_i32_0 = arith.constant 0 : i32
    return %arg0, %c0_i32 : i32, i32
  }
  func.func @transform_1(%arg0: i32) -> (i32, i32) {
    %c0_i32 = arith.constant 0 : i32
    %c0_i32_0 = arith.constant 0 : i32
    %c0_i32_1 = arith.constant 0 : i32
    return %c0_i32, %c0_i32_0 : i32, i32
  }
  func.func @transform_2(%arg0: i32) -> (i32, i32) {
    %c0_i32 = arith.constant 0 : i32
    %c0_i32_0 = arith.constant 0 : i32
    %c0_i32_1 = arith.constant 0 : i32
    return %c0_i32, %c0_i32_0 : i32, i32
  }
  func.func @transform_3(%arg0: i32) -> (i32, i32) {
    %c0_i32 = arith.constant 0 : i32
    %c0_i32_0 = arith.constant 0 : i32
    %c0_i32_1 = arith.constant 0 : i32
    return %c0_i32, %c0_i32_0 : i32, i32
  }
  func.func @transform_4(%arg0: i32) -> (i32, i32) {
    %c0_i32 = arith.constant 0 : i32
    %c0_i32_0 = arith.constant 0 : i32
    %c0_i32_1 = arith.constant 0 : i32
    return %c0_i32, %c0_i32_0 : i32, i32
  }
  func.func @transform_5(%arg0: i32) -> (i32, i32) {
    %c0_i32 = arith.constant 0 : i32
    %c0_i32_0 = arith.constant 0 : i32
    %c0_i32_1 = arith.constant 0 : i32
    return %c0_i32, %c0_i32_0 : i32, i32
  }
  func.func @transform_6(%arg0: i32) -> (i32, i32) {
    %c0_i32 = arith.constant 0 : i32
    %c0_i32_0 = arith.constant 0 : i32
    %c0_i32_1 = arith.constant 0 : i32
    return %c0_i32, %c0_i32_0 : i32, i32
  }
  func.func @transform_7(%arg0: i32) -> (i32, i32) {
    %c0_i32 = arith.constant 0 : i32
    %c0_i32_0 = arith.constant 0 : i32
    %c0_i32_1 = arith.constant 0 : i32
    return %c0_i32, %c0_i32_0 : i32, i32
  }
  func.func @transform_8(%arg0: i32) -> (i32, i32) {
    %c0_i32 = arith.constant 0 : i32
    %c0_i32_0 = arith.constant 0 : i32
    %c0_i32_1 = arith.constant 0 : i32
    return %c0_i32, %c0_i32_0 : i32, i32
  }
  func.func @transform_9(%arg0: i32) -> (i32, i32) {
    %c0_i32 = arith.constant 0 : i32
    %c0_i32_0 = arith.constant 0 : i32
    %c0_i32_1 = arith.constant 0 : i32
    return %c0_i32, %c0_i32_0 : i32, i32
  }
  func.func @transform_10(%arg0: i32) -> (i32, i32) {
    %c0_i32 = arith.constant 0 : i32
    %c0_i32_0 = arith.constant 0 : i32
    %c0_i32_1 = arith.constant 0 : i32
    return %c0_i32, %c0_i32_0 : i32, i32
  }
  func.func @transform_11(%arg0: i32) -> (i32, i32) {
    %c0_i32 = arith.constant 0 : i32
    %c0_i32_0 = arith.constant 0 : i32
    return %arg0, %c0_i32 : i32, i32
  }
  func.func @transform_12(%arg0: i32) -> (i32, i32) {
    %c0_i32 = arith.constant 0 : i32
    %c0_i32_0 = arith.constant 0 : i32
    return %arg0, %c0_i32 : i32, i32
  }
}

module attributes {stable_mosaic.version = 11 : i64} {
  func.func @_linear_kernel(%arg0: i32, %arg1: memref<8x576xbf16, #tpu.memory_space<vmem>>, %arg2: memref<576x64xbf16, #tpu.memory_space<vmem>>, %arg3: memref<1x64xf32, #tpu.memory_space<vmem>>, %arg4: memref<8x64xbf16, #tpu.memory_space<vmem>>) attributes {dimension_semantics = [#tpu.dimension_semantics<parallel>], iteration_bounds = array<i64: 1>, scalar_prefetch = 0 : i64, scratch_operands = 0 : i64, tpu.core_type = #tpu.core_type<tc>, window_params = [{transform_indices = @transform_0, window_bounds = array<i64: 8, 576>}, {pipeline_mode = #tpu.pipeline_mode<synchronous>, transform_indices = @transform_1, window_bounds = array<i64: 576, 64>}, {pipeline_mode = #tpu.pipeline_mode<synchronous>, transform_indices = @transform_2, window_bounds = array<i64: 1, 64>}, {transform_indices = @transform_3, window_bounds = array<i64: 8, 64>}]} {
    %c0 = arith.constant 0 : index
    %c0_0 = arith.constant 0 : index
    %0 = vector.load %arg1[%c0, %c0_0] : memref<8x576xbf16, #tpu.memory_space<vmem>>, vector<8x576xbf16>
    %c0_1 = arith.constant 0 : index
    %c0_2 = arith.constant 0 : index
    %1 = vector.load %arg2[%c0_1, %c0_2] : memref<576x64xbf16, #tpu.memory_space<vmem>>, vector<576x64xbf16>
    %cst = arith.constant dense<0.000000e+00> : vector<8x64xf32>
    %2 = tpu.matmul %0, %1, %cst {dimension_numbers = #tpu.dot_dimension_numbers<[1], [0], [0], [1], [0, 0, 1, 1], [], []>} : vector<8x576xbf16>, vector<576x64xbf16>, vector<8x64xf32> -> vector<8x64xf32>
    %c0_3 = arith.constant 0 : index
    %c0_4 = arith.constant 0 : index
    %3 = vector.load %arg3[%c0_3, %c0_4] : memref<1x64xf32, #tpu.memory_space<vmem>>, vector<1x64xf32>
    %4 = vector.broadcast %3 : vector<1x64xf32> to vector<8x64xf32>
    %5 = arith.addf %2, %4 : vector<8x64xf32>
    %cst_5 = arith.constant 0.000000e+00 : f32
    %6 = vector.broadcast %cst_5 : f32 to vector<8x64xf32>
    %7 = arith.maximumf %5, %6 : vector<8x64xf32>
    %8 = arith.truncf %7 : vector<8x64xf32> to vector<8x64xbf16>
    %c0_6 = arith.constant 0 : index
    %c0_7 = arith.constant 0 : index
    %9 = vector.load %arg4[%c0_6, %c0_7] : memref<8x64xbf16, #tpu.memory_space<vmem>>, vector<8x64xbf16>
    tpu.vector_store %arg4[%c0_6, %c0_7], %8 {strides = array<i32>} : memref<8x64xbf16, #tpu.memory_space<vmem>>, vector<8x64xbf16>,
    return
  }
  func.func @transform_0(%arg0: i32) -> (i32, i32) {
    %c0_i32 = arith.constant 0 : i32
    %c0_i32_0 = arith.constant 0 : i32
    return %arg0, %c0_i32 : i32, i32
  }
  func.func @transform_1(%arg0: i32) -> (i32, i32) {
    %c0_i32 = arith.constant 0 : i32
    %c0_i32_0 = arith.constant 0 : i32
    %c0_i32_1 = arith.constant 0 : i32
    return %c0_i32, %c0_i32_0 : i32, i32
  }
  func.func @transform_2(%arg0: i32) -> (i32, i32) {
    %c0_i32 = arith.constant 0 : i32
    %c0_i32_0 = arith.constant 0 : i32
    %c0_i32_1 = arith.constant 0 : i32
    return %c0_i32, %c0_i32_0 : i32, i32
  }
  func.func @transform_3(%arg0: i32) -> (i32, i32) {
    %c0_i32 = arith.constant 0 : i32
    %c0_i32_0 = arith.constant 0 : i32
    return %arg0, %c0_i32 : i32, i32
  }
}

</mosaic_0001>

<bundles_post_ra>
// kernel: model_forward.4
= control target key start
LH: loop header
LB: loop body
LE: loop exit
PB: predicated region body
PF: predicated region fallthrough
CT: control target
= control target key end

     0   :  { %s445_s12 = smov 0   ;;  %s495_s0 = inlined_call_operand.vmem [shape: bf16[128,36], index: 0, kind: input, shape index: {}]   ;;  %s496_s1 = inlined_call_operand.vmem [shape: bf16[36,32], index: 1, kind: input, shape index: {}]   ;;  %s497_s2 = inlined_call_operand.vmem [shape: f32[1,32], index: 2, kind: input, shape index: {}]   ;;  %s498_s3 = inlined_call_operand.vmem [shape: bf16[128,32], index: 3, kind: output, shape index: {}]  }
   0x1 LB: > { %s354_s13 = sadd.s32 4294967295, %s423_s12   ;;  %p358_p0 = scmp.ge.s32.totalorder %s423_s12, 1  ;;  %s423_s12 = sphi %s445_s12, %s13_s12  }
   0x2   : > { %p138_p1 = scmp.lt.s32.totalorder %s423_s12, 3 }
   0x4   : > { %p139_p2 = pnand %p358_p0, %p138_p1 }
   0x5   : > { %s359_s16 = sshll.u32 (!%p139_p2), %s354_s13, 3 }
   0x6   : > { %142 = sbr.rel (%p139_p2) target bundleno = 177 (0xb1), region = 32  ;;  %p163_p3 = scmp.lt.s32.totalorder (!%p139_p2), %s359_s16, 15 }
   0xb   : > { %v187_v0 = vld [vmem:[%s496_s1 + $0x10] sm:$0x3]  ;;  %vm240_vm0 = vcmask 1041408   ;;  %s500_s16 = smov (!%p163_p3, %s359_s16), 15  ;;  %v398_v4 = vld [vmem:[%s496_s1 + $0x8] sm:$0xff]  ;;  %v397_v5 = vld [vmem:[%s496_s1] sm:$0xff] }
   0xc   : > { %v221_v1 = vunpack.c.l.b16 %v187_v0  ;;  %s360_s19 = sshll.u32 %s500_s16, 2  ;;  %vm227_vm1 = vcmask 293888   ;;  %v416_v10 = vld [vmem:[%s497_s2] ss:$0 sm:$0xff]  ;;  %vm289_vm2 = vcmask 257024  }
   0xd   : > { %s166_s24 = scalar_lea.vmem %s495_s0, %s360_s19  ;;  %s474_s29 = scalar_lea.vmem %s498_s3, %s360_s19 }
   0xe   : > { %v224_v2 = vpack.c.b16 %v221_v1, %v221_v1  ;;  %v393_v6 = vld [vmem:[%s166_s24] sm:$0xff]  ;;  %v394_v7 = vld [vmem:[%s166_s24 + $0x8] sm:$0xff]  ;;  %v395_v8 = vld [vmem:[%s166_s24 + $0x10] sm:$0xff] }
   0xf   : > { %v396_v9 = vld [vmem:[%s166_s24 + $0x18] sm:$0xff] }
  0x10   : > { %v242_v3 = vsel %vm240_vm0, %v224_v2, 0 }
  0x11   : > { %249 = vmatpush.bf16.msra.mxu0 %v242_v3  ;;  %399 = vmatpush.bf16.msra.mxu1 %v242_v3 }
  0x12   : > { %400 = vmatpush.bf16.msra.mxu2 %v242_v3  ;;  %401 = vmatpush.bf16.msra.mxu3 %v242_v3 }
  0x15   : > { %250 = vmatpush.bf16.msra.mxu0 %v398_v4  ;;  %402 = vmatpush.bf16.msra.mxu1 %v398_v4 }
  0x16   : > { %403 = vmatpush.bf16.msra.mxu2 %v398_v4  ;;  %404 = vmatpush.bf16.msra.mxu3 %v398_v4 }
  0x19   : > { %251 = vmatpush.bf16.msra.mxu0 %v397_v5  ;;  %405 = vmatpush.bf16.msra.mxu1 %v397_v5 }
  0x1a   : > { %406 = vmatpush.bf16.msra.mxu2 %v397_v5  ;;  %407 = vmatpush.bf16.msra.mxu3 %v397_v5 }
  0x1c   : > { %387 = vmatmul.msk.bf16.vlgmr.msra.gmra.mxu0 %vm227_vm1, %v393_v6  ;;  %388 = vmatmul.msk.bf16.vlgmr.msra.gmra.mxu1 %vm227_vm1, %v394_v7 }
  0x1d   : > { %389 = vmatmul.msk.bf16.vlgmr.msra.gmra.mxu2 %vm227_vm1, %v395_v8  ;;  %390 = vmatmul.msk.bf16.vlgmr.msra.gmra.mxu3 %vm227_vm1, %v396_v9 }
  0x99   : > { %v253_v11 = vpop.f32.mrf.mxu0  ;;  %v258_v12 = vpop.f32.mrf.mxu1 }
  0x9a   : > { %v254_v13 = vadd.f32 %v416_v10, %v253_v11  ;;  %v259_v14 = vadd.f32 %v416_v10, %v258_v12 }
  0x9c   : > { %v273_v15 = vmax.f32 %v254_v13, 0.0  ;;  %v275_v16 = vmax.f32 %v259_v14, 0.0 }
  0x9e   : > { %v281_v17 = vpack.c.bf16 %v273_v15, %v273_v15  ;;  %v283_v18 = vpack.c.bf16 %v275_v16, %v275_v16 }
  0xa0   : > { %290 = vst.msk [vmem:[%s474_s29] sm:$0xf] %vm289_vm2, %v281_v17  ;;  %v263_v19 = vpop.f32.mrf.mxu2  ;;  %v268_v20 = vpop.f32.mrf.mxu3 }
  0xa1   : > { %292 = vst.msk [vmem:[%s474_s29 + $0x8] sm:$0xf] %vm289_vm2, %v283_v18  ;;  %v264_v21 = vadd.f32 %v416_v10, %v263_v19  ;;  %v269_v22 = vadd.f32 %v416_v10, %v268_v20  ;;  %v255_v23 = vpop.f32.mrf.mxu0  ;;  %v260_v24 = vpop.f32.mrf.mxu1 }
  0xa2   : > { %v256_v25 = vadd.f32 %v416_v10, %v255_v23  ;;  %v261_v26 = vadd.f32 %v416_v10, %v260_v24 }
  0xa3   : > { %v277_v27 = vmax.f32 %v264_v21, 0.0  ;;  %v279_v28 = vmax.f32 %v269_v22, 0.0 }
  0xa4   : > { %v274_v29 = vmax.f32 %v256_v25, 0.0  ;;  %v276_v30 = vmax.f32 %v261_v26, 0.0 }
  0xa5   : > { %v285_v31 = vpack.c.bf16 %v277_v27, %v277_v27  ;;  %v287_v32 = vpack.c.bf16 %v279_v28, %v279_v28 }
  0xa6   : > { %v282_v33 = vpack.c.bf16 %v274_v29, %v274_v29  ;;  %v284_v34 = vpack.c.bf16 %v276_v30, %v276_v30 }
  0xa7   : > { %294 = vst.msk [vmem:[%s474_s29 + $0x10] sm:$0xf] %vm289_vm2, %v285_v31 }
  0xa8   : > { %296 = vst.msk [vmem:[%s474_s29 + $0x18] sm:$0xf] %vm289_vm2, %v287_v32  ;;  %v265_v35 = vpop.f32.mrf.mxu2  ;;  %v270_v36 = vpop.f32.mrf.mxu3 }
  0xa9   : > { %291 = vst.msk [vmem:[%s474_s29 + $0x4] sm:$0xf] %vm289_vm2, %v282_v33  ;;  %v266_v37 = vadd.f32 %v416_v10, %v265_v35  ;;  %v271_v38 = vadd.f32 %v416_v10, %v270_v36 }
  0xaa   : > { %293 = vst.msk [vmem:[%s474_s29 + $0xc] sm:$0xf] %vm289_vm2, %v284_v34 }
  0xab   : > { %v278_v39 = vmax.f32 %v266_v37, 0.0  ;;  %v280_v40 = vmax.f32 %v271_v38, 0.0 }
  0xad   : > { %v286_v41 = vpack.c.bf16 %v278_v39, %v278_v39  ;;  %v288_v42 = vpack.c.bf16 %v280_v40, %v280_v40 }
  0xaf   : > { %295 = vst.msk [vmem:[%s474_s29 + $0x14] sm:$0xf] %vm289_vm2, %v286_v41 }
  0xb0   : > { %297 = vst.msk [vmem:[%s474_s29 + $0x1c] sm:$0xf] %vm289_vm2, %v288_v42 }
  0xb1 PF: > { %s13_s12 = sadd.s32 1, %s423_s12  }
  0xb2   : > { %p10_p4 = scmp.ge.s32.totalorder %s13_s12, 4  }
  0xb4   :  { %12 = sbr.rel (!%p10_p4) target bundleno = 1 (0x1), region = 62 }

// kernel: model_forward.5
= control target key start
LH: loop header
LB: loop body
LE: loop exit
PB: predicated region body
PF: predicated region fallthrough
CT: control target
= control target key end

     0   :  { %s609_s12 = smov 0   ;;  %s687_s0 = inlined_call_operand.vmem [shape: bf16[32,288], index: 0, kind: input, shape index: {}]   ;;  %s688_s1 = inlined_call_operand.vmem [shape: bf16[288,64], index: 1, kind: input, shape index: {}]   ;;  %s689_s2 = inlined_call_operand.vmem [shape: f32[1,64], index: 2, kind: input, shape index: {}]   ;;  %s690_s3 = inlined_call_operand.vmem [shape: bf16[32,64], index: 3, kind: output, shape index: {}]  }
   0x1 LB: > { %s454_s13 = sadd.s32 4294967295, %s587_s12   ;;  %p458_p0 = scmp.ge.s32.totalorder %s587_s12, 1  ;;  %s587_s12 = sphi %s609_s12, %s13_s12  }
   0x2   : > { %p139_p1 = scmp.lt.s32.totalorder %s587_s12, 3 }
   0x4   : > { %p140_p2 = pnand %p458_p0, %p139_p1 }
   0x5   : > { %s459_s18 = sshll.u32 (!%p140_p2), %s454_s13, 1 }
   0x6   : > { %143 = sbr.rel (%p140_p2) target bundleno = 188 (0xbc), region = 32  ;;  %p165_p3 = scmp.lt.s32.totalorder (!%p140_p2), %s459_s18, 3 }
   0xb   : > { %v560_v0 = vld [vmem:[%s688_s1 + $0x38] sm:$0xff]  ;;  %v559_v2 = vld [vmem:[%s688_s1 + $0x30] sm:$0xff]  ;;  %v570_v4 = vld [vmem:[%s688_s1 + $0x88] sm:$0xff]  ;;  %s692_s18 = smov (!%p165_p3, %s459_s18), 3  ;;  %vm345_vm0 = vcmask 261120   ;;  %vm395_vm1 = vcmask 519168  }
   0xc   : > { %v568_v1 = vld [vmem:[%s688_s1 + $0x78] sm:$0xff]  ;;  %349 = vmatpush.bf16.msra.mxu0 %v560_v0  ;;  %v567_v3 = vld [vmem:[%s688_s1 + $0x70] sm:$0xff]  ;;  %383 = vmatpush.bf16.msra.mxu2 %v570_v4  ;;  %v569_v5 = vld [vmem:[%s688_s1 + $0x80] sm:$0xff]  ;;  %s571_s27 = smul.u32 12, %s692_s18  ;;  %s462_s5 = sshll.u32 %s692_s18, 2 }
   0xd   : > { %363 = vmatpush.bf16.msra.mxu1 %v568_v1  ;;  %v558_v6 = vld [vmem:[%s688_s1 + $0x28] sm:$0xff]  ;;  %v557_v11 = vld [vmem:[%s688_s1 + $0x20] sm:$0xff]  ;;  %v556_v13 = vld [vmem:[%s688_s1 + $0x18] sm:$0xff]  ;;  %s175_s8 = scalar_lea.vmem %s690_s3, %s462_s5 }
   0xe   : > { %v566_v7 = vld [vmem:[%s688_s1 + $0x68] sm:$0xff]  ;;  %s169_s7 = scalar_lea.vmem %s687_s0, %s571_s27  ;;  %v565_v12 = vld [vmem:[%s688_s1 + $0x60] sm:$0xff]  ;;  %v564_v14 = vld [vmem:[%s688_s1 + $0x58] sm:$0xff] }
   0xf   : > { %v473_v8 = vld [vmem:[%s169_s7 + $0x8] sm:$0xf]  ;;  %v552_v9 = vld [vmem:[%s169_s7 + $0x10] sm:$0xf0]  ;;  %v553_v19 = vld [vmem:[%s688_s1] sm:$0xff] }
  0x10   : > { %350 = vmatpush.bf16.msra.mxu0 %v559_v2  ;;  %384 = vmatpush.bf16.msra.mxu2 %v569_v5  ;;  %v474_v10 = vor.u32 %v552_v9, %v473_v8  ;;  %v555_v15 = vld [vmem:[%s688_s1 + $0x10] sm:$0xff]  ;;  %v554_v17 = vld [vmem:[%s688_s1 + $0x8] sm:$0xff]  ;;  %v561_v20 = vld [vmem:[%s688_s1 + $0x40] sm:$0xff] }
  0x11   : > { %364 = vmatpush.bf16.msra.mxu1 %v567_v3  ;;  %v563_v16 = vld [vmem:[%s688_s1 + $0x50] sm:$0xff]  ;;  %v562_v18 = vld [vmem:[%s688_s1 + $0x48] sm:$0xff]  ;;  %v465_v21 = vld [vmem:[%s169_s7] sm:$0xf] }
  0x12   : > { %v551_v22 = vld [vmem:[%s169_s7 + $0x8] sm:$0xf0]  ;;  %v550_v23 = vld [vmem:[%s169_s7 + $0x4] sm:$0xf]  ;;  %v467_v24 = vld [vmem:[%s169_s7 + $0xc] sm:$0xf0] }
  0x13   : > { %547 = vmatmul.msk.bf16.vlgmr.msra.gmra.mxu2 %vm345_vm0, %v474_v10  ;;  %v466_v25 = vor.u32 %v551_v22, %v465_v21  ;;  %v470_v26 = vor.u32 %v550_v23, %v467_v24  ;;  %v580_v27 = vld [vmem:[%s689_s2] ss:$0 sm:$0xff] }
  0x14   : > { %351 = vmatpush.bf16.msra.mxu0 %v558_v6 }
  0x15   : > { %365 = vmatpush.bf16.msra.mxu1 %v566_v7 }
  0x18   : > { %352 = vmatpush.bf16.msra.mxu0 %v557_v11 }
  0x19   : > { %366 = vmatpush.bf16.msra.mxu1 %v565_v12 }
  0x1c   : > { %353 = vmatpush.bf16.msra.mxu0 %v556_v13 }
  0x1d   : > { %367 = vmatpush.bf16.msra.mxu1 %v564_v14 }
  0x20   : > { %354 = vmatpush.bf16.msra.mxu0 %v555_v15 }
  0x21   : > { %368 = vmatpush.bf16.msra.mxu1 %v563_v16 }
  0x24   : > { %355 = vmatpush.bf16.msra.mxu0 %v554_v17 }
  0x25   : > { %369 = vmatpush.bf16.msra.mxu1 %v562_v18 }
  0x28   : > { %356 = vmatpush.bf16.msra.mxu0 %v553_v19 }
  0x29   : > { %370 = vmatpush.bf16.msra.mxu1 %v561_v20 }
  0x2b   : > { %357 = vmatmul.bf16.vlgmr.msra.gmra.mxu0 %v466_v25 }
  0x2c   : > { %371 = vmatmul.bf16.vlgmr.msra.gmra.mxu1 %v470_v26 }
  0x96   : > { %v386_v31 = vpop.f32.mrf.mxu2 }
  0x9e   : > { %v388_v40 = vpop.f32.mrf.mxu2 }
  0xa8   : > { %v358_v28 = vpop.f32.mrf.mxu0 }
  0xa9   : > { %v372_v29 = vpop.f32.mrf.mxu1  ;;  %v359_v30 = vadd.f32 %v580_v27, %v358_v28 }
  0xab   : > { %v373_v32 = vadd.f32 %v372_v29, %v359_v30 }
  0xad   : > { %v387_v33 = vadd.f32 %v386_v31, %v373_v32 }
  0xaf   : > { %v391_v34 = vmax.f32 %v387_v33, 0.0 }
  0xb0   : > { %v360_v35 = vpop.f32.mrf.mxu0 }
  0xb1   : > { %v393_v36 = vpack.c.bf16 %v391_v34, %v391_v34  ;;  %v361_v37 = vadd.f32 %v580_v27, %v360_v35  ;;  %v374_v38 = vpop.f32.mrf.mxu1 }
  0xb3   : > { %396 = vst.msk [vmem:[%s175_s8] sm:$0xf] %vm395_vm1, %v393_v36  ;;  %v375_v39 = vadd.f32 %v374_v38, %v361_v37 }
  0xb5   : > { %v389_v41 = vadd.f32 %v388_v40, %v375_v39 }
  0xb7   : > { %v392_v42 = vmax.f32 %v389_v41, 0.0 }
  0xb9   : > { %v394_v43 = vpack.c.bf16 %v392_v42, %v392_v42 }
  0xbb   : > { %397 = vst.msk [vmem:[%s175_s8 + $0x4] sm:$0xf] %vm395_vm1, %v394_v43 }
  0xbc PF: > { %s13_s12 = sadd.s32 1, %s587_s12  }
  0xbd   : > { %p10_p4 = scmp.ge.s32.totalorder %s13_s12, 4  }
  0xbf   :  { %12 = sbr.rel (!%p10_p4) target bundleno = 1 (0x1), region = 62 }

// kernel: model_forward.6
= control target key start
LH: loop header
LB: loop body
LE: loop exit
PB: predicated region body
PF: predicated region fallthrough
CT: control target
= control target key end

     0   :  { %vm327_vm0 = vcmask 523264   ;;  %vm398_vm1 = vcmask 519168   ;;  %s729_s1 = inlined_call_operand.vmem [shape: bf16[576,64], index: 1, kind: input, shape index: {}]   ;;  %s730_s2 = inlined_call_operand.vmem [shape: f32[1,64], index: 2, kind: input, shape index: {}]   ;;  %s731_s0 = inlined_call_operand.vmem [shape: bf16[8,576], index: 0, kind: input, shape index: {}]   ;;  %s732_s3 = inlined_call_operand.vmem [shape: bf16[8,64], index: 3, kind: output, shape index: {}]  }
   0x1   :  { %v556_v0 = vld [vmem:[%s729_s1 + $0x38] sm:$0xff]  ;;  %v555_v4 = vld [vmem:[%s729_s1 + $0x30] sm:$0xff]  ;;  %v554_v8 = vld [vmem:[%s729_s1 + $0x28] sm:$0xff] }
   0x2   :  { %v572_v1 = vld [vmem:[%s729_s1 + $0xb8] sm:$0xff]  ;;  %331 = vmatpush.bf16.msra.mxu0 %v556_v0  ;;  %v571_v5 = vld [vmem:[%s729_s1 + $0xb0] sm:$0xff]  ;;  %v570_v9 = vld [vmem:[%s729_s1 + $0xa8] sm:$0xff] }
   0x3   :  { %v580_v2 = vld [vmem:[%s729_s1 + $0xf8] sm:$0xff]  ;;  %357 = vmatpush.bf16.msra.mxu2 %v572_v1  ;;  %v579_v6 = vld [vmem:[%s729_s1 + $0xf0] sm:$0xff]  ;;  %v578_v10 = vld [vmem:[%s729_s1 + $0xe8] sm:$0xff] }
   0x4   :  { %v564_v3 = vld [vmem:[%s729_s1 + $0x78] sm:$0xff]  ;;  %370 = vmatpush.bf16.msra.mxu3 %v580_v2  ;;  %v563_v7 = vld [vmem:[%s729_s1 + $0x70] sm:$0xff]  ;;  %v562_v11 = vld [vmem:[%s729_s1 + $0x68] sm:$0xff] }
   0x5   :  { %344 = vmatpush.bf16.msra.mxu1 %v564_v3  ;;  %v553_v12 = vld [vmem:[%s729_s1 + $0x20] sm:$0xff]  ;;  %v552_v16 = vld [vmem:[%s729_s1 + $0x18] sm:$0xff]  ;;  %v551_v20 = vld [vmem:[%s729_s1 + $0x10] sm:$0xff] }
   0x6   :  { %332 = vmatpush.bf16.msra.mxu0 %v555_v4  ;;  %v569_v13 = vld [vmem:[%s729_s1 + $0xa0] sm:$0xff]  ;;  %v568_v17 = vld [vmem:[%s729_s1 + $0x98] sm:$0xff]  ;;  %v567_v21 = vld [vmem:[%s729_s1 + $0x90] sm:$0xff] }
   0x7   :  { %358 = vmatpush.bf16.msra.mxu2 %v571_v5  ;;  %v577_v14 = vld [vmem:[%s729_s1 + $0xe0] sm:$0xff]  ;;  %v576_v18 = vld [vmem:[%s729_s1 + $0xd8] sm:$0xff]  ;;  %v575_v22 = vld [vmem:[%s729_s1 + $0xd0] sm:$0xff] }
   0x8   :  { %371 = vmatpush.bf16.msra.mxu3 %v579_v6  ;;  %v561_v15 = vld [vmem:[%s729_s1 + $0x60] sm:$0xff]  ;;  %v560_v19 = vld [vmem:[%s729_s1 + $0x58] sm:$0xff]  ;;  %v559_v23 = vld [vmem:[%s729_s1 + $0x50] sm:$0xff] }
   0x9   :  { %345 = vmatpush.bf16.msra.mxu1 %v563_v7  ;;  %v550_v24 = vld [vmem:[%s729_s1 + $0x8] sm:$0xff]  ;;  %v15_v26 = vld [vmem:[%s731_s0] sm:$0xff]  ;;  %v584_v38 = vld [vmem:[%s729_s1 + $0x118] sm:$0xff] }
   0xa   :  { %333 = vmatpush.bf16.msra.mxu0 %v554_v8  ;;  %v566_v25 = vld [vmem:[%s729_s1 + $0x88] sm:$0xff]  ;;  %v97_v30 = vunpack.c.l.b16 %v15_v26  ;;  %v549_v32 = vld [vmem:[%s729_s1] sm:$0xff]  ;;  %v98_v35 = vunpack.c.h.b16 %v15_v26  ;;  %v583_v43 = vld [vmem:[%s729_s1 + $0x110] sm:$0xff] }
   0xb   :  { %359 = vmatpush.bf16.msra.mxu2 %v570_v9  ;;  %v16_v27 = vld [vmem:[%s731_s0 + $0x8] sm:$0xff]  ;;  %v565_v33 = vld [vmem:[%s729_s1 + $0x80] sm:$0xff]  ;;  %v17_v45 = vld [vmem:[%s731_s0 + $0x10] sm:$0xf] }
   0xc   :  { %372 = vmatpush.bf16.msra.mxu3 %v578_v10  ;;  %v574_v28 = vld [vmem:[%s729_s1 + $0xc8] sm:$0xff]  ;;  %v99_v31 = vunpack.c.l.b16 %v16_v27  ;;  %v100_v34 = vunpack.c.h.b16 %v16_v27  ;;  %v573_v36 = vld [vmem:[%s729_s1 + $0xc0] sm:$0xff]  ;;  %v102_v39 = vpack.c.b16 %v97_v30, %v97_v30  ;;  %v103_v42 = vpack.c.b16 %v98_v35, %v98_v35 }
   0xd   :  { %346 = vmatpush.bf16.msra.mxu1 %v562_v11  ;;  %v558_v29 = vld [vmem:[%s729_s1 + $0x48] sm:$0xff]  ;;  %v557_v37 = vld [vmem:[%s729_s1 + $0x40] sm:$0xff]  ;;  %v101_v47 = vunpack.c.l.b16 %v17_v45 }
   0xe   :  { %334 = vmatpush.bf16.msra.mxu0 %v553_v12  ;;  %v104_v40 = vpack.c.b16 %v99_v31, %v99_v31  ;;  %v105_v41 = vpack.c.b16 %v100_v34, %v100_v34  ;;  %v582_v44 = vld [vmem:[%s729_s1 + $0x108] sm:$0xff]  ;;  %v581_v46 = vld [vmem:[%s729_s1 + $0x100] sm:$0xff] }
   0xf   :  { %360 = vmatpush.bf16.msra.mxu2 %v569_v13  ;;  %v106_v48 = vpack.c.b16 %v101_v47, %v101_v47  ;;  %v585_v50 = vld [vmem:[%s730_s2] ss:$0 sm:$0xff] }
  0x10   :  { %373 = vmatpush.bf16.msra.mxu3 %v577_v14 }
  0x11   :  { %347 = vmatpush.bf16.msra.mxu1 %v561_v15 }
  0x12   :  { %335 = vmatpush.bf16.msra.mxu0 %v552_v16 }
  0x13   :  { %361 = vmatpush.bf16.msra.mxu2 %v568_v17 }
  0x14   :  { %374 = vmatpush.bf16.msra.mxu3 %v576_v18 }
  0x15   :  { %348 = vmatpush.bf16.msra.mxu1 %v560_v19 }
  0x16   :  { %336 = vmatpush.bf16.msra.mxu0 %v551_v20 }
  0x17   :  { %362 = vmatpush.bf16.msra.mxu2 %v567_v21 }
  0x18   :  { %375 = vmatpush.bf16.msra.mxu3 %v575_v22 }
  0x19   :  { %349 = vmatpush.bf16.msra.mxu1 %v559_v23 }
  0x1a   :  { %337 = vmatpush.bf16.msra.mxu0 %v550_v24 }
  0x1b   :  { %363 = vmatpush.bf16.msra.mxu2 %v566_v25 }
  0x1c   :  { %376 = vmatpush.bf16.msra.mxu3 %v574_v28 }
  0x1d   :  { %350 = vmatpush.bf16.msra.mxu1 %v558_v29 }
  0x1e   :  { %338 = vmatpush.bf16.msra.mxu0 %v549_v32 }
  0x1f   :  { %364 = vmatpush.bf16.msra.mxu2 %v565_v33 }
  0x20   :  { %377 = vmatpush.bf16.msra.mxu3 %v573_v36 }
  0x21   :  { %351 = vmatpush.bf16.msra.mxu1 %v557_v37  ;;  %339 = vmatmul.bf16.vlgmr.msra.gmra.mxu0 %v102_v39 }
  0x22   :  { %387 = vmatpush.bf16.msrb.mxu0 %v584_v38  ;;  %365 = vmatmul.bf16.vlgmr.msra.gmra.mxu2 %v104_v40 }
  0x23   :  { %378 = vmatmul.bf16.vlgmr.msra.gmra.mxu3 %v105_v41 }
  0x24   :  { %352 = vmatmul.bf16.vlgmr.msra.gmra.mxu1 %v103_v42 }
  0x26   :  { %388 = vmatpush.bf16.msrb.mxu0 %v583_v43 }
  0x2a   :  { %389 = vmatpush.bf16.msrb.mxu0 %v582_v44 }
  0x2e   :  { %390 = vmatpush.bf16.msrb.mxu0 %v581_v46 }
  0x31   :  { %548 = vmatmul.msk.bf16.vlgmr.msrb.gmra.mxu0 %vm327_vm0, %v106_v48 }
  0x9e   :  { %v340_v49 = vpop.f32.mrf.mxu0 }
  0x9f   :  { %v341_v52 = vadd.f32 %v585_v50, %v340_v49 }
  0xa1   :  { %v353_v51 = vpop.f32.mrf.mxu1 }
  0xa2   :  { %v354_v56 = vadd.f32 %v353_v51, %v341_v52 }
  0xa5   :  { %v366_v53 = vpop.f32.mrf.mxu2 }
  0xa6   :  { %v379_v54 = vpop.f32.mrf.mxu3  ;;  %v342_v55 = vpop.f32.mrf.mxu0  ;;  %v367_v58 = vadd.f32 %v366_v53, %v354_v56 }
  0xa8   :  { %v380_v60 = vadd.f32 %v379_v54, %v367_v58 }
  0xa9   :  { %v355_v57 = vpop.f32.mrf.mxu1 }
  0xad   :  { %v368_v59 = vpop.f32.mrf.mxu2 }
  0xae   :  { %v381_v61 = vpop.f32.mrf.mxu3  ;;  %v392_v62 = vpop.f32.mrf.mxu0 }
  0xaf   :  { %v393_v63 = vadd.f32 %v392_v62, %v380_v60 }
  0xb1   :  { %v396_v0 = vmax.f32 %v393_v63, 0.0 }
  0xb3   :  { %v397_v1 = vpack.c.bf16 %v396_v0, %v396_v0 }
  0xb5   :  { %399 = vst.msk [vmem:[%s732_s3] sm:$0xf] %vm398_vm1, %v397_v1 }
  0xb6   :  { %v394_v2 = vpop.f32.mrf.mxu0 }

// kernel: model_forward.7
= control target key start
LH: loop header
LB: loop body
LE: loop exit
PB: predicated region body
PF: predicated region fallthrough
CT: control target
= control target key end

     0   :  { %s7448_s0 = inlined_call_operand.vmem [shape: bf16[2,256], index: 0, kind: input, shape index: {}]   ;;  %s7449_s1 = inlined_call_operand.vmem [shape: bf16[256,512], index: 1, kind: input, shape index: {}]   ;;  %s7450_s2 = inlined_call_operand.vmem [shape: f32[1,512], index: 2, kind: input, shape index: {}]   ;;  %s7451_s3 = inlined_call_operand.vmem [shape: bf16[512,512], index: 3, kind: input, shape index: {}]   ;;  %s7452_s4 = inlined_call_operand.vmem [shape: f32[1,512], index: 4, kind: input, shape index: {}]   ;;  %s7453_s5 = inlined_call_operand.vmem [shape: bf16[512,128], index: 5, kind: input, shape index: {}]   ;;  %s7454_s6 = inlined_call_operand.vmem [shape: f32[1,128], index: 6, kind: input, shape index: {}]   ;;  %s7455_s7 = inlined_call_operand.vmem [shape: bf16[512,512], index: 7, kind: input, shape index: {}]   ;;  %s7456_s8 = inlined_call_operand.vmem [shape: f32[1,512], index: 8, kind: input, shape index: {}]   ;;  %s7457_s9 = inlined_call_operand.vmem [shape: bf16[512,128], index: 9, kind: input, shape index: {}]   ;;  %s7458_s10 = inlined_call_operand.vmem [shape: f32[1,128], index: 10, kind: input, shape index: {}]   ;;  %s7459_s11 = inlined_call_operand.hbm [shape: f32[2,128], index: 11, kind: output, shape index: {0}]   ;;  %s7460_s12 = inlined_call_operand.vmem [shape: f32[2,128], index: 12, kind: output, shape index: {1}]  }
   0x1   :  { %v3302_v0 = vld [vmem:[%s7449_s1 + $0xe0] sm:$0xf]  ;;  %v4754_v1 = vld [vmem:[%s7449_s1 + $0xec] sm:$0xf0]  ;;  %v4752_v5 = vld [vmem:[%s7449_s1 + $0xe4] sm:$0xf] }
   0x2   :  { %v3430_v2 = vld [vmem:[%s7449_s1 + $0x1e0] sm:$0xf]  ;;  %v3303_v3 = vor.u32 %v4754_v1, %v3302_v0  ;;  %v4786_v4 = vld [vmem:[%s7449_s1 + $0x1ec] sm:$0xf0]  ;;  %v3304_v6 = vld [vmem:[%s7449_s1 + $0xf0] sm:$0xf0] }
   0x3   :  { %v3431_v7 = vor.u32 %v4786_v4, %v3430_v2  ;;  %v3307_v8 = vor.u32 %v4752_v5, %v3304_v6  ;;  %v4784_v9 = vld [vmem:[%s7449_s1 + $0x1e4] sm:$0xf]  ;;  %v3432_v10 = vld [vmem:[%s7449_s1 + $0x1f0] sm:$0xf0]  ;;  %v3286_v11 = vld [vmem:[%s7449_s1 + $0xc0] sm:$0xf] }
   0x4   :  { %442 = vmatpush.bf16.msra.mxu0 %v3303_v3  ;;  %v3435_v12 = vor.u32 %v4784_v9, %v3432_v10  ;;  %v4750_v13 = vld [vmem:[%s7449_s1 + $0xcc] sm:$0xf0]  ;;  %v3414_v14 = vld [vmem:[%s7449_s1 + $0x1c0] sm:$0xf]  ;;  %v4748_v18 = vld [vmem:[%s7449_s1 + $0xc4] sm:$0xf] }
   0x5   :  { %v4782_v15 = vld [vmem:[%s7449_s1 + $0x1cc] sm:$0xf0]  ;;  %455 = vmatpush.bf16.msra.mxu1 %v3431_v7  ;;  %468 = vmatpush.bf16.msra.mxu2 %v3307_v8  ;;  %v3287_v16 = vor.u32 %v4750_v13, %v3286_v11  ;;  %v3288_v19 = vld [vmem:[%s7449_s1 + $0xd0] sm:$0xf0]  ;;  %v4780_v20 = vld [vmem:[%s7449_s1 + $0x1c4] sm:$0xf] }
   0x6   :  { %v3415_v17 = vor.u32 %v4782_v15, %v3414_v14  ;;  %481 = vmatpush.bf16.msra.mxu3 %v3435_v12  ;;  %v3291_v21 = vor.u32 %v4748_v18, %v3288_v19  ;;  %v3416_v22 = vld [vmem:[%s7449_s1 + $0x1d0] sm:$0xf0]  ;;  %v3270_v23 = vld [vmem:[%s7449_s1 + $0xa0] sm:$0xf]  ;;  %v4746_v24 = vld [vmem:[%s7449_s1 + $0xac] sm:$0xf0] }
   0x7   :  { %v3419_v25 = vor.u32 %v4780_v20, %v3416_v22  ;;  %v3398_v26 = vld [vmem:[%s7449_s1 + $0x1a0] sm:$0xf]  ;;  %v4778_v27 = vld [vmem:[%s7449_s1 + $0x1ac] sm:$0xf0]  ;;  %v4744_v28 = vld [vmem:[%s7449_s1 + $0xa4] sm:$0xf]  ;;  %v3271_v29 = vor.u32 %v4746_v24, %v3270_v23 }
   0x8   :  { %443 = vmatpush.bf16.msra.mxu0 %v3287_v16  ;;  %v3272_v30 = vld [vmem:[%s7449_s1 + $0xb0] sm:$0xf0]  ;;  %v4776_v31 = vld [vmem:[%s7449_s1 + $0x1a4] sm:$0xf]  ;;  %v3399_v33 = vor.u32 %v4778_v27, %v3398_v26  ;;  %v3254_v35 = vld [vmem:[%s7449_s1 + $0x80] sm:$0xf] }
   0x9   :  { %v3400_v32 = vld [vmem:[%s7449_s1 + $0x1b0] sm:$0xf0]  ;;  %456 = vmatpush.bf16.msra.mxu1 %v3415_v17  ;;  %469 = vmatpush.bf16.msra.mxu2 %v3291_v21  ;;  %v3275_v34 = vor.u32 %v4744_v28, %v3272_v30  ;;  %v4742_v36 = vld [vmem:[%s7449_s1 + $0x8c] sm:$0xf0]  ;;  %v3382_v37 = vld [vmem:[%s7449_s1 + $0x180] sm:$0xf] }
   0xa   :  { %482 = vmatpush.bf16.msra.mxu3 %v3419_v25  ;;  %v3403_v38 = vor.u32 %v4776_v31, %v3400_v32  ;;  %v4774_v39 = vld [vmem:[%s7449_s1 + $0x18c] sm:$0xf0]  ;;  %v4740_v40 = vld [vmem:[%s7449_s1 + $0x84] sm:$0xf]  ;;  %v3256_v41 = vld [vmem:[%s7449_s1 + $0x90] sm:$0xf0]  ;;  %v3255_v44 = vor.u32 %v4742_v36, %v3254_v35 }
   0xb   :  { %v4772_v42 = vld [vmem:[%s7449_s1 + $0x184] sm:$0xf]  ;;  %v3384_v43 = vld [vmem:[%s7449_s1 + $0x190] sm:$0xf0]  ;;  %v3383_v45 = vor.u32 %v4774_v39, %v3382_v37  ;;  %v3259_v46 = vor.u32 %v4740_v40, %v3256_v41  ;;  %v3238_v47 = vld [vmem:[%s7449_s1 + $0x60] sm:$0xf] }
   0xc   :  { %444 = vmatpush.bf16.msra.mxu0 %v3271_v29  ;;  %v4738_v48 = vld [vmem:[%s7449_s1 + $0x6c] sm:$0xf0]  ;;  %v3366_v49 = vld [vmem:[%s7449_s1 + $0x160] sm:$0xf]  ;;  %v3387_v50 = vor.u32 %v4772_v42, %v3384_v43  ;;  %v4736_v52 = vld [vmem:[%s7449_s1 + $0x64] sm:$0xf] }
   0xd   :  { %457 = vmatpush.bf16.msra.mxu1 %v3399_v33  ;;  %470 = vmatpush.bf16.msra.mxu2 %v3275_v34  ;;  %v4770_v51 = vld [vmem:[%s7449_s1 + $0x16c] sm:$0xf0]  ;;  %v3240_v53 = vld [vmem:[%s7449_s1 + $0x70] sm:$0xf0]  ;;  %v4768_v54 = vld [vmem:[%s7449_s1 + $0x164] sm:$0xf]  ;;  %v3239_v56 = vor.u32 %v4738_v48, %v3238_v47 }
   0xe   :  { %483 = vmatpush.bf16.msra.mxu3 %v3403_v38  ;;  %v3368_v55 = vld [vmem:[%s7449_s1 + $0x170] sm:$0xf0]  ;;  %v3367_v57 = vor.u32 %v4770_v51, %v3366_v49  ;;  %v3243_v58 = vor.u32 %v4736_v52, %v3240_v53  ;;  %v3222_v59 = vld [vmem:[%s7449_s1 + $0x40] sm:$0xf]  ;;  %v4734_v60 = vld [vmem:[%s7449_s1 + $0x4c] sm:$0xf0] }
   0xf   :  { %v3350_v61 = vld [vmem:[%s7449_s1 + $0x140] sm:$0xf]  ;;  %v3371_v62 = vor.u32 %v4768_v54, %v3368_v55  ;;  %v4766_v63 = vld [vmem:[%s7449_s1 + $0x14c] sm:$0xf0]  ;;  %v4732_v0 = vld [vmem:[%s7449_s1 + $0x44] sm:$0xf]  ;;  %v3223_v4 = vor.u32 %v4734_v60, %v3222_v59 }
  0x10   :  { %445 = vmatpush.bf16.msra.mxu0 %v3255_v44  ;;  %v3224_v1 = vld [vmem:[%s7449_s1 + $0x50] sm:$0xf0]  ;;  %v4764_v2 = vld [vmem:[%s7449_s1 + $0x144] sm:$0xf]  ;;  %v3351_v5 = vor.u32 %v4766_v63, %v3350_v61  ;;  %v3206_v7 = vld [vmem:[%s7449_s1 + $0x20] sm:$0xf] }
  0x11   :  { %458 = vmatpush.bf16.msra.mxu1 %v3383_v45  ;;  %471 = vmatpush.bf16.msra.mxu2 %v3259_v46  ;;  %v3352_v3 = vld [vmem:[%s7449_s1 + $0x150] sm:$0xf0]  ;;  %v3227_v6 = vor.u32 %v4732_v0, %v3224_v1  ;;  %v4730_v8 = vld [vmem:[%s7449_s1 + $0x2c] sm:$0xf0]  ;;  %v3334_v9 = vld [vmem:[%s7449_s1 + $0x120] sm:$0xf] }
  0x12   :  { %484 = vmatpush.bf16.msra.mxu3 %v3387_v50  ;;  %v3355_v10 = vor.u32 %v4764_v2, %v3352_v3  ;;  %v4762_v11 = vld [vmem:[%s7449_s1 + $0x12c] sm:$0xf0]  ;;  %v4728_v12 = vld [vmem:[%s7449_s1 + $0x24] sm:$0xf]  ;;  %v3208_v13 = vld [vmem:[%s7449_s1 + $0x30] sm:$0xf0]  ;;  %v3207_v17 = vor.u32 %v4730_v8, %v3206_v7 }
  0x13   :  { %v4760_v14 = vld [vmem:[%s7449_s1 + $0x124] sm:$0xf]  ;;  %v3336_v15 = vld [vmem:[%s7449_s1 + $0x130] sm:$0xf0]  ;;  %v3190_v16 = vld [vmem:[%s7449_s1] sm:$0xf]  ;;  %v3335_v21 = vor.u32 %v4762_v11, %v3334_v9  ;;  %v3211_v22 = vor.u32 %v4728_v12, %v3208_v13 }
  0x14   :  { %446 = vmatpush.bf16.msra.mxu0 %v3239_v56  ;;  %v4726_v18 = vld [vmem:[%s7449_s1 + $0xc] sm:$0xf0]  ;;  %v3318_v19 = vld [vmem:[%s7449_s1 + $0x100] sm:$0xf]  ;;  %v4724_v23 = vld [vmem:[%s7449_s1 + $0x4] sm:$0xf]  ;;  %v3339_v26 = vor.u32 %v4760_v14, %v3336_v15 }
  0x15   :  { %459 = vmatpush.bf16.msra.mxu1 %v3367_v57  ;;  %472 = vmatpush.bf16.msra.mxu2 %v3243_v58  ;;  %v4758_v20 = vld [vmem:[%s7449_s1 + $0x10c] sm:$0xf0]  ;;  %v3192_v24 = vld [vmem:[%s7449_s1 + $0x10] sm:$0xf0]  ;;  %v41_v25 = vld [vmem:[%s7448_s0] sm:$0x3]  ;;  %v3191_v32 = vor.u32 %v4726_v18, %v3190_v16 }
  0x16   :  { %485 = vmatpush.bf16.msra.mxu3 %v3371_v62  ;;  %v4756_v27 = vld [vmem:[%s7449_s1 + $0x104] sm:$0xf]  ;;  %v3320_v28 = vld [vmem:[%s7449_s1 + $0x110] sm:$0xf0]  ;;  %117 = vst [vmem:[#allocation1] ss:$9 sm:$0xff] %v41_v25  ;;  %v3319_v36 = vor.u32 %v4758_v20, %v3318_v19  ;;  %v3195_v37 = vor.u32 %v4724_v23, %v3192_v24 }
  0x17   :  { %v3310_v29 = vld [vmem:[%s7449_s1 + $0xe8] sm:$0xf]  ;;  %v4755_v30 = vld [vmem:[%s7449_s1 + $0xf4] sm:$0xf0]  ;;  %v4753_v34 = vld [vmem:[%s7449_s1 + $0xec] sm:$0xf]  ;;  %v3323_v40 = vor.u32 %v4756_v27, %v3320_v28 }
  0x18   :  { %447 = vmatpush.bf16.msra.mxu0 %v3223_v4  ;;  %v3438_v31 = vld [vmem:[%s7449_s1 + $0x1e8] sm:$0xf]  ;;  %v4787_v33 = vld [vmem:[%s7449_s1 + $0x1f4] sm:$0xf0]  ;;  %v3312_v35 = vld [vmem:[%s7449_s1 + $0xf8] sm:$0xf0]  ;;  %v3311_v41 = vor.u32 %v4755_v30, %v3310_v29 }
  0x19   :  { %460 = vmatpush.bf16.msra.mxu1 %v3351_v5  ;;  %473 = vmatpush.bf16.msra.mxu2 %v3227_v6  ;;  %v4785_v38 = vld [vmem:[%s7449_s1 + $0x1ec] sm:$0xf]  ;;  %v3440_v39 = vld [vmem:[%s7449_s1 + $0x1f8] sm:$0xf0]  ;;  %v3439_v42 = vor.u32 %v4787_v33, %v3438_v31  ;;  %v3315_v43 = vor.u32 %v4753_v34, %v3312_v35  ;;  %v3294_v44 = vld [vmem:[%s7449_s1 + $0xc8] sm:$0xf] }
  0x1a   :  { %486 = vmatpush.bf16.msra.mxu3 %v3355_v10  ;;  %v4751_v45 = vld [vmem:[%s7449_s1 + $0xd4] sm:$0xf0]  ;;  %v3422_v46 = vld [vmem:[%s7449_s1 + $0x1c8] sm:$0xf]  ;;  %v3443_v47 = vor.u32 %v4785_v38, %v3440_v39  ;;  %v4749_v49 = vld [vmem:[%s7449_s1 + $0xcc] sm:$0xf] }
  0x1b   :  { %v4783_v48 = vld [vmem:[%s7449_s1 + $0x1d4] sm:$0xf0]  ;;  %v3296_v50 = vld [vmem:[%s7449_s1 + $0xd8] sm:$0xf0]  ;;  %v4781_v52 = vld [vmem:[%s7449_s1 + $0x1cc] sm:$0xf]  ;;  %v3295_v55 = vor.u32 %v4751_v45, %v3294_v44 }
  0x1c   :  { %448 = vmatpush.bf16.msra.mxu0 %v3207_v17  ;;  %v3424_v53 = vld [vmem:[%s7449_s1 + $0x1d8] sm:$0xf0]  ;;  %v3423_v56 = vor.u32 %v4783_v48, %v3422_v46  ;;  %v3299_v57 = vor.u32 %v4749_v49, %v3296_v50  ;;  %v3278_v58 = vld [vmem:[%s7449_s1 + $0xa8] sm:$0xf]  ;;  %v4747_v59 = vld [vmem:[%s7449_s1 + $0xb4] sm:$0xf0] }
  0x1d   :  { %461 = vmatpush.bf16.msra.mxu1 %v3335_v21  ;;  %474 = vmatpush.bf16.msra.mxu2 %v3211_v22  ;;  %v5440_v51 = vld [vmem:[#allocation1] sm:$0xff]  ;;  %v5448_v54 = vld [vmem:[#allocation1 + $0x9] sm:$0xff]  ;;  %v3427_v61 = vor.u32 %v4781_v52, %v3424_v53  ;;  %v4779_v62 = vld [vmem:[%s7449_s1 + $0x1b4] sm:$0xf0]  ;;  %v3279_v3 = vor.u32 %v4747_v59, %v3278_v58 }
  0x1e   :  { %487 = vmatpush.bf16.msra.mxu3 %v3339_v26  ;;  %v3406_v60 = vld [vmem:[%s7449_s1 + $0x1a8] sm:$0xf]  ;;  %v4745_v63 = vld [vmem:[%s7449_s1 + $0xac] sm:$0xf]  ;;  %v3280_v0 = vld [vmem:[%s7449_s1 + $0xb8] sm:$0xf0] }
  0x1f   :  { %v4777_v1 = vld [vmem:[%s7449_s1 + $0x1ac] sm:$0xf]  ;;  %v3408_v2 = vld [vmem:[%s7449_s1 + $0x1b8] sm:$0xf0]  ;;  %v3407_v4 = vor.u32 %v4779_v62, %v3406_v60  ;;  %v3283_v5 = vor.u32 %v4745_v63, %v3280_v0  ;;  %v3262_v6 = vld [vmem:[%s7449_s1 + $0x88] sm:$0xf] }
  0x20   :  { %449 = vmatpush.bf16.msra.mxu0 %v3191_v32  ;;  %v4743_v7 = vld [vmem:[%s7449_s1 + $0x94] sm:$0xf0]  ;;  %v3390_v8 = vld [vmem:[%s7449_s1 + $0x188] sm:$0xf]  ;;  %v3411_v9 = vor.u32 %v4777_v1, %v3408_v2  ;;  %v4741_v11 = vld [vmem:[%s7449_s1 + $0x8c] sm:$0xf] }
  0x21   :  { %462 = vmatpush.bf16.msra.mxu1 %v3319_v36  ;;  %475 = vmatpush.bf16.msra.mxu2 %v3195_v37  ;;  %v4775_v10 = vld [vmem:[%s7449_s1 + $0x194] sm:$0xf0]  ;;  %v3264_v12 = vld [vmem:[%s7449_s1 + $0x98] sm:$0xf0]  ;;  %v4773_v13 = vld [vmem:[%s7449_s1 + $0x18c] sm:$0xf]  ;;  %v3263_v15 = vor.u32 %v4743_v7, %v3262_v6 }
  0x22   :  { %488 = vmatpush.bf16.msra.mxu3 %v3323_v40  ;;  %v3392_v14 = vld [vmem:[%s7449_s1 + $0x198] sm:$0xf0]  ;;  %v3391_v16 = vor.u32 %v4775_v10, %v3390_v8  ;;  %v3267_v17 = vor.u32 %v4741_v11, %v3264_v12  ;;  %v3246_v18 = vld [vmem:[%s7449_s1 + $0x68] sm:$0xf]  ;;  %v4739_v19 = vld [vmem:[%s7449_s1 + $0x74] sm:$0xf0] }
  0x23   :  { %450 = vmatmul.bf16.vlgmr.msra.gmra.mxu0 %v5440_v51  ;;  %v3374_v20 = vld [vmem:[%s7449_s1 + $0x168] sm:$0xf]  ;;  %v3395_v21 = vor.u32 %v4773_v13, %v3392_v14  ;;  %v4771_v22 = vld [vmem:[%s7449_s1 + $0x174] sm:$0xf0]  ;;  %v4737_v23 = vld [vmem:[%s7449_s1 + $0x6c] sm:$0xf]  ;;  %v3247_v27 = vor.u32 %v4739_v19, %v3246_v18 }
  0x24   :  { %494 = vmatpush.bf16.msrb.mxu0 %v3311_v41  ;;  %476 = vmatmul.bf16.vlgmr.msra.gmra.mxu2 %v5440_v51  ;;  %v3248_v24 = vld [vmem:[%s7449_s1 + $0x78] sm:$0xf0]  ;;  %v4769_v25 = vld [vmem:[%s7449_s1 + $0x16c] sm:$0xf]  ;;  %v3375_v28 = vor.u32 %v4771_v22, %v3374_v20  ;;  %v3230_v30 = vld [vmem:[%s7449_s1 + $0x48] sm:$0xf] }
  0x25   :  { %507 = vmatpush.bf16.msrb.mxu1 %v3439_v42  ;;  %520 = vmatpush.bf16.msrb.mxu2 %v3315_v43  ;;  %v3376_v26 = vld [vmem:[%s7449_s1 + $0x178] sm:$0xf0]  ;;  %v3251_v29 = vor.u32 %v4737_v23, %v3248_v24  ;;  %v4735_v31 = vld [vmem:[%s7449_s1 + $0x54] sm:$0xf0]  ;;  %v3358_v32 = vld [vmem:[%s7449_s1 + $0x148] sm:$0xf] }
  0x26   :  { %533 = vmatpush.bf16.msrb.mxu3 %v3443_v47  ;;  %463 = vmatmul.bf16.vlgmr.msra.gmra.mxu1 %v5448_v54  ;;  %v3379_v33 = vor.u32 %v4769_v25, %v3376_v26  ;;  %v4767_v34 = vld [vmem:[%s7449_s1 + $0x154] sm:$0xf0]  ;;  %v4733_v35 = vld [vmem:[%s7449_s1 + $0x4c] sm:$0xf]  ;;  %v3232_v36 = vld [vmem:[%s7449_s1 + $0x58] sm:$0xf0]  ;;  %v3231_v39 = vor.u32 %v4735_v31, %v3230_v30 }
  0x27   :  { %489 = vmatmul.bf16.vlgmr.msra.gmra.mxu3 %v5448_v54  ;;  %v4765_v37 = vld [vmem:[%s7449_s1 + $0x14c] sm:$0xf]  ;;  %v3360_v38 = vld [vmem:[%s7449_s1 + $0x158] sm:$0xf0]  ;;  %v3214_v40 = vld [vmem:[%s7449_s1 + $0x28] sm:$0xf]  ;;  %v3359_v42 = vor.u32 %v4767_v34, %v3358_v32  ;;  %v3235_v43 = vor.u32 %v4733_v35, %v3232_v36 }
  0x28   :  { %495 = vmatpush.bf16.msrb.mxu0 %v3295_v55  ;;  %v4731_v41 = vld [vmem:[%s7449_s1 + $0x34] sm:$0xf0]  ;;  %v3342_v44 = vld [vmem:[%s7449_s1 + $0x128] sm:$0xf]  ;;  %v3363_v46 = vor.u32 %v4765_v37, %v3360_v38  ;;  %v4729_v47 = vld [vmem:[%s7449_s1 + $0x2c] sm:$0xf] }
  0x29   :  { %508 = vmatpush.bf16.msrb.mxu1 %v3423_v56  ;;  %521 = vmatpush.bf16.msrb.mxu2 %v3299_v57  ;;  %v4763_v45 = vld [vmem:[%s7449_s1 + $0x134] sm:$0xf0]  ;;  %v3216_v48 = vld [vmem:[%s7449_s1 + $0x38] sm:$0xf0]  ;;  %v4761_v49 = vld [vmem:[%s7449_s1 + $0x12c] sm:$0xf] }
  0x2a   :  { %534 = vmatpush.bf16.msrb.mxu3 %v3427_v61  ;;  %v3344_v50 = vld [vmem:[%s7449_s1 + $0x138] sm:$0xf0] }
  0x2c   :  { %496 = vmatpush.bf16.msrb.mxu0 %v3279_v3 }
  0x2d   :  { %509 = vmatpush.bf16.msrb.mxu1 %v3407_v4  ;;  %522 = vmatpush.bf16.msrb.mxu2 %v3283_v5 }
  0x2e   :  { %535 = vmatpush.bf16.msrb.mxu3 %v3411_v9 }
  0x30   :  { %497 = vmatpush.bf16.msrb.mxu0 %v3263_v15 }
  0x31   :  { %510 = vmatpush.bf16.msrb.mxu1 %v3391_v16  ;;  %523 = vmatpush.bf16.msrb.mxu2 %v3267_v17 }
  0x32   :  { %536 = vmatpush.bf16.msrb.mxu3 %v3395_v21 }
  0x34   :  { %498 = vmatpush.bf16.msrb.mxu0 %v3247_v27 }
  0x35   :  { %511 = vmatpush.bf16.msrb.mxu1 %v3375_v28  ;;  %524 = vmatpush.bf16.msrb.mxu2 %v3251_v29 }
  0x36   :  { %537 = vmatpush.bf16.msrb.mxu3 %v3379_v33 }
  0x37   :  { %18 = vsyncpa [#allocation3], 0  ;;  %v3215_v52 = vor.u32 %v4731_v41, %v3214_v40  ;;  %v3198_v53 = vld [vmem:[%s7449_s1 + $0x8] sm:$0xf]  ;;  %v3343_v55 = vor.u32 %v4763_v45, %v3342_v44  ;;  %v3219_v56 = vor.u32 %v4729_v47, %v3216_v48  ;;  %v4727_v57 = vld [vmem:[%s7449_s1 + $0x14] sm:$0xf0]  ;;  %v3347_v60 = vor.u32 %v4761_v49, %v3344_v50 }
  0x38   :  { %499 = vmatpush.bf16.msrb.mxu0 %v3231_v39  ;;  %v3326_v58 = vld [vmem:[%s7449_s1 + $0x108] sm:$0xf]  ;;  %v4759_v59 = vld [vmem:[%s7449_s1 + $0x114] sm:$0xf0]  ;;  %v4725_v61 = vld [vmem:[%s7449_s1 + $0xc] sm:$0xf]  ;;  %v3199_v3 = vor.u32 %v4727_v57, %v3198_v53 }
  0x39   :  { %512 = vmatpush.bf16.msrb.mxu1 %v3359_v42  ;;  %525 = vmatpush.bf16.msrb.mxu2 %v3235_v43  ;;  %v3200_v62 = vld [vmem:[%s7449_s1 + $0x18] sm:$0xf0]  ;;  %v4757_v63 = vld [vmem:[%s7449_s1 + $0x10c] sm:$0xf]  ;;  %v3558_v1 = vld [vmem:[%s7451_s3 + $0xe0] sm:$0xf]  ;;  %v3327_v6 = vor.u32 %v4759_v59, %v3326_v58 }
  0x3a   :  { %538 = vmatpush.bf16.msrb.mxu3 %v3363_v46  ;;  %v3328_v0 = vld [vmem:[%s7449_s1 + $0x118] sm:$0xf0]  ;;  %v4818_v2 = vld [vmem:[%s7451_s3 + $0xec] sm:$0xf0]  ;;  %v3686_v4 = vld [vmem:[%s7451_s3 + $0x1e0] sm:$0xf]  ;;  %v3203_v7 = vor.u32 %v4725_v61, %v3200_v62 }
  0x3b   :  { %v4850_v5 = vld [vmem:[%s7451_s3 + $0x1ec] sm:$0xf0]  ;;  %v3331_v8 = vor.u32 %v4757_v63, %v3328_v0  ;;  %v3559_v9 = vor.u32 %v4818_v2, %v3558_v1  ;;  %v3814_v10 = vld [vmem:[%s7451_s3 + $0x2e0] sm:$0xf]  ;;  %s3175_s26 = sshll.u32 %s7459_s11, 4  ;;  %s3176_s26 = int_to_ptr.hbm [resolvable:$true] %s3175_s26 }
  0x3c   :  { %500 = vmatpush.bf16.msrb.mxu0 %v3215_v52  ;;  %v4882_v11 = vld [vmem:[%s7451_s3 + $0x2ec] sm:$0xf0]  ;;  %v3542_v12 = vld [vmem:[%s7451_s3 + $0xc0] sm:$0xf]  ;;  %v3687_v14 = vor.u32 %v4850_v5, %v3686_v4 }
  0x3d   :  { %513 = vmatpush.bf16.msrb.mxu1 %v3343_v55  ;;  %526 = vmatpush.bf16.msrb.mxu2 %v3219_v56  ;;  %v4814_v13 = vld [vmem:[%s7451_s3 + $0xcc] sm:$0xf0]  ;;  %v3670_v15 = vld [vmem:[%s7451_s3 + $0x1c0] sm:$0xf]  ;;  %v3815_v17 = vor.u32 %v4882_v11, %v3814_v10  ;;  %v4816_v11 = vld [vmem:[%s7451_s3 + $0xe4] sm:$0xf] }
  0x3e   :  { %539 = vmatpush.bf16.msrb.mxu3 %v3347_v60  ;;  %v4846_v16 = vld [vmem:[%s7451_s3 + $0x1cc] sm:$0xf0]  ;;  %v3543_v18 = vor.u32 %v4814_v13, %v3542_v12  ;;  %v3798_v19 = vld [vmem:[%s7451_s3 + $0x2c0] sm:$0xf]  ;;  %v3560_v13 = vld [vmem:[%s7451_s3 + $0xf0] sm:$0xf0] }
  0x3f   :  { %v4878_v20 = vld [vmem:[%s7451_s3 + $0x2cc] sm:$0xf0]  ;;  %v3526_v21 = vld [vmem:[%s7451_s3 + $0xa0] sm:$0xf]  ;;  %v3671_v23 = vor.u32 %v4846_v16, %v3670_v15  ;;  %v4848_v16 = vld [vmem:[%s7451_s3 + $0x1e4] sm:$0xf] }
  0x40   :  { %501 = vmatpush.bf16.msrb.mxu0 %v3199_v3  ;;  %v4810_v22 = vld [vmem:[%s7451_s3 + $0xac] sm:$0xf0]  ;;  %v3942_v24 = vld [vmem:[%s7451_s3 + $0x3e0] sm:$0xf]  ;;  %v3799_v28 = vor.u32 %v4878_v20, %v3798_v19  ;;  %v3563_v19 = vor.u32 %v4816_v11, %v3560_v13 }
  0x41   :  { %514 = vmatpush.bf16.msrb.mxu1 %v3327_v6  ;;  %527 = vmatpush.bf16.msrb.mxu2 %v3203_v7  ;;  %v3654_v25 = vld [vmem:[%s7451_s3 + $0x1a0] sm:$0xf]  ;;  %v4842_v26 = vld [vmem:[%s7451_s3 + $0x1ac] sm:$0xf0]  ;;  %v3527_v30 = vor.u32 %v4810_v22, %v3526_v21  ;;  %v4812_v21 = vld [vmem:[%s7451_s3 + $0xc4] sm:$0xf] }
  0x42   :  { %540 = vmatpush.bf16.msrb.mxu3 %v3331_v8  ;;  %v4914_v27 = vld [vmem:[%s7451_s3 + $0x3ec] sm:$0xf0]  ;;  %v3782_v31 = vld [vmem:[%s7451_s3 + $0x2a0] sm:$0xf]  ;;  %v3655_v33 = vor.u32 %v4842_v26, %v3654_v25  ;;  %v3544_v22 = vld [vmem:[%s7451_s3 + $0xd0] sm:$0xf0] }
  0x43   :  { %502 = vmatmul.bf16.vlgmr.msrb.gmra.mxu0 %v5440_v51  ;;  %v3943_v29 = vor.u32 %v4914_v27, %v3942_v24  ;;  %v4874_v32 = vld [vmem:[%s7451_s3 + $0x2ac] sm:$0xf0]  ;;  %v3926_v34 = vld [vmem:[%s7451_s3 + $0x3c0] sm:$0xf]  ;;  %v4844_v24 = vld [vmem:[%s7451_s3 + $0x1c4] sm:$0xf]  ;;  %v3547_v26 = vor.u32 %v4812_v21, %v3544_v22 }
  0x44   :  { %1332 = vmatpush.bf16.msra.mxu0 %v3559_v9  ;;  %515 = vmatmul.bf16.vlgmr.msrb.gmra.mxu1 %v5448_v54  ;;  %v4910_v35 = vld [vmem:[%s7451_s3 + $0x3cc] sm:$0xf0]  ;;  %v3638_v36 = vld [vmem:[%s7451_s3 + $0x180] sm:$0xf]  ;;  %v3783_v39 = vor.u32 %v4874_v32, %v3782_v31  ;;  %v3672_v25 = vld [vmem:[%s7451_s3 + $0x1d0] sm:$0xf0] }
  0x45   :  { %1345 = vmatpush.bf16.msra.mxu1 %v3687_v14  ;;  %528 = vmatmul.bf16.vlgmr.msrb.gmra.mxu2 %v5440_v51  ;;  %v3510_v51 = vld [vmem:[%s7451_s3 + $0x80] sm:$0xf]  ;;  %v4838_v37 = vld [vmem:[%s7451_s3 + $0x18c] sm:$0xf0]  ;;  %v3927_v38 = vor.u32 %v4910_v35, %v3926_v34  ;;  %v4808_v27 = vld [vmem:[%s7451_s3 + $0xa4] sm:$0xf] }
  0x46   :  { %541 = vmatmul.bf16.vlgmr.msrb.gmra.mxu3 %v5448_v54  ;;  %1358 = vmatpush.bf16.msra.mxu2 %v3815_v17  ;;  %v4806_v54 = vld [vmem:[%s7451_s3 + $0x8c] sm:$0xf0]  ;;  %v3494_v41 = vld [vmem:[%s7451_s3 + $0x60] sm:$0xf]  ;;  %v3639_v45 = vor.u32 %v4838_v37, %v3638_v36  ;;  %v3688_v17 = vld [vmem:[%s7451_s3 + $0x1f0] sm:$0xf0] }
  0x47   :  { %1371 = vmatpush.bf16.msra.mxu3 %v3943_v29  ;;  %v3511_v40 = vor.u32 %v4806_v54, %v3510_v51  ;;  %v3766_v42 = vld [vmem:[%s7451_s3 + $0x280] sm:$0xf]  ;;  %v4870_v43 = vld [vmem:[%s7451_s3 + $0x28c] sm:$0xf0]  ;;  %v3675_v29 = vor.u32 %v4844_v24, %v3672_v25  ;;  %v3656_v51 = vld [vmem:[%s7451_s3 + $0x1b0] sm:$0xf0] }
  0x48   :  { %1333 = vmatpush.bf16.msra.mxu0 %v3543_v18  ;;  %v4802_v44 = vld [vmem:[%s7451_s3 + $0x6c] sm:$0xf0]  ;;  %v3910_v46 = vld [vmem:[%s7451_s3 + $0x3a0] sm:$0xf]  ;;  %v3767_v52 = vor.u32 %v4870_v43, %v3766_v42  ;;  %v4804_v32 = vld [vmem:[%s7451_s3 + $0x84] sm:$0xf] }
  0x49   :  { %1346 = vmatpush.bf16.msra.mxu1 %v3671_v23  ;;  %v4906_v47 = vld [vmem:[%s7451_s3 + $0x3ac] sm:$0xf0]  ;;  %v3622_v48 = vld [vmem:[%s7451_s3 + $0x160] sm:$0xf]  ;;  %v3495_v53 = vor.u32 %v4802_v44, %v3494_v41  ;;  %v3691_v23 = vor.u32 %v4848_v16, %v3688_v17  ;;  %v3512_v54 = vld [vmem:[%s7451_s3 + $0x90] sm:$0xf0] }
  0x4a   :  { %1359 = vmatpush.bf16.msra.mxu2 %v3799_v28  ;;  %v4834_v49 = vld [vmem:[%s7451_s3 + $0x16c] sm:$0xf0]  ;;  %v3911_v50 = vor.u32 %v4906_v47, %v3910_v46  ;;  %v3478_v55 = vld [vmem:[%s7451_s3 + $0x40] sm:$0xf]  ;;  %v3528_v28 = vld [vmem:[%s7451_s3 + $0xb0] sm:$0xf0]  ;;  %v3515_v36 = vor.u32 %v4804_v32, %v3512_v54 }
  0x4b   :  { %1372 = vmatpush.bf16.msra.mxu3 %v3927_v38  ;;  %v3750_v56 = vld [vmem:[%s7451_s3 + $0x260] sm:$0xf]  ;;  %v4866_v57 = vld [vmem:[%s7451_s3 + $0x26c] sm:$0xf0]  ;;  %v3623_v59 = vor.u32 %v4834_v49, %v3622_v48  ;;  %v3531_v31 = vor.u32 %v4808_v27, %v3528_v28  ;;  %v4836_v34 = vld [vmem:[%s7451_s3 + $0x184] sm:$0xf] }
  0x4c   :  { %1334 = vmatpush.bf16.msra.mxu0 %v3527_v30  ;;  %v4798_v58 = vld [vmem:[%s7451_s3 + $0x4c] sm:$0xf0]  ;;  %v3894_v60 = vld [vmem:[%s7451_s3 + $0x380] sm:$0xf]  ;;  %v3751_v1 = vor.u32 %v4866_v57, %v3750_v56  ;;  %v4840_v30 = vld [vmem:[%s7451_s3 + $0x1a4] sm:$0xf] }
  0x4d   :  { %1347 = vmatpush.bf16.msra.mxu1 %v3655_v33  ;;  %v4902_v61 = vld [vmem:[%s7451_s3 + $0x38c] sm:$0xf0]  ;;  %v3606_v62 = vld [vmem:[%s7451_s3 + $0x140] sm:$0xf]  ;;  %v3479_v2 = vor.u32 %v4798_v58, %v3478_v55  ;;  %v3659_v33 = vor.u32 %v4840_v30, %v3656_v51  ;;  %v3640_v35 = vld [vmem:[%s7451_s3 + $0x190] sm:$0xf0] }
  0x4e   :  { %1360 = vmatpush.bf16.msra.mxu2 %v3783_v39  ;;  %v4830_v63 = vld [vmem:[%s7451_s3 + $0x14c] sm:$0xf0]  ;;  %v3895_v0 = vor.u32 %v4902_v61, %v3894_v60  ;;  %v3462_v3 = vld [vmem:[%s7451_s3 + $0x20] sm:$0xf]  ;;  %v4800_v37 = vld [vmem:[%s7451_s3 + $0x64] sm:$0xf]  ;;  %v3643_v39 = vor.u32 %v4836_v34, %v3640_v35 }
  0x4f   :  { %1373 = vmatpush.bf16.msra.mxu3 %v3911_v50  ;;  %v4794_v4 = vld [vmem:[%s7451_s3 + $0x2c] sm:$0xf0]  ;;  %v3607_v5 = vor.u32 %v4830_v63, %v3606_v62  ;;  %v3590_v6 = vld [vmem:[%s7451_s3 + $0x120] sm:$0xf]  ;;  %v3496_v38 = vld [vmem:[%s7451_s3 + $0x70] sm:$0xf0] }
  0x50   :  { %1335 = vmatpush.bf16.msra.mxu0 %v3511_v40  ;;  %v4826_v7 = vld [vmem:[%s7451_s3 + $0x12c] sm:$0xf0]  ;;  %v3463_v8 = vor.u32 %v4794_v4, %v3462_v3  ;;  %v3446_v9 = vld [vmem:[%s7451_s3] sm:$0xf]  ;;  %v3499_v40 = vor.u32 %v4800_v37, %v3496_v38  ;;  %v4796_v43 = vld [vmem:[%s7451_s3 + $0x44] sm:$0xf] }
  0x51   :  { %1348 = vmatpush.bf16.msra.mxu1 %v3639_v45  ;;  %v4790_v10 = vld [vmem:[%s7451_s3 + $0xc] sm:$0xf0]  ;;  %v3591_v12 = vor.u32 %v4826_v7, %v3590_v6  ;;  %v3574_v14 = vld [vmem:[%s7451_s3 + $0x100] sm:$0xf]  ;;  %v3480_v45 = vld [vmem:[%s7451_s3 + $0x50] sm:$0xf0] }
  0x52   :  { %1361 = vmatpush.bf16.msra.mxu2 %v3767_v52  ;;  %v4822_v15 = vld [vmem:[%s7451_s3 + $0x10c] sm:$0xf0]  ;;  %v3447_v18 = vor.u32 %v4790_v10, %v3446_v9  ;;  %v3734_v41 = vld [vmem:[%s7451_s3 + $0x240] sm:$0xf]  ;;  %v3483_v46 = vor.u32 %v4796_v43, %v3480_v45  ;;  %v4832_v49 = vld [vmem:[%s7451_s3 + $0x164] sm:$0xf] }
  0x53   :  { %1374 = vmatpush.bf16.msra.mxu3 %v3895_v0  ;;  %v3575_v20 = vor.u32 %v4822_v15, %v3574_v14  ;;  %v4862_v42 = vld [vmem:[%s7451_s3 + $0x24c] sm:$0xf0]  ;;  %v3878_v47 = vld [vmem:[%s7451_s3 + $0x360] sm:$0xf]  ;;  %v3624_v52 = vld [vmem:[%s7451_s3 + $0x170] sm:$0xf0] }
  0x54   :  { %1336 = vmatpush.bf16.msra.mxu0 %v3495_v53  ;;  %v3735_v44 = vor.u32 %v4862_v42, %v3734_v41  ;;  %v4898_v48 = vld [vmem:[%s7451_s3 + $0x36c] sm:$0xf0]  ;;  %v3627_v53 = vor.u32 %v4832_v49, %v3624_v52  ;;  %v3718_v55 = vld [vmem:[%s7451_s3 + $0x220] sm:$0xf]  ;;  %v4792_v57 = vld [vmem:[%s7451_s3 + $0x24] sm:$0xf] }
  0x55   :  { %1349 = vmatpush.bf16.msra.mxu1 %v3623_v59  ;;  %v3879_v50 = vor.u32 %v4898_v48, %v3878_v47  ;;  %v4858_v56 = vld [vmem:[%s7451_s3 + $0x22c] sm:$0xf0]  ;;  %v3464_v59 = vld [vmem:[%s7451_s3 + $0x30] sm:$0xf0]  ;;  %v3862_v61 = vld [vmem:[%s7451_s3 + $0x340] sm:$0xf] }
  0x56   :  { %1362 = vmatpush.bf16.msra.mxu2 %v3751_v1  ;;  %v3719_v58 = vor.u32 %v4858_v56, %v3718_v55  ;;  %v3467_v60 = vor.u32 %v4792_v57, %v3464_v59  ;;  %v4894_v62 = vld [vmem:[%s7451_s3 + $0x34c] sm:$0xf0]  ;;  %v4828_v63 = vld [vmem:[%s7451_s3 + $0x144] sm:$0xf]  ;;  %v3608_v1 = vld [vmem:[%s7451_s3 + $0x150] sm:$0xf0] }
  0x57   :  { %1375 = vmatpush.bf16.msra.mxu3 %v3879_v50  ;;  %v3863_v0 = vor.u32 %v4894_v62, %v3862_v61  ;;  %v3702_v3 = vld [vmem:[%s7451_s3 + $0x200] sm:$0xf]  ;;  %v4854_v4 = vld [vmem:[%s7451_s3 + $0x20c] sm:$0xf0]  ;;  %v4788_v6 = vld [vmem:[%s7451_s3 + $0x4] sm:$0xf] }
  0x58   :  { %1337 = vmatpush.bf16.msra.mxu0 %v3479_v2  ;;  %v3611_v2 = vor.u32 %v4828_v63, %v3608_v1  ;;  %v3448_v7 = vld [vmem:[%s7451_s3 + $0x10] sm:$0xf0]  ;;  %v4890_v13 = vld [vmem:[%s7451_s3 + $0x32c] sm:$0xf0]  ;;  %v4824_v14 = vld [vmem:[%s7451_s3 + $0x124] sm:$0xf] }
  0x59   :  { %1350 = vmatpush.bf16.msra.mxu1 %v3607_v5  ;;  %v3703_v5 = vor.u32 %v4854_v4, %v3702_v3  ;;  %v3451_v9 = vor.u32 %v4788_v6, %v3448_v7  ;;  %v3816_v10 = vld [vmem:[%s7451_s3 + $0x2f0] sm:$0xf0]  ;;  %v3830_v21 = vld [vmem:[%s7451_s3 + $0x300] sm:$0xf]  ;;  %v4886_v22 = vld [vmem:[%s7451_s3 + $0x30c] sm:$0xf0] }
  0x5a   :  { %1363 = vmatpush.bf16.msra.mxu2 %v3735_v44  ;;  %v3592_v16 = vld [vmem:[%s7451_s3 + $0x130] sm:$0xf0]  ;;  %v4820_v24 = vld [vmem:[%s7451_s3 + $0x104] sm:$0xf]  ;;  %v5941_v43 = vld [vmem:[%s7450_s2] sm:$0xf] }
  0x5b   :  { %1376 = vmatpush.bf16.msra.mxu3 %v3863_v0  ;;  %v3595_v17 = vor.u32 %v4824_v14, %v3592_v16  ;;  %v3576_v25 = vld [vmem:[%s7451_s3 + $0x110] sm:$0xf0]  ;;  %v4872_v30 = vld [vmem:[%s7451_s3 + $0x2a4] sm:$0xf]  ;;  %v108_v49 = vperm.slane %v5941_v43, 0  ;;  %v109_v4 = vperm.slane %v5941_v43, 1 }
  0x5c   :  { %1338 = vmatpush.bf16.msra.mxu0 %v3463_v8  ;;  %v4880_v8 = vld [vmem:[%s7451_s3 + $0x2e4] sm:$0xf]  ;;  %v3579_v27 = vor.u32 %v4820_v24, %v3576_v25  ;;  %v3944_v28 = vld [vmem:[%s7451_s3 + $0x3f0] sm:$0xf0]  ;;  %v3566_v1 = vld [vmem:[%s7451_s3 + $0xe8] sm:$0xf] }
  0x5d   :  { %1351 = vmatpush.bf16.msra.mxu1 %v3591_v12  ;;  %v3819_v11 = vor.u32 %v4880_v8, %v3816_v10  ;;  %v3846_v12 = vld [vmem:[%s7451_s3 + $0x320] sm:$0xf]  ;;  %v3784_v51 = vld [vmem:[%s7451_s3 + $0x2b0] sm:$0xf0]  ;;  %v4908_v32 = vld [vmem:[%s7451_s3 + $0x3c4] sm:$0xf] }
  0x5e   :  { %1364 = vmatpush.bf16.msra.mxu2 %v3719_v58  ;;  %v3847_v15 = vor.u32 %v4890_v13, %v3846_v12  ;;  %v3928_v54 = vld [vmem:[%s7451_s3 + $0x3d0] sm:$0xf0]  ;;  %v4868_v34 = vld [vmem:[%s7451_s3 + $0x284] sm:$0xf]  ;;  %v3550_v10 = vld [vmem:[%s7451_s3 + $0xc8] sm:$0xf] }
  0x5f   :  { %v3768_v35 = vld [vmem:[%s7451_s3 + $0x290] sm:$0xf0]  ;;  %v4904_v37 = vld [vmem:[%s7451_s3 + $0x3a4] sm:$0xf]  ;;  %v4815_v13 = vld [vmem:[%s7451_s3 + $0xd4] sm:$0xf0] }
  0x60   :  { %1339 = vmatpush.bf16.msra.mxu0 %v3447_v18  ;;  %v4876_v18 = vld [vmem:[%s7451_s3 + $0x2c4] sm:$0xf]  ;;  %1377 = vmatpush.bf16.msra.mxu3 %v3847_v15  ;;  %v3912_v38 = vld [vmem:[%s7451_s3 + $0x3b0] sm:$0xf0]  ;;  %v4851_v24 = vld [vmem:[%s7451_s3 + $0x1f4] sm:$0xf0] }
  0x61   :  { %1352 = vmatpush.bf16.msra.mxu1 %v3575_v20  ;;  %v3752_v41 = vld [vmem:[%s7451_s3 + $0x270] sm:$0xf0]  ;;  %v4900_v44 = vld [vmem:[%s7451_s3 + $0x384] sm:$0xf] }
  0x62   :  { %1365 = vmatpush.bf16.msra.mxu2 %v3703_v5  ;;  %v3896_v45 = vld [vmem:[%s7451_s3 + $0x390] sm:$0xf0]  ;;  %v4860_v47 = vld [vmem:[%s7451_s3 + $0x244] sm:$0xf] }
  0x63   :  { %v3736_v48 = vld [vmem:[%s7451_s3 + $0x250] sm:$0xf0]  ;;  %v4896_v52 = vld [vmem:[%s7451_s3 + $0x364] sm:$0xf] }
  0x64   :  { %1384 = vmatpush.bf16.msrb.mxu0 %v3563_v19  ;;  %v3800_v19 = vld [vmem:[%s7451_s3 + $0x2d0] sm:$0xf0]  ;;  %v3739_v50 = vor.u32 %v4860_v47, %v3736_v48  ;;  %v4856_v57 = vld [vmem:[%s7451_s3 + $0x224] sm:$0xf]  ;;  %v3646_v47 = vld [vmem:[%s7451_s3 + $0x188] sm:$0xf] }
  0x65   :  { %1397 = vmatpush.bf16.msrb.mxu1 %v3691_v23  ;;  %v3803_v20 = vor.u32 %v4876_v18, %v3800_v19  ;;  %v3831_v23 = vor.u32 %v4886_v22, %v3830_v21  ;;  %v3720_v58 = vld [vmem:[%s7451_s3 + $0x230] sm:$0xf0]  ;;  %v4892_v62 = vld [vmem:[%s7451_s3 + $0x344] sm:$0xf]  ;;  %v4839_v48 = vld [vmem:[%s7451_s3 + $0x194] sm:$0xf0] }
  0x66   :  { %1410 = vmatpush.bf16.msrb.mxu2 %v3819_v11  ;;  %v3723_v61 = vor.u32 %v4856_v57, %v3720_v58  ;;  %v3864_v63 = vld [vmem:[%s7451_s3 + $0x350] sm:$0xf0]  ;;  %v4852_v5 = vld [vmem:[%s7451_s3 + $0x204] sm:$0xf]  ;;  %v4835_v57 = vld [vmem:[%s7451_s3 + $0x174] sm:$0xf0] }
  0x67   :  { %1378 = vmatpush.bf16.msra.mxu3 %v3831_v23  ;;  %v3867_v3 = vor.u32 %v4892_v62, %v3864_v63  ;;  %v3704_v6 = vld [vmem:[%s7451_s3 + $0x210] sm:$0xf0]  ;;  %v4888_v14 = vld [vmem:[%s7451_s3 + $0x324] sm:$0xf]  ;;  %v3551_v23 = vor.u32 %v4815_v13, %v3550_v10  ;;  %v3470_v58 = vld [vmem:[%s7451_s3 + $0x28] sm:$0xf] }
  0x68   :  { %1385 = vmatpush.bf16.msrb.mxu0 %v3547_v26  ;;  %v4912_v26 = vld [vmem:[%s7451_s3 + $0x3e4] sm:$0xf]  ;;  %v3707_v8 = vor.u32 %v4852_v5, %v3704_v6  ;;  %v3848_v15 = vld [vmem:[%s7451_s3 + $0x330] sm:$0xf0]  ;;  %v3822_v5 = vld [vmem:[%s7451_s3 + $0x2e8] sm:$0xf] }
  0x69   :  { %1398 = vmatpush.bf16.msrb.mxu1 %v3675_v29  ;;  %v3947_v29 = vor.u32 %v4912_v26, %v3944_v28  ;;  %v3851_v19 = vor.u32 %v4888_v14, %v3848_v15  ;;  %v4884_v25 = vld [vmem:[%s7451_s3 + $0x304] sm:$0xf]  ;;  %v3832_v26 = vld [vmem:[%s7451_s3 + $0x310] sm:$0xf0]  ;;  %v4811_v28 = vld [vmem:[%s7451_s3 + $0xb4] sm:$0xf0] }
  0x6a   :  { %1411 = vmatpush.bf16.msrb.mxu2 %v3803_v20  ;;  %v3694_v20 = vld [vmem:[%s7451_s3 + $0x1e8] sm:$0xf]  ;;  %v111_v10 = vperm.slane %v5941_v43, 3 }
  0x6b   :  { %1423 = vmatpush.bf16.msrb.mxu3 %v3947_v29  ;;  %v3835_v29 = vor.u32 %v4884_v25, %v3832_v26  ;;  %v3598_v15 = vld [vmem:[%s7451_s3 + $0x128] sm:$0xf] }
  0x6c   :  { %1386 = vmatpush.bf16.msrb.mxu0 %v3531_v31  ;;  %v3787_v31 = vor.u32 %v4872_v30, %v3784_v51  ;;  %v3695_v51 = vor.u32 %v4851_v24, %v3694_v20 }
  0x6d   :  { %1399 = vmatpush.bf16.msrb.mxu1 %v3659_v33  ;;  %v3931_v33 = vor.u32 %v4908_v32, %v3928_v54  ;;  %v3678_v54 = vld [vmem:[%s7451_s3 + $0x1c8] sm:$0xf] }
  0x6e   :  { %1412 = vmatpush.bf16.msrb.mxu2 %v3787_v31 }
  0x6f   :  { %1424 = vmatpush.bf16.msrb.mxu3 %v3931_v33  ;;  %v4847_v33 = vld [vmem:[%s7451_s3 + $0x1d4] sm:$0xf0] }
  0x70   :  { %1387 = vmatpush.bf16.msrb.mxu0 %v3515_v36  ;;  %v3771_v36 = vor.u32 %v4868_v34, %v3768_v35  ;;  %v3518_v35 = vld [vmem:[%s7451_s3 + $0x88] sm:$0xf] }
  0x71   :  { %1400 = vmatpush.bf16.msrb.mxu1 %v3643_v39  ;;  %v3915_v39 = vor.u32 %v4904_v37, %v3912_v38  ;;  %v3679_v38 = vor.u32 %v4847_v33, %v3678_v54 }
  0x72   :  { %1413 = vmatpush.bf16.msrb.mxu2 %v3771_v36  ;;  %v4807_v36 = vld [vmem:[%s7451_s3 + $0x94] sm:$0xf0] }
  0x73   :  { %1425 = vmatpush.bf16.msrb.mxu3 %v3915_v39  ;;  %v3519_v39 = vor.u32 %v4807_v36, %v3518_v35  ;;  %v4849_v35 = vld [vmem:[%s7451_s3 + $0x1ec] sm:$0xf]  ;;  %v3696_v36 = vld [vmem:[%s7451_s3 + $0x1f8] sm:$0xf0] }
  0x74   :  { %1388 = vmatpush.bf16.msrb.mxu0 %v3499_v40  ;;  %v4864_v40 = vld [vmem:[%s7451_s3 + $0x264] sm:$0xf] }
  0x75   :  { %1401 = vmatpush.bf16.msrb.mxu1 %v3627_v53  ;;  %v3755_v42 = vor.u32 %v4864_v40, %v3752_v41  ;;  %v3880_v53 = vld [vmem:[%s7451_s3 + $0x370] sm:$0xf0]  ;;  %v3662_v40 = vld [vmem:[%s7451_s3 + $0x1a8] sm:$0xf]  ;;  %v4843_v41 = vld [vmem:[%s7451_s3 + $0x1b4] sm:$0xf0] }
  0x76   :  { %v3883_v55 = vor.u32 %v4896_v52, %v3880_v53  ;;  %v3647_v52 = vor.u32 %v4839_v48, %v3646_v47  ;;  %v110_v53 = vperm.slane %v5941_v43, 2  ;;  %v4911_v47 = vld [vmem:[%s7451_s3 + $0x3d4] sm:$0xf0] }
  0x77   :  { %1414 = vmatpush.bf16.msrb.mxu2 %v3755_v42  ;;  %v3502_v42 = vld [vmem:[%s7451_s3 + $0x68] sm:$0xf] }
  0x78   :  { %1389 = vmatpush.bf16.msrb.mxu0 %v3483_v46  ;;  %v3899_v46 = vor.u32 %v4900_v44, %v3896_v45  ;;  %v4803_v44 = vld [vmem:[%s7451_s3 + $0x74] sm:$0xf0]  ;;  %v3663_v45 = vor.u32 %v4843_v41, %v3662_v40  ;;  %v3536_v40 = vld [vmem:[%s7451_s3 + $0xb8] sm:$0xf0] }
  0x79   :  { %1402 = vmatpush.bf16.msrb.mxu1 %v3611_v2  ;;  %v4819_v2 = vld [vmem:[%s7451_s3 + $0xf4] sm:$0xf0] }
  0x7a   :  { %1426 = vmatpush.bf16.msrb.mxu3 %v3899_v46  ;;  %v3503_v46 = vor.u32 %v4803_v44, %v3502_v42 }
  0x7b   :  { %1415 = vmatpush.bf16.msrb.mxu2 %v3739_v50  ;;  %v4799_v50 = vld [vmem:[%s7451_s3 + $0x54] sm:$0xf0] }
  0x7c   :  { %1390 = vmatpush.bf16.msrb.mxu0 %v3467_v60 }
  0x7d   :  { %1403 = vmatpush.bf16.msrb.mxu1 %v3595_v17 }
  0x7e   :  { %1427 = vmatpush.bf16.msrb.mxu3 %v3883_v55 }
  0x7f   :  { %1416 = vmatpush.bf16.msrb.mxu2 %v3723_v61 }
  0x80   :  { %1391 = vmatpush.bf16.msrb.mxu0 %v3451_v9  ;;  %v3567_v9 = vor.u32 %v4819_v2, %v3566_v1  ;;  %v3614_v1 = vld [vmem:[%s7451_s3 + $0x148] sm:$0xf]  ;;  %v4831_v2 = vld [vmem:[%s7451_s3 + $0x154] sm:$0xf0] }
  0x81   :  { %1404 = vmatpush.bf16.msrb.mxu1 %v3579_v27  ;;  %v3534_v27 = vld [vmem:[%s7451_s3 + $0xa8] sm:$0xf] }
  0x82   :  { %1428 = vmatpush.bf16.msrb.mxu3 %v3867_v3  ;;  %v3535_v32 = vor.u32 %v4811_v28, %v3534_v27  ;;  %v3454_v3 = vld [vmem:[%s7451_s3 + $0x8] sm:$0xf] }
  0x83   :  { %1417 = vmatpush.bf16.msrb.mxu2 %v3707_v8  ;;  %v4817_v8 = vld [vmem:[%s7451_s3 + $0xec] sm:$0xf]  ;;  %v3582_v28 = vld [vmem:[%s7451_s3 + $0x108] sm:$0xf] }
  0x86   :  { %1429 = vmatpush.bf16.msrb.mxu3 %v3851_v19  ;;  %v3806_v19 = vld [vmem:[%s7451_s3 + $0x2c8] sm:$0xf] }
  0x8a   :  { %1430 = vmatpush.bf16.msrb.mxu3 %v3835_v29 }
  0xa0   :  { %v451_v56 = vpop.f32.mrf.mxu0 }
  0xa1   :  { %v452_v59 = vadd.f32 %v451_v56, %v108_v49  ;;  %v3486_v49 = vld [vmem:[%s7451_s3 + $0x48] sm:$0xf] }
  0xa2   :  { %v3487_v55 = vor.u32 %v4799_v50, %v3486_v49  ;;  %v3630_v56 = vld [vmem:[%s7451_s3 + $0x168] sm:$0xf] }
  0xa3   :  { %v464_v60 = vpop.f32.mrf.mxu1  ;;  %v3631_v61 = vor.u32 %v4835_v57, %v3630_v56  ;;  %v4871_v57 = vld [vmem:[%s7451_s3 + $0x294] sm:$0xf0] }
  0xa4   :  { %v465_v0 = vadd.f32 %v464_v60, %v452_v59  ;;  %v4795_v59 = vld [vmem:[%s7451_s3 + $0x34] sm:$0xf0] }
  0xa6   :  { %v546_v7 = vmax.f32 %v465_v0, 0.0  ;;  %v3471_v0 = vor.u32 %v4795_v59, %v3470_v58  ;;  %v4805_v58 = vld [vmem:[%s7451_s3 + $0x8c] sm:$0xf]  ;;  %v3520_v59 = vld [vmem:[%s7451_s3 + $0x98] sm:$0xf0] }
  0xa7   :  { %v477_v12 = vpop.f32.mrf.mxu2 }
  0xa8   :  { %v5990_v11 = vpack.c.bf16 %v546_v7, %v546_v7  ;;  %v478_v16 = vadd.f32 %v477_v12, %v109_v4  ;;  %v453_v18 = vpop.f32.mrf.mxu0  ;;  %v4791_v4 = vld [vmem:[%s7451_s3 + $0x14] sm:$0xf0]  ;;  %v3615_v12 = vor.u32 %v4831_v2, %v3614_v1  ;;  %v3523_v1 = vor.u32 %v4805_v58, %v3520_v59 }
  0xa9   :  { %v4883_v7 = vld [vmem:[%s7451_s3 + $0x2f4] sm:$0xf0]  ;;  %v3455_v14 = vor.u32 %v4791_v4, %v3454_v3  ;;  %v4841_v3 = vld [vmem:[%s7451_s3 + $0x1ac] sm:$0xf]  ;;  %v3664_v4 = vld [vmem:[%s7451_s3 + $0x1b8] sm:$0xf0] }
  0xaa   :  { %v490_v17 = vpop.f32.mrf.mxu3  ;;  %1340 = vmatmul.bf16.vlgmr.msra.gmra.mxu0 %v5990_v11  ;;  %v4907_v2 = vld [vmem:[%s7451_s3 + $0x3b4] sm:$0xf0] }
  0xab   :  { %v466_v21 = vpop.f32.mrf.mxu1  ;;  %v491_v22 = vadd.f32 %v490_v17, %v478_v16  ;;  %1436 = vmatpush.bf16.msra.mxu0 %v3567_v9  ;;  %v3568_v9 = vld [vmem:[%s7451_s3 + $0xf8] sm:$0xf0]  ;;  %v4827_v16 = vld [vmem:[%s7451_s3 + $0x134] sm:$0xf0]  ;;  %v3823_v17 = vor.u32 %v4883_v7, %v3822_v5  ;;  %v4801_v5 = vld [vmem:[%s7451_s3 + $0x6c] sm:$0xf] }
  0xac   :  { %v3571_v18 = vor.u32 %v4817_v8, %v3568_v9  ;;  %v4879_v21 = vld [vmem:[%s7451_s3 + $0x2d4] sm:$0xf0]  ;;  %v3599_v27 = vor.u32 %v4827_v16, %v3598_v15  ;;  %v3758_v7 = vld [vmem:[%s7451_s3 + $0x268] sm:$0xf]  ;;  %v4837_v15 = vld [vmem:[%s7451_s3 + $0x18c] sm:$0xf] }
  0xad   :  { %v547_v30 = vmax.f32 %v491_v22, 0.0  ;;  %v4813_v22 = vld [vmem:[%s7451_s3 + $0xcc] sm:$0xf]  ;;  %v3807_v33 = vor.u32 %v4879_v21, %v3806_v19  ;;  %v4867_v8 = vld [vmem:[%s7451_s3 + $0x274] sm:$0xf0] }
  0xae   :  { %v3648_v16 = vld [vmem:[%s7451_s3 + $0x198] sm:$0xf0]  ;;  %v4863_v21 = vld [vmem:[%s7451_s3 + $0x254] sm:$0xf0] }
  0xaf   :  { %v6020_v31 = vpack.c.bf16 %v547_v30, %v547_v30  ;;  %1437 = vmatpush.bf16.msra.mxu0 %v3551_v23  ;;  %v479_v34 = vpop.f32.mrf.mxu2  ;;  %v3552_v23 = vld [vmem:[%s7451_s3 + $0xd8] sm:$0xf0]  ;;  %v4823_v30 = vld [vmem:[%s7451_s3 + $0x114] sm:$0xf0] }
  0xb0   :  { %v3555_v34 = vor.u32 %v4813_v22, %v3552_v23  ;;  %v3583_v42 = vor.u32 %v4823_v30, %v3582_v28  ;;  %v3488_v19 = vld [vmem:[%s7451_s3 + $0x58] sm:$0xf0]  ;;  %v3651_v23 = vor.u32 %v4837_v15, %v3648_v16  ;;  %v4793_v30 = vld [vmem:[%s7451_s3 + $0x2c] sm:$0xf] }
  0xb1   :  { %1353 = vmatmul.bf16.vlgmr.msra.gmra.mxu1 %v6020_v31  ;;  %v3632_v28 = vld [vmem:[%s7451_s3 + $0x178] sm:$0xf0]  ;;  %v4869_v16 = vld [vmem:[%s7451_s3 + $0x28c] sm:$0xf] }
  0xb2   :  { %v492_v37 = vpop.f32.mrf.mxu3  ;;  %1449 = vmatpush.bf16.msra.mxu1 %v3695_v51  ;;  %v3950_v51 = vld [vmem:[%s7451_s3 + $0x3e8] sm:$0xf] }
  0xb3   :  { %1438 = vmatpush.bf16.msra.mxu0 %v3535_v32  ;;  %v4915_v32 = vld [vmem:[%s7451_s3 + $0x3f4] sm:$0xf0]  ;;  %v3790_v37 = vld [vmem:[%s7451_s3 + $0x2a8] sm:$0xf] }
  0xb4   :  { %v3951_v44 = vor.u32 %v4915_v32, %v3950_v51  ;;  %v3472_v51 = vld [vmem:[%s7451_s3 + $0x38] sm:$0xf0]  ;;  %v3726_v32 = vld [vmem:[%s7451_s3 + $0x228] sm:$0xf] }
  0xb6   :  { %1450 = vmatpush.bf16.msra.mxu1 %v3679_v38  ;;  %v4875_v38 = vld [vmem:[%s7451_s3 + $0x2b4] sm:$0xf0] }
  0xb7   :  { %1439 = vmatpush.bf16.msra.mxu0 %v3519_v39  ;;  %v4809_v39 = vld [vmem:[%s7451_s3 + $0xac] sm:$0xf]  ;;  %v3791_v49 = vor.u32 %v4875_v38, %v3790_v37  ;;  %v4895_v37 = vld [vmem:[%s7451_s3 + $0x354] sm:$0xf0] }
  0xb8   :  { %v3539_v50 = vor.u32 %v4809_v39, %v3536_v40  ;;  %v4829_v38 = vld [vmem:[%s7451_s3 + $0x14c] sm:$0xf]  ;;  %v3616_v39 = vld [vmem:[%s7451_s3 + $0x158] sm:$0xf0] }
  0xba   :  { %1451 = vmatpush.bf16.msra.mxu1 %v3663_v45  ;;  %1392 = vmatmul.bf16.vlgmr.msrb.gmra.mxu0 %v5990_v11  ;;  %v3699_v45 = vor.u32 %v4849_v35, %v3696_v36  ;;  %v3870_v35 = vld [vmem:[%s7451_s3 + $0x348] sm:$0xf]  ;;  %v3475_v36 = vor.u32 %v4793_v30, %v3472_v51  ;;  %v4861_v51 = vld [vmem:[%s7451_s3 + $0x24c] sm:$0xf] }
  0xbb   :  { %1440 = vmatpush.bf16.msra.mxu0 %v3503_v46  ;;  %v3934_v46 = vld [vmem:[%s7451_s3 + $0x3c8] sm:$0xf] }
  0xbe   :  { %1452 = vmatpush.bf16.msra.mxu1 %v3647_v52  ;;  %v4845_v52 = vld [vmem:[%s7451_s3 + $0x1cc] sm:$0xf] }
  0xbf   :  { %1441 = vmatpush.bf16.msra.mxu0 %v3487_v55  ;;  %v3774_v55 = vld [vmem:[%s7451_s3 + $0x288] sm:$0xf] }
  0xc0   :  { %v503_v60 = vpop.f32.mrf.mxu0 }
  0xc1   :  { %v504_v62 = vadd.f32 %v503_v60, %v110_v53  ;;  %v516_v63 = vpop.f32.mrf.mxu1  ;;  %1405 = vmatmul.bf16.vlgmr.msrb.gmra.mxu1 %v6020_v31  ;;  %v3680_v53 = vld [vmem:[%s7451_s3 + $0x1d8] sm:$0xf0] }
  0xc2   :  { %1453 = vmatpush.bf16.msra.mxu1 %v3631_v61  ;;  %v3935_v61 = vor.u32 %v4911_v47, %v3934_v46  ;;  %v3871_v46 = vor.u32 %v4895_v37, %v3870_v35  ;;  %v3619_v47 = vor.u32 %v4829_v38, %v3616_v39  ;;  %v3728_v37 = vld [vmem:[%s7451_s3 + $0x238] sm:$0xf0]  ;;  %v4893_v39 = vld [vmem:[%s7451_s3 + $0x34c] sm:$0xf] }
  0xc3   :  { %v517_v6 = vadd.f32 %v516_v63, %v504_v62  ;;  %1442 = vmatpush.bf16.msra.mxu0 %v3471_v0  ;;  %v3683_v62 = vor.u32 %v4845_v52, %v3680_v53  ;;  %v3918_v63 = vld [vmem:[%s7451_s3 + $0x3a8] sm:$0xf]  ;;  %v3775_v0 = vor.u32 %v4871_v57, %v3774_v55  ;;  %v4891_v55 = vld [vmem:[%s7451_s3 + $0x334] sm:$0xf0]  ;;  %v3600_v57 = vld [vmem:[%s7451_s3 + $0x138] sm:$0xf0] }
  0xc4   :  { %v3919_v9 = vor.u32 %v4907_v2, %v3918_v63  ;;  %v3854_v52 = vld [vmem:[%s7451_s3 + $0x328] sm:$0xf]  ;;  %v3808_v63 = vld [vmem:[%s7451_s3 + $0x2d8] sm:$0xf0]  ;;  %v4821_v2 = vld [vmem:[%s7451_s3 + $0x10c] sm:$0xf] }
  0xc5   :  { %v548_v13 = vmax.f32 %v517_v6, 0.0  ;;  %v3504_v6 = vld [vmem:[%s7451_s3 + $0x78] sm:$0xf0] }
  0xc6   :  { %1454 = vmatpush.bf16.msra.mxu1 %v3615_v12  ;;  %v3902_v12 = vld [vmem:[%s7451_s3 + $0x388] sm:$0xf] }
  0xc7   :  { %v6108_v20 = vpack.c.bf16 %v548_v13, %v548_v13  ;;  %1443 = vmatpush.bf16.msra.mxu0 %v3455_v14  ;;  %v3507_v13 = vor.u32 %v4801_v5, %v3504_v6  ;;  %v4903_v14 = vld [vmem:[%s7451_s3 + $0x394] sm:$0xf0]  ;;  %v3952_v5 = vld [vmem:[%s7451_s3 + $0x3f8] sm:$0xf0] }
  0xc8   :  { %v529_v43 = vpop.f32.mrf.mxu2  ;;  %v505_v26 = vpop.f32.mrf.mxu0  ;;  %v3903_v22 = vor.u32 %v4903_v14, %v3902_v12  ;;  %v3936_v14 = vld [vmem:[%s7451_s3 + $0x3d8] sm:$0xf0] }
  0xc9   :  { %v530_v24 = vadd.f32 %v529_v43, %v111_v10  ;;  %v542_v25 = vpop.f32.mrf.mxu3  ;;  %v518_v29 = vpop.f32.mrf.mxu1  ;;  %1366 = vmatmul.bf16.vlgmr.msra.gmra.mxu2 %v6108_v20  ;;  %v3667_v10 = vor.u32 %v4841_v3, %v3664_v4  ;;  %v3742_v43 = vld [vmem:[%s7451_s3 + $0x248] sm:$0xf]  ;;  %v4899_v26 = vld [vmem:[%s7451_s3 + $0x374] sm:$0xf0]  ;;  %v3584_v3 = vld [vmem:[%s7451_s3 + $0x118] sm:$0xf0] }
  0xca   :  { %1462 = vmatpush.bf16.msra.mxu2 %v3823_v17  ;;  %1455 = vmatpush.bf16.msra.mxu1 %v3599_v27  ;;  %v3759_v17 = vor.u32 %v4867_v8, %v3758_v7  ;;  %v4833_v27 = vld [vmem:[%s7451_s3 + $0x16c] sm:$0xf]  ;;  %v3743_v29 = vor.u32 %v4863_v21, %v3742_v43  ;;  %v3587_v8 = vor.u32 %v4821_v2, %v3584_v3  ;;  %v3920_v21 = vld [vmem:[%s7451_s3 + $0x3b8] sm:$0xf0]  ;;  %v4978_v2 = vld [vmem:[%s7455_s7 + $0xec] sm:$0xf0] }
  0xcb   :  { %v543_v54 = vadd.f32 %v542_v25, %v530_v24  ;;  %1488 = vmatpush.bf16.msrb.mxu0 %v3571_v18  ;;  %v4797_v18 = vld [vmem:[%s7451_s3 + $0x4c] sm:$0xf]  ;;  %v3886_v24 = vld [vmem:[%s7451_s3 + $0x368] sm:$0xf] }
  0xcc   :  { %1444 = vmatmul.bf16.vlgmr.msra.gmra.mxu0 %v5990_v11  ;;  %v3491_v25 = vor.u32 %v4797_v18, %v3488_v19  ;;  %v4913_v4 = vld [vmem:[%s7451_s3 + $0x3ec] sm:$0xf]  ;;  %v4923_v18 = vld [vmem:[%s7453_s5 + $0x38] sm:$0xff] }
  0xcd   :  { %v549_v41 = vmax.f32 %v543_v54, 0.0  ;;  %v4859_v54 = vld [vmem:[%s7451_s3 + $0x234] sm:$0xf0]  ;;  %v3955_v12 = vor.u32 %v4913_v4, %v3952_v5  ;;  %v4905_v43 = vld [vmem:[%s7451_s3 + $0x3ac] sm:$0xf] }
  0xce   :  { %1463 = vmatpush.bf16.msra.mxu2 %v3807_v33  ;;  %1456 = vmatpush.bf16.msra.mxu1 %v3583_v42  ;;  %v3887_v33 = vor.u32 %v4899_v26, %v3886_v24  ;;  %v3727_v40 = vor.u32 %v4859_v54, %v3726_v32  ;;  %v3456_v42 = vld [vmem:[%s7451_s3 + $0x18] sm:$0xf0]  ;;  %v4865_v24 = vld [vmem:[%s7451_s3 + $0x26c] sm:$0xf]  ;;  %v3923_v26 = vor.u32 %v4905_v43, %v3920_v21  ;;  %v4924_v21 = vld [vmem:[%s7453_s5 + $0x40] sm:$0xff] }
  0xcf   :  { %v6157_v48 = vpack.c.bf16 %v549_v41, %v549_v41  ;;  %1489 = vmatpush.bf16.msrb.mxu0 %v3555_v34  ;;  %v3635_v34 = vor.u32 %v4833_v27, %v3632_v28  ;;  %v4789_v41 = vld [vmem:[%s7451_s3 + $0xc] sm:$0xf]  ;;  %v3904_v28 = vld [vmem:[%s7451_s3 + $0x398] sm:$0xf0] }
  0xd0   :  { %v531_v56 = vpop.f32.mrf.mxu2  ;;  %v3459_v53 = vor.u32 %v4789_v41, %v3456_v42  ;;  %v4901_v27 = vld [vmem:[%s7451_s3 + $0x38c] sm:$0xf]  ;;  %v3744_v32 = vld [vmem:[%s7451_s3 + $0x258] sm:$0xf0] }
  0xd1   :  { %v544_v60 = vpop.f32.mrf.mxu3  ;;  %1379 = vmatmul.bf16.vlgmr.msra.gmra.mxu3 %v6157_v48  ;;  %1457 = vmatmul.bf16.vlgmr.msra.gmra.mxu1 %v6020_v31  ;;  %v4825_v56 = vld [vmem:[%s7451_s3 + $0x12c] sm:$0xf]  ;;  %v3907_v54 = vor.u32 %v4901_v27, %v3904_v28  ;;  %v3747_v35 = vor.u32 %v4861_v51, %v3744_v32  ;;  %v4927_v4 = vld [vmem:[%s7453_s5 + $0x58] sm:$0xff]  ;;  %v5010_v27 = vld [vmem:[%s7455_s7 + $0x1ec] sm:$0xf0] }
  0xd2   :  { %1475 = vmatpush.bf16.msra.mxu3 %v3951_v44  ;;  %1501 = vmatpush.bf16.msrb.mxu1 %v3699_v45  ;;  %v3710_v44 = vld [vmem:[%s7451_s3 + $0x208] sm:$0xf]  ;;  %v4855_v45 = vld [vmem:[%s7451_s3 + $0x214] sm:$0xf0]  ;;  %v3855_v60 = vor.u32 %v4891_v55, %v3854_v52  ;;  %v4853_v42 = vld [vmem:[%s7451_s3 + $0x20c] sm:$0xf] }
  0xd3   :  { %1464 = vmatpush.bf16.msra.mxu2 %v3791_v49  ;;  %1490 = vmatpush.bf16.msrb.mxu0 %v3539_v50  ;;  %v4881_v49 = vld [vmem:[%s7451_s3 + $0x2ec] sm:$0xf]  ;;  %v3824_v50 = vld [vmem:[%s7451_s3 + $0x2f8] sm:$0xf0]  ;;  %v3711_v58 = vor.u32 %v4855_v45, %v3710_v44  ;;  %v4958_v51 = vld [vmem:[%s7455_s7 + $0x4c] sm:$0xf0] }
  0xd4   :  { %v3827_v59 = vor.u32 %v4881_v49, %v3824_v50  ;;  %v3712_v44 = vld [vmem:[%s7451_s3 + $0x218] sm:$0xf0]  ;;  %v4885_v52 = vld [vmem:[%s7451_s3 + $0x30c] sm:$0xf] }
  0xd5   :  { %v3715_v49 = vor.u32 %v4853_v42, %v3712_v44  ;;  %v4939_v5 = vld [vmem:[%s7453_s5 + $0xb8] sm:$0xff]  ;;  %v5002_v42 = vld [vmem:[%s7455_s7 + $0x1ac] sm:$0xf0] }
  0xd6   :  { %1476 = vmatpush.bf16.msra.mxu3 %v3935_v61  ;;  %1502 = vmatpush.bf16.msrb.mxu1 %v3683_v62  ;;  %v3603_v61 = vor.u32 %v4825_v56, %v3600_v57  ;;  %v4877_v62 = vld [vmem:[%s7451_s3 + $0x2cc] sm:$0xf]  ;;  %v4920_v56 = vld [vmem:[%s7453_s5 + $0x20] sm:$0xff]  ;;  %v4919_v57 = vld [vmem:[%s7453_s5 + $0x18] sm:$0xff] }
  0xd7   :  { %1465 = vmatpush.bf16.msra.mxu2 %v3775_v0  ;;  %1491 = vmatpush.bf16.msrb.mxu0 %v3523_v1  ;;  %v3838_v0 = vld [vmem:[%s7451_s3 + $0x308] sm:$0xf]  ;;  %v4887_v1 = vld [vmem:[%s7451_s3 + $0x314] sm:$0xf0]  ;;  %v3811_v6 = vor.u32 %v4877_v62, %v3808_v63  ;;  %v4916_v63 = vld [vmem:[%s7453_s5] sm:$0xff] }
  0xd8   :  { %v3839_v7 = vor.u32 %v4887_v1, %v3838_v0  ;;  %v4929_v62 = vld [vmem:[%s7453_s5 + $0x68] sm:$0xff]  ;;  %v4928_v0 = vld [vmem:[%s7453_s5 + $0x60] sm:$0xff] }
  0xd9   :  { %1418 = vmatmul.bf16.vlgmr.msrb.gmra.mxu2 %v6108_v20  ;;  %v4198_v1 = vld [vmem:[%s7455_s7 + $0xe0] sm:$0xf] }
  0xda   :  { %1477 = vmatpush.bf16.msra.mxu3 %v3919_v9  ;;  %1503 = vmatpush.bf16.msrb.mxu1 %v3667_v10  ;;  %v4873_v9 = vld [vmem:[%s7451_s3 + $0x2ac] sm:$0xf]  ;;  %v3792_v10 = vld [vmem:[%s7451_s3 + $0x2b8] sm:$0xf0]  ;;  %v4199_v3 = vor.u32 %v4978_v2, %v4198_v1  ;;  %v4946_v1 = vld [vmem:[%s7453_s5 + $0xf0] sm:$0xff] }
  0xdb   :  { %1492 = vmatpush.bf16.msrb.mxu0 %v3507_v13  ;;  %1466 = vmatpush.bf16.msra.mxu2 %v3759_v17  ;;  %v4909_v13 = vld [vmem:[%s7451_s3 + $0x3cc] sm:$0xf]  ;;  %v3795_v15 = vor.u32 %v4873_v9, %v3792_v10  ;;  %v3776_v17 = vld [vmem:[%s7451_s3 + $0x298] sm:$0xf0]  ;;  %v4926_v9 = vld [vmem:[%s7453_s5 + $0x50] sm:$0xff] }
  0xdc   :  { %v3939_v19 = vor.u32 %v4909_v13, %v3936_v14  ;;  %v4938_v10 = vld [vmem:[%s7453_s5 + $0xb0] sm:$0xff]  ;;  %v4246_v2 = vld [vmem:[%s7455_s7 + $0x140] sm:$0xf] }
  0xdd   :  { %v4970_v13 = vld [vmem:[%s7455_s7 + $0xac] sm:$0xf0] }
  0xde   :  { %1478 = vmatpush.bf16.msra.mxu3 %v3903_v22  ;;  %1504 = vmatpush.bf16.msrb.mxu1 %v3651_v23  ;;  %v4922_v22 = vld [vmem:[%s7453_s5 + $0x30] sm:$0xff]  ;;  %v3779_v23 = vor.u32 %v4869_v16, %v3776_v17  ;;  %v4937_v16 = vld [vmem:[%s7453_s5 + $0xa8] sm:$0xff]  ;;  %v4150_v17 = vld [vmem:[%s7455_s7 + $0x80] sm:$0xf] }
  0xdf   :  { %1493 = vmatpush.bf16.msrb.mxu0 %v3491_v25  ;;  %1467 = vmatpush.bf16.msra.mxu2 %v3743_v29  ;;  %v3760_v25 = vld [vmem:[%s7451_s3 + $0x278] sm:$0xf0]  ;;  %v4921_v29 = vld [vmem:[%s7453_s5 + $0x28] sm:$0xff] }
  0xe0   :  { %v3763_v30 = vor.u32 %v4865_v24, %v3760_v25  ;;  %v4962_v24 = vld [vmem:[%s7455_s7 + $0x6c] sm:$0xf0]  ;;  %v4326_v25 = vld [vmem:[%s7455_s7 + $0x1e0] sm:$0xf] }
  0xe1   :  { %1431 = vmatmul.bf16.vlgmr.msrb.gmra.mxu3 %v6157_v48  ;;  %v4327_v28 = vor.u32 %v5010_v27, %v4326_v25  ;;  %v5030_v27 = vld [vmem:[%s7455_s7 + $0x28c] sm:$0xf0] }
  0xe2   :  { %1479 = vmatpush.bf16.msra.mxu3 %v3887_v33  ;;  %1505 = vmatpush.bf16.msrb.mxu1 %v3635_v34  ;;  %v4897_v33 = vld [vmem:[%s7451_s3 + $0x36c] sm:$0xf]  ;;  %v3888_v34 = vld [vmem:[%s7451_s3 + $0x378] sm:$0xf0] }
  0xe3   :  { %1494 = vmatpush.bf16.msrb.mxu0 %v3475_v36  ;;  %1468 = vmatpush.bf16.msra.mxu2 %v3727_v40  ;;  %v4857_v36 = vld [vmem:[%s7451_s3 + $0x22c] sm:$0xf]  ;;  %v3891_v38 = vor.u32 %v4897_v33, %v3888_v34  ;;  %v3872_v40 = vld [vmem:[%s7451_s3 + $0x358] sm:$0xf0]  ;;  %v4310_v33 = vld [vmem:[%s7455_s7 + $0x1c0] sm:$0xf] }
  0xe4   :  { %v3731_v41 = vor.u32 %v4857_v36, %v3728_v37  ;;  %v3875_v45 = vor.u32 %v4893_v39, %v3872_v40  ;;  %v5006_v34 = vld [vmem:[%s7455_s7 + $0x1cc] sm:$0xf0] }
  0xe5   :  { %v4311_v36 = vor.u32 %v5006_v34, %v4310_v33  ;;  %v4934_v37 = vld [vmem:[%s7453_s5 + $0x90] sm:$0xff] }
  0xe6   :  { %1480 = vmatpush.bf16.msra.mxu3 %v3871_v46  ;;  %1506 = vmatpush.bf16.msrb.mxu1 %v3619_v47  ;;  %v4889_v46 = vld [vmem:[%s7451_s3 + $0x32c] sm:$0xf]  ;;  %v3856_v47 = vld [vmem:[%s7451_s3 + $0x338] sm:$0xf0]  ;;  %v4954_v39 = vld [vmem:[%s7455_s7 + $0x2c] sm:$0xf0] }
  0xe7   :  { %1495 = vmatpush.bf16.msrb.mxu0 %v3459_v53  ;;  %1469 = vmatpush.bf16.msra.mxu2 %v3711_v58  ;;  %v3859_v50 = vor.u32 %v4889_v46, %v3856_v47  ;;  %v3840_v53 = vld [vmem:[%s7451_s3 + $0x318] sm:$0xf0]  ;;  %v4086_v46 = vld [vmem:[%s7455_s7] sm:$0xf]  ;;  %v4950_v47 = vld [vmem:[%s7455_s7 + $0xc] sm:$0xf0] }
  0xe8   :  { %v3843_v55 = vor.u32 %v4885_v52, %v3840_v53  ;;  %v4931_v58 = vld [vmem:[%s7453_s5 + $0x78] sm:$0xff]  ;;  %v4278_v52 = vld [vmem:[%s7455_s7 + $0x180] sm:$0xf]  ;;  %v4998_v53 = vld [vmem:[%s7455_s7 + $0x18c] sm:$0xf0] }
  0xea   :  { %1481 = vmatpush.bf16.msra.mxu3 %v3855_v60  ;;  %1507 = vmatpush.bf16.msrb.mxu1 %v3603_v61  ;;  %v4930_v60 = vld [vmem:[%s7453_s5 + $0x70] sm:$0xff]  ;;  %v4917_v61 = vld [vmem:[%s7453_s5 + $0x8] sm:$0xff] }
  0xeb   :  { %1514 = vmatpush.bf16.msrb.mxu2 %v3827_v59  ;;  %1496 = vmatmul.bf16.vlgmr.msrb.gmra.mxu0 %v5990_v11  ;;  %v4918_v59 = vld [vmem:[%s7453_s5 + $0x10] sm:$0xff] }
  0xec   :  { %1470 = vmatmul.bf16.vlgmr.msra.gmra.mxu2 %v6108_v20  ;;  %1808 = vmatpush.bf16.msra.mxu0 %v4923_v18  ;;  %v4966_v18 = vld [vmem:[%s7455_s7 + $0x8c] sm:$0xf0] }
  0xed   :  { %v4151_v43 = vor.u32 %v4966_v18, %v4150_v17  ;;  %v6603_v17 = vld [vmem:[%s7452_s4] sm:$0xf] }
  0xee   :  { %1482 = vmatpush.bf16.msra.mxu3 %v3839_v7  ;;  %1508 = vmatpush.bf16.msrb.mxu1 %v3587_v8  ;;  %v4974_v7 = vld [vmem:[%s7455_s7 + $0xcc] sm:$0xf0] }
  0xef   :  { %1515 = vmatpush.bf16.msrb.mxu2 %v3811_v6  ;;  %v4182_v6 = vld [vmem:[%s7455_s7 + $0xc0] sm:$0xf] }
  0xf0   :  { %1809 = vmatpush.bf16.msra.mxu0 %v4922_v22  ;;  %v4183_v8 = vor.u32 %v4974_v7, %v4182_v6  ;;  %v4936_v22 = vld [vmem:[%s7453_s5 + $0xa0] sm:$0xff]  ;;  %v5038_v7 = vld [vmem:[%s7455_s7 + $0x2cc] sm:$0xf0] }
  0xf1   :  { %1509 = vmatmul.bf16.vlgmr.msrb.gmra.mxu1 %v6020_v31  ;;  %1483 = vmatmul.bf16.vlgmr.msra.gmra.mxu3 %v6157_v48  ;;  %v4438_v6 = vld [vmem:[%s7455_s7 + $0x2c0] sm:$0xf] }
  0xf2   :  { %1527 = vmatpush.bf16.msrb.mxu3 %v3955_v12  ;;  %1821 = vmatpush.bf16.msra.mxu1 %v4931_v58  ;;  %v4166_v12 = vld [vmem:[%s7455_s7 + $0xa0] sm:$0xf]  ;;  %v4947_v58 = vld [vmem:[%s7453_s5 + $0xf8] sm:$0xff] }
  0xf3   :  { %1516 = vmatpush.bf16.msrb.mxu2 %v3795_v15  ;;  %v4167_v14 = vor.u32 %v4970_v13, %v4166_v12  ;;  %v4925_v15 = vld [vmem:[%s7453_s5 + $0x48] sm:$0xff]  ;;  %v4230_v12 = vld [vmem:[%s7455_s7 + $0x120] sm:$0xf]  ;;  %v4986_v13 = vld [vmem:[%s7455_s7 + $0x12c] sm:$0xf0] }
  0xf4   :  { %1810 = vmatpush.bf16.msra.mxu0 %v4921_v29  ;;  %v4935_v29 = vld [vmem:[%s7453_s5 + $0x98] sm:$0xff] }
  0xf6   :  { %1528 = vmatpush.bf16.msrb.mxu3 %v3939_v19  ;;  %1822 = vmatpush.bf16.msra.mxu1 %v4930_v60  ;;  %v4994_v60 = vld [vmem:[%s7455_s7 + $0x16c] sm:$0xf0] }
  0xf7   :  { %1517 = vmatpush.bf16.msrb.mxu2 %v3779_v23  ;;  %v4134_v23 = vld [vmem:[%s7455_s7 + $0x60] sm:$0xf] }
  0xf8   :  { %1811 = vmatpush.bf16.msra.mxu0 %v4920_v56  ;;  %v4279_v56 = vor.u32 %v4998_v53, %v4278_v52  ;;  %v4200_v52 = vld [vmem:[%s7455_s7 + $0xf0] sm:$0xf0] }
  0xfa   :  { %1529 = vmatpush.bf16.msrb.mxu3 %v3923_v26  ;;  %1823 = vmatpush.bf16.msra.mxu1 %v4929_v62  ;;  %v4135_v26 = vor.u32 %v4962_v24, %v4134_v23  ;;  %v5042_v62 = vld [vmem:[%s7455_s7 + $0x2ec] sm:$0xf0]  ;;  %v684_v23 = vperm.slane %v6603_v17, 0 }
  0xfb   :  { %1518 = vmatpush.bf16.msrb.mxu2 %v3763_v30  ;;  %v4118_v30 = vld [vmem:[%s7455_s7 + $0x40] sm:$0xf] }
  0xfc   :  { %1812 = vmatpush.bf16.msra.mxu0 %v4919_v57  ;;  %v4932_v57 = vld [vmem:[%s7453_s5 + $0x80] sm:$0xff] }
  0xfe   :  { %1530 = vmatpush.bf16.msrb.mxu3 %v3907_v54  ;;  %1824 = vmatpush.bf16.msra.mxu1 %v4928_v0  ;;  %v4119_v54 = vor.u32 %v4958_v51, %v4118_v30  ;;  %v4943_v30 = vld [vmem:[%s7453_s5 + $0xd8] sm:$0xff]  ;;  %v4390_v51 = vld [vmem:[%s7455_s7 + $0x260] sm:$0xf] }
  0xff   :  { %1519 = vmatpush.bf16.msrb.mxu2 %v3747_v35 }
 0x100   :  { %1813 = vmatpush.bf16.msra.mxu0 %v4918_v59  ;;  %v4262_v59 = vld [vmem:[%s7455_s7 + $0x160] sm:$0xf] }
 0x102   :  { %1531 = vmatpush.bf16.msrb.mxu3 %v3891_v38  ;;  %1825 = vmatpush.bf16.msra.mxu1 %v4927_v4  ;;  %v4102_v38 = vld [vmem:[%s7455_s7 + $0x20] sm:$0xf] }
 0x103   :  { %1520 = vmatpush.bf16.msrb.mxu2 %v3731_v41  ;;  %v4103_v40 = vor.u32 %v4954_v39, %v4102_v38  ;;  %v4294_v41 = vld [vmem:[%s7455_s7 + $0x1a0] sm:$0xf]  ;;  %v5022_v38 = vld [vmem:[%s7455_s7 + $0x24c] sm:$0xf0] }
 0x104   :  { %1814 = vmatpush.bf16.msra.mxu0 %v4917_v61  ;;  %v4295_v44 = vor.u32 %v5002_v42, %v4294_v41  ;;  %v4454_v61 = vld [vmem:[%s7455_s7 + $0x2e0] sm:$0xf] }
 0x105   :  { %v4455_v0 = vor.u32 %v5042_v62, %v4454_v61  ;;  %v5014_v61 = vld [vmem:[%s7455_s7 + $0x20c] sm:$0xf0] }
 0x106   :  { %1532 = vmatpush.bf16.msrb.mxu3 %v3875_v45  ;;  %1826 = vmatpush.bf16.msra.mxu1 %v4926_v9  ;;  %v4933_v45 = vld [vmem:[%s7453_s5 + $0x88] sm:$0xff]  ;;  %v4439_v9 = vor.u32 %v5038_v7, %v4438_v6  ;;  %v685_v6 = vperm.slane %v6603_v17, 1 }
 0x107   :  { %1521 = vmatpush.bf16.msrb.mxu2 %v3715_v49 }
 0x108   :  { %1815 = vmatpush.bf16.msra.mxu0 %v4916_v63  ;;  %v4263_v63 = vor.u32 %v4994_v60, %v4262_v59  ;;  %v4940_v59 = vld [vmem:[%s7453_s5 + $0xc0] sm:$0xff] }
 0x109   :  { %v4342_v60 = vld [vmem:[%s7455_s7 + $0x200] sm:$0xf] }
 0x10a   :  { %1533 = vmatpush.bf16.msrb.mxu3 %v3859_v50  ;;  %1522 = vmatmul.bf16.vlgmr.msrb.gmra.mxu2 %v6108_v20  ;;  %v4087_v50 = vor.u32 %v4950_v47, %v4086_v46  ;;  %v4358_v46 = vld [vmem:[%s7455_s7 + $0x220] sm:$0xf] }
 0x10b   :  { %1834 = vmatpush.bf16.msra.mxu2 %v4939_v5  ;;  %1827 = vmatpush.bf16.msra.mxu1 %v4925_v15  ;;  %v4422_v15 = vld [vmem:[%s7455_s7 + $0x2a0] sm:$0xf] }
 0x10c   :  { %2639 = vmatpush.bf16.msrb.mxu0 %v4199_v3  ;;  %v4990_v3 = vld [vmem:[%s7455_s7 + $0x14c] sm:$0xf0] }
 0x10d   :  { %v4247_v5 = vor.u32 %v4990_v3, %v4246_v2  ;;  %v4582_v2 = vld [vmem:[%s7455_s7 + $0x3e0] sm:$0xf]  ;;  %v5074_v3 = vld [vmem:[%s7455_s7 + $0x3ec] sm:$0xf0] }
 0x10e   :  { %1534 = vmatpush.bf16.msrb.mxu3 %v3843_v55 }
 0x10f   :  { %1835 = vmatpush.bf16.msra.mxu2 %v4938_v10  ;;  %1828 = vmatpush.bf16.msra.mxu1 %v4924_v21  ;;  %v4945_v10 = vld [vmem:[%s7453_s5 + $0xe8] sm:$0xff]  ;;  %v4214_v21 = vld [vmem:[%s7455_s7 + $0x100] sm:$0xf] }
 0x110   :  { %2640 = vmatpush.bf16.msrb.mxu0 %v4183_v8 }
 0x111   :  { %1535 = vmatmul.bf16.vlgmr.msrb.gmra.mxu3 %v6157_v48 }
 0x112   :  { %1847 = vmatpush.bf16.msra.mxu3 %v4947_v58 }
 0x113   :  { %1836 = vmatpush.bf16.msra.mxu2 %v4937_v16  ;;  %2652 = vmatpush.bf16.msrb.mxu1 %v4327_v28  ;;  %v5034_v16 = vld [vmem:[%s7455_s7 + $0x2ac] sm:$0xf0] }
 0x114   :  { %2641 = vmatpush.bf16.msrb.mxu0 %v4167_v14  ;;  %v4231_v14 = vor.u32 %v4986_v13, %v4230_v12  ;;  %v4423_v18 = vor.u32 %v5034_v16, %v4422_v15  ;;  %v4566_v12 = vld [vmem:[%s7455_s7 + $0x3c0] sm:$0xf]  ;;  %v5070_v13 = vld [vmem:[%s7455_s7 + $0x3cc] sm:$0xf0] }
 0x115   :  { %v4567_v15 = vor.u32 %v5070_v13, %v4566_v12  ;;  %v5050_v12 = vld [vmem:[%s7455_s7 + $0x32c] sm:$0xf0] }
 0x116   :  { %1848 = vmatpush.bf16.msra.mxu3 %v4946_v1  ;;  %v4343_v1 = vor.u32 %v5014_v61, %v4342_v60  ;;  %v4296_v60 = vld [vmem:[%s7455_s7 + $0x1b0] sm:$0xf0]  ;;  %v4502_v61 = vld [vmem:[%s7455_s7 + $0x340] sm:$0xf] }
 0x117   :  { %1837 = vmatpush.bf16.msra.mxu2 %v4936_v22  ;;  %2653 = vmatpush.bf16.msrb.mxu1 %v4311_v36  ;;  %v4982_v22 = vld [vmem:[%s7455_s7 + $0x10c] sm:$0xf0] }
 0x118   :  { %2642 = vmatpush.bf16.msrb.mxu0 %v4151_v43  ;;  %v4944_v43 = vld [vmem:[%s7453_s5 + $0xe0] sm:$0xff]  ;;  %v4215_v25 = vor.u32 %v4982_v22, %v4214_v21  ;;  %v4942_v36 = vld [vmem:[%s7453_s5 + $0xd0] sm:$0xff] }
 0x119   :  { %v4152_v22 = vld [vmem:[%s7455_s7 + $0x90] sm:$0xf0] }
 0x11a   :  { %1849 = vmatpush.bf16.msra.mxu3 %v4945_v10  ;;  %v4168_v10 = vld [vmem:[%s7455_s7 + $0xb0] sm:$0xf0] }
 0x11b   :  { %1838 = vmatpush.bf16.msra.mxu2 %v4935_v29  ;;  %2654 = vmatpush.bf16.msrb.mxu1 %v4295_v44 }
 0x11c   :  { %2643 = vmatpush.bf16.msrb.mxu0 %v4135_v26  ;;  %v4406_v26 = vld [vmem:[%s7455_s7 + $0x280] sm:$0xf] }
 0x11d   :  { %v4407_v29 = vor.u32 %v5030_v27, %v4406_v26 }
 0x11e   :  { %1850 = vmatpush.bf16.msra.mxu3 %v4944_v43  ;;  %v4964_v43 = vld [vmem:[%s7455_s7 + $0x84] sm:$0xf] }
 0x11f   :  { %1839 = vmatpush.bf16.msra.mxu2 %v4934_v37  ;;  %2655 = vmatpush.bf16.msrb.mxu1 %v4279_v56  ;;  %v4374_v37 = vld [vmem:[%s7455_s7 + $0x240] sm:$0xf]  ;;  %v4155_v27 = vor.u32 %v4964_v43, %v4152_v22  ;;  %v4992_v22 = vld [vmem:[%s7455_s7 + $0x164] sm:$0xf] }
 0x120   :  { %2644 = vmatpush.bf16.msrb.mxu0 %v4119_v54  ;;  %v5026_v54 = vld [vmem:[%s7455_s7 + $0x26c] sm:$0xf0] }
 0x122   :  { %1851 = vmatpush.bf16.msra.mxu3 %v4943_v30  ;;  %v5008_v30 = vld [vmem:[%s7455_s7 + $0x1e4] sm:$0xf] }
 0x123   :  { %1840 = vmatpush.bf16.msra.mxu2 %v4933_v45  ;;  %2656 = vmatpush.bf16.msrb.mxu1 %v4263_v63  ;;  %v4941_v45 = vld [vmem:[%s7453_s5 + $0xc8] sm:$0xff] }
 0x124   :  { %2645 = vmatpush.bf16.msrb.mxu0 %v4103_v40 }
 0x126   :  { %1852 = vmatpush.bf16.msra.mxu3 %v4942_v36 }
 0x127   :  { %v6481_v19 = vpop.f32.mrf.mxu0  ;;  %1841 = vmatpush.bf16.msra.mxu2 %v4932_v57  ;;  %2657 = vmatpush.bf16.msrb.mxu1 %v4247_v5  ;;  %v4972_v57 = vld [vmem:[%s7455_s7 + $0xc4] sm:$0xf]  ;;  %v4583_v5 = vor.u32 %v5074_v3, %v4582_v2 }
 0x128   :  { %2646 = vmatpush.bf16.msrb.mxu0 %v4087_v50  ;;  %v1342_v33 = vadd.f32 %v6481_v19, %v684_v23  ;;  %v4375_v19 = vor.u32 %v5022_v38, %v4374_v37  ;;  %v4976_v50 = vld [vmem:[%s7455_s7 + $0xe4] sm:$0xf]  ;;  %v4550_v23 = vld [vmem:[%s7455_s7 + $0x3a0] sm:$0xf] }
 0x129   :  { %v4203_v58 = vor.u32 %v4976_v50, %v4200_v52  ;;  %v686_v50 = vperm.slane %v6603_v17, 2 }
 0x12a   :  { %1853 = vmatpush.bf16.msra.mxu3 %v4941_v45 }
 0x12b   :  { %2665 = vmatpush.bf16.msrb.mxu2 %v4455_v0  ;;  %2658 = vmatpush.bf16.msrb.mxu1 %v4231_v14  ;;  %v4184_v0 = vld [vmem:[%s7455_s7 + $0xd0] sm:$0xf0] }
 0x12e   :  { %v6510_v32 = vpop.f32.mrf.mxu1  ;;  %1854 = vmatpush.bf16.msra.mxu3 %v4940_v59  ;;  %v5000_v59 = vld [vmem:[%s7455_s7 + $0x1a4] sm:$0xf] }
 0x12f   :  { %v1343_v35 = vpop.f32.mrf.mxu0  ;;  %2666 = vmatpush.bf16.msrb.mxu2 %v4439_v9  ;;  %2659 = vmatpush.bf16.msrb.mxu1 %v4215_v25  ;;  %v1355_v39 = vadd.f32 %v6510_v32, %v1342_v33  ;;  %v5018_v32 = vld [vmem:[%s7455_s7 + $0x22c] sm:$0xf0]  ;;  %v4968_v9 = vld [vmem:[%s7455_s7 + $0xa4] sm:$0xf]  ;;  %v4534_v33 = vld [vmem:[%s7455_s7 + $0x380] sm:$0xf] }
 0x130   :  { %v4391_v35 = vor.u32 %v5026_v54, %v4390_v51  ;;  %v4359_v53 = vor.u32 %v5018_v32, %v4358_v46  ;;  %v4328_v54 = vld [vmem:[%s7455_s7 + $0x1f0] sm:$0xf0]  ;;  %v4518_v32 = vld [vmem:[%s7455_s7 + $0x360] sm:$0xf] }
 0x131   :  { %v4312_v46 = vld [vmem:[%s7455_s7 + $0x1d0] sm:$0xf0] }
 0x132   :  { %2678 = vmatpush.bf16.msrb.mxu3 %v4583_v5 }
 0x133   :  { %2667 = vmatpush.bf16.msrb.mxu2 %v4423_v18  ;;  %v4171_v18 = vor.u32 %v4968_v9, %v4168_v10  ;;  %v4996_v9 = vld [vmem:[%s7455_s7 + $0x184] sm:$0xf]  ;;  %v4486_v10 = vld [vmem:[%s7455_s7 + $0x320] sm:$0xf] }
 0x136   :  { %v1356_v49 = vpop.f32.mrf.mxu1  ;;  %2679 = vmatpush.bf16.msrb.mxu3 %v4567_v15  ;;  %v4979_v15 = vld [vmem:[%s7455_s7 + $0xf4] sm:$0xf0] }
 0x137   :  { %v6548_v55 = vpop.f32.mrf.mxu0  ;;  %2668 = vmatpush.bf16.msrb.mxu2 %v4407_v29  ;;  %v4136_v29 = vld [vmem:[%s7455_s7 + $0x70] sm:$0xf0] }
 0x138   :  { %v1394_v16 = vadd.f32 %v6548_v55, %v685_v6  ;;  %v5066_v55 = vld [vmem:[%s7455_s7 + $0x3ac] sm:$0xf0]  ;;  %v4299_v6 = vor.u32 %v5000_v59, %v4296_v60  ;;  %v4967_v59 = vld [vmem:[%s7455_s7 + $0x94] sm:$0xf0] }
 0x13b   :  { %2669 = vmatpush.bf16.msrb.mxu2 %v4391_v35 }
 0x13e   :  { %v6577_v4 = vpop.f32.mrf.mxu1 }
 0x13f   :  { %v1395_v8 = vpop.f32.mrf.mxu0  ;;  %2670 = vmatpush.bf16.msrb.mxu2 %v4375_v19  ;;  %v1407_v21 = vadd.f32 %v6577_v4, %v1394_v16  ;;  %v4960_v4 = vld [vmem:[%s7455_s7 + $0x64] sm:$0xf]  ;;  %v4331_v19 = vor.u32 %v5008_v30, %v4328_v54  ;;  %v4487_v16 = vor.u32 %v5050_v12, %v4486_v10  ;;  %v4456_v30 = vld [vmem:[%s7455_s7 + $0x2f0] sm:$0xf0]  ;;  %v4975_v54 = vld [vmem:[%s7455_s7 + $0xd4] sm:$0xf0] }
 0x140   :  { %v4187_v8 = vor.u32 %v4972_v57, %v4184_v0  ;;  %v4952_v57 = vld [vmem:[%s7455_s7 + $0x24] sm:$0xf] }
 0x141   :  { %v5024_v12 = vld [vmem:[%s7455_s7 + $0x264] sm:$0xf] }
 0x143   :  { %2671 = vmatpush.bf16.msrb.mxu2 %v4359_v53 }
 0x146   :  { %v1408_v24 = vpop.f32.mrf.mxu1 }
 0x147   :  { %2672 = vmatpush.bf16.msrb.mxu2 %v4343_v1  ;;  %v4551_v24 = vor.u32 %v5066_v55, %v4550_v23 }
 0x149   :  { %v6621_v28 = vpop.f32.mrf.mxu0  ;;  %2680 = vmatpush.bf16.msrb.mxu3 %v4551_v24  ;;  %v5040_v24 = vld [vmem:[%s7455_s7 + $0x2e4] sm:$0xf] }
 0x14a   :  { %v1446_v2 = vadd.f32 %v6621_v28, %v686_v50  ;;  %v4280_v28 = vld [vmem:[%s7455_s7 + $0x190] sm:$0xf0] }
 0x14c   :  { %v1367_v34 = vpop.f32.mrf.mxu2 }
 0x14d   :  { %v1368_v42 = vadd.f32 %v1367_v34, %v1355_v39  ;;  %v5062_v34 = vld [vmem:[%s7455_s7 + $0x38c] sm:$0xf0]  ;;  %v4139_v39 = vor.u32 %v4960_v4, %v4136_v29 }
 0x14e   :  { %v6643_v40 = vpop.f32.mrf.mxu1  ;;  %v4535_v36 = vor.u32 %v5062_v34, %v4534_v33 }
 0x14f   :  { %v1459_v13 = vadd.f32 %v6643_v40, %v1446_v2  ;;  %v4264_v40 = vld [vmem:[%s7455_s7 + $0x170] sm:$0xf0]  ;;  %v5028_v2 = vld [vmem:[%s7455_s7 + $0x284] sm:$0xf] }
 0x150   :  { %2681 = vmatpush.bf16.msrb.mxu3 %v4535_v36  ;;  %v4459_v36 = vor.u32 %v5040_v24, %v4456_v30  ;;  %v4376_v24 = vld [vmem:[%s7455_s7 + $0x250] sm:$0xf0] }
 0x151   :  { %v1447_v41 = vpop.f32.mrf.mxu0 }
 0x152   :  { %v4956_v41 = vld [vmem:[%s7455_s7 + $0x44] sm:$0xf] }
 0x154   :  { %v1380_v44 = vpop.f32.mrf.mxu3  ;;  %v1369_v49 = vpop.f32.mrf.mxu2 }
 0x155   :  { %v1381_v47 = vadd.f32 %v1380_v44, %v1368_v42  ;;  %v4120_v42 = vld [vmem:[%s7455_s7 + $0x50] sm:$0xf0]  ;;  %v5004_v44 = vld [vmem:[%s7455_s7 + $0x1c4] sm:$0xf] }
 0x156   :  { %v1460_v63 = vpop.f32.mrf.mxu1  ;;  %v4123_v53 = vor.u32 %v4956_v41, %v4120_v42  ;;  %v5036_v41 = vld [vmem:[%s7455_s7 + $0x2c4] sm:$0xf] }
 0x157   :  { %v1540_v56 = vmax.f32 %v1381_v47, 0.0  ;;  %v5058_v47 = vld [vmem:[%s7455_s7 + $0x36c] sm:$0xf0] }
 0x158   :  { %v4519_v49 = vor.u32 %v5058_v47, %v4518_v32 }
 0x159   :  { %v1544_v62 = vpack.c.bf16 %v1540_v56, %v1540_v56  ;;  %v4315_v56 = vor.u32 %v5004_v44, %v4312_v46  ;;  %v4440_v44 = vld [vmem:[%s7455_s7 + $0x2d0] sm:$0xf0]  ;;  %v4971_v46 = vld [vmem:[%s7455_s7 + $0xb4] sm:$0xf0] }
 0x15a   :  { %2682 = vmatpush.bf16.msrb.mxu3 %v4519_v49  ;;  %v4443_v49 = vor.u32 %v5036_v41, %v4440_v44 }
 0x15b   :  { %1816 = vmatmul.bf16.vlgmr.msra.gmra.mxu0 %v1544_v62  ;;  %v5054_v62 = vld [vmem:[%s7455_s7 + $0x34c] sm:$0xf0] }
 0x15c   :  { %2691 = vmatpush.bf16.msra.mxu0 %v4203_v58  ;;  %v1382_v7 = vpop.f32.mrf.mxu3  ;;  %v1419_v14 = vpop.f32.mrf.mxu2  ;;  %v4104_v58 = vld [vmem:[%s7455_s7 + $0x30] sm:$0xf0]  ;;  %v4503_v1 = vor.u32 %v5054_v62, %v4502_v61 }
 0x15d   :  { %v1420_v25 = vadd.f32 %v1419_v14, %v1407_v21  ;;  %v4107_v5 = vor.u32 %v4952_v57, %v4104_v58  ;;  %v4948_v7 = vld [vmem:[%s7455_s7 + $0x4] sm:$0xf]  ;;  %v4206_v14 = vld [vmem:[%s7455_s7 + $0xe8] sm:$0xf]  ;;  %v4283_v21 = vor.u32 %v4996_v9, %v4280_v28  ;;  %v4424_v57 = vld [vmem:[%s7455_s7 + $0x2b0] sm:$0xf0] }
 0x15e   :  { %2683 = vmatpush.bf16.msrb.mxu3 %v4503_v1  ;;  %v4207_v55 = vor.u32 %v4979_v15, %v4206_v14  ;;  %v4158_v58 = vld [vmem:[%s7455_s7 + $0x88] sm:$0xf]  ;;  %v4216_v1 = vld [vmem:[%s7455_s7 + $0x110] sm:$0xf0] }
 0x15f   :  { %v4159_v62 = vor.u32 %v4967_v59, %v4158_v58  ;;  %v4392_v14 = vld [vmem:[%s7455_s7 + $0x270] sm:$0xf0]  ;;  %v4126_v15 = vld [vmem:[%s7455_s7 + $0x48] sm:$0xf]  ;;  %v4995_v58 = vld [vmem:[%s7455_s7 + $0x174] sm:$0xf0] }
 0x160   :  { %2692 = vmatpush.bf16.msra.mxu0 %v4187_v8  ;;  %v4088_v8 = vld [vmem:[%s7455_s7 + $0x10] sm:$0xf0]  ;;  %v4462_v59 = vld [vmem:[%s7455_s7 + $0x2e8] sm:$0xf] }
 0x161   :  { %v4091_v43 = vor.u32 %v4948_v7, %v4088_v8  ;;  %v4334_v7 = vld [vmem:[%s7455_s7 + $0x1e8] sm:$0xf]  ;;  %v5011_v8 = vld [vmem:[%s7455_s7 + $0x1f4] sm:$0xf0] }
 0x162   :  { %2684 = vmatpush.bf16.msrb.mxu3 %v4487_v16  ;;  %v4959_v16 = vld [vmem:[%s7455_s7 + $0x54] sm:$0xf0] }
 0x164   :  { %2693 = vmatpush.bf16.msra.mxu0 %v4171_v18  ;;  %v1432_v26 = vpop.f32.mrf.mxu3  ;;  %v1421_v35 = vpop.f32.mrf.mxu2 }
 0x165   :  { %v1433_v51 = vadd.f32 %v1432_v26, %v1420_v25  ;;  %v4470_v25 = vld [vmem:[%s7455_s7 + $0x300] sm:$0xf]  ;;  %v5046_v26 = vld [vmem:[%s7455_s7 + $0x30c] sm:$0xf0]  ;;  %v4267_v35 = vor.u32 %v4992_v22, %v4264_v40  ;;  %v4395_v22 = vor.u32 %v5024_v12, %v4392_v14  ;;  %v4127_v40 = vor.u32 %v4959_v16, %v4126_v15  ;;  %v4446_v12 = vld [vmem:[%s7455_s7 + $0x2c8] sm:$0xf] }
 0x166   :  { %v4471_v33 = vor.u32 %v5046_v26, %v4470_v25  ;;  %v4110_v25 = vld [vmem:[%s7455_s7 + $0x28] sm:$0xf]  ;;  %v4969_v14 = vld [vmem:[%s7455_s7 + $0xac] sm:$0xf]  ;;  %v4176_v15 = vld [vmem:[%s7455_s7 + $0xb8] sm:$0xf0] }
 0x167   :  { %v1541_v37 = vmax.f32 %v1433_v51, 0.0  ;;  %v4190_v51 = vld [vmem:[%s7455_s7 + $0xc8] sm:$0xf] }
 0x168   :  { %v6726_v38 = vpop.f32.mrf.mxu0  ;;  %2694 = vmatpush.bf16.msra.mxu0 %v4155_v27  ;;  %2685 = vmatpush.bf16.msrb.mxu3 %v4471_v33  ;;  %v4360_v33 = vld [vmem:[%s7455_s7 + $0x230] sm:$0xf0] }
 0x169   :  { %v1545_v45 = vpack.c.bf16 %v1541_v37, %v1541_v37  ;;  %v4191_v37 = vor.u32 %v4975_v54, %v4190_v51  ;;  %v5016_v54 = vld [vmem:[%s7455_s7 + $0x224] sm:$0xf] }
 0x16a   :  { %v4363_v44 = vor.u32 %v5016_v54, %v4360_v33  ;;  %v4536_v54 = vld [vmem:[%s7455_s7 + $0x390] sm:$0xf0]  ;;  %v4222_v33 = vld [vmem:[%s7455_s7 + $0x108] sm:$0xf] }
 0x16b   :  { %1829 = vmatmul.bf16.vlgmr.msra.gmra.mxu1 %v1545_v45  ;;  %2647 = vmatmul.bf16.vlgmr.msrb.gmra.mxu0 %v5990_v11  ;;  %v4174_v45 = vld [vmem:[%s7455_s7 + $0xa8] sm:$0xf] }
 0x16c   :  { %2695 = vmatpush.bf16.msra.mxu0 %v4139_v39  ;;  %2704 = vmatpush.bf16.msra.mxu1 %v4331_v19  ;;  %v1434_v52 = vpop.f32.mrf.mxu3  ;;  %v4988_v39 = vld [vmem:[%s7455_s7 + $0x144] sm:$0xf]  ;;  %v4248_v19 = vld [vmem:[%s7455_s7 + $0x150] sm:$0xf0]  ;;  %v4175_v50 = vor.u32 %v4971_v46, %v4174_v45 }
 0x16d   :  { %v4251_v32 = vor.u32 %v4988_v39, %v4248_v19  ;;  %v4984_v52 = vld [vmem:[%s7455_s7 + $0x124] sm:$0xf]  ;;  %v4999_v39 = vld [vmem:[%s7455_s7 + $0x194] sm:$0xf0]  ;;  %v4208_v19 = vld [vmem:[%s7455_s7 + $0xf8] sm:$0xf0] }
 0x16e   :  { %v6766_v63 = vpop.f32.mrf.mxu1  ;;  %v5012_v46 = vld [vmem:[%s7455_s7 + $0x204] sm:$0xf] }
 0x16f   :  { %v1471_v0 = vpop.f32.mrf.mxu2 }
 0x170   :  { %v1499_v3 = vpop.f32.mrf.mxu0  ;;  %2696 = vmatpush.bf16.msra.mxu0 %v4123_v53  ;;  %2705 = vmatpush.bf16.msra.mxu1 %v4315_v56  ;;  %v1472_v18 = vadd.f32 %v1471_v0, %v1459_v13  ;;  %v4232_v53 = vld [vmem:[%s7455_s7 + $0x130] sm:$0xf0]  ;;  %v5032_v56 = vld [vmem:[%s7455_s7 + $0x2a4] sm:$0xf]  ;;  %v4335_v13 = vor.u32 %v5011_v8, %v4334_v7 }
 0x171   :  { %v4235_v60 = vor.u32 %v4984_v52, %v4232_v53  ;;  %v4427_v61 = vor.u32 %v5032_v56, %v4424_v57  ;;  %v4980_v0 = vld [vmem:[%s7455_s7 + $0x104] sm:$0xf]  ;;  %v4408_v3 = vld [vmem:[%s7455_s7 + $0x290] sm:$0xf0]  ;;  %v4270_v56 = vld [vmem:[%s7455_s7 + $0x168] sm:$0xf] }
 0x172   :  { %v4219_v9 = vor.u32 %v4980_v0, %v4216_v1  ;;  %v4411_v28 = vor.u32 %v5028_v2, %v4408_v3  ;;  %v5072_v52 = vld [vmem:[%s7455_s7 + $0x3e4] sm:$0xf]  ;;  %v4584_v53 = vld [vmem:[%s7455_s7 + $0x3f0] sm:$0xf0]  ;;  %v4192_v0 = vld [vmem:[%s7455_s7 + $0xd8] sm:$0xf0] }
 0x173   :  { %v4587_v2 = vor.u32 %v5072_v52, %v4584_v53  ;;  %v5068_v7 = vld [vmem:[%s7455_s7 + $0x3c4] sm:$0xf]  ;;  %v4568_v8 = vld [vmem:[%s7455_s7 + $0x3d0] sm:$0xf0]  ;;  %v4957_v52 = vld [vmem:[%s7455_s7 + $0x4c] sm:$0xf] }
 0x174   :  { %2697 = vmatpush.bf16.msra.mxu0 %v4107_v5  ;;  %2706 = vmatpush.bf16.msra.mxu1 %v4299_v6  ;;  %v1484_v23 = vpop.f32.mrf.mxu3  ;;  %v4142_v5 = vld [vmem:[%s7455_s7 + $0x68] sm:$0xf]  ;;  %v4963_v6 = vld [vmem:[%s7455_s7 + $0x74] sm:$0xf0]  ;;  %v4128_v53 = vld [vmem:[%s7455_s7 + $0x58] sm:$0xf0] }
 0x175   :  { %v1485_v27 = vadd.f32 %v1484_v23, %v1472_v18  ;;  %v4143_v10 = vor.u32 %v4963_v6, %v4142_v5  ;;  %v4318_v18 = vld [vmem:[%s7455_s7 + $0x1c8] sm:$0xf]  ;;  %v5020_v23 = vld [vmem:[%s7455_s7 + $0x244] sm:$0xf]  ;;  %v4271_v5 = vor.u32 %v4995_v58, %v4270_v56  ;;  %v5005_v56 = vld [vmem:[%s7455_s7 + $0x1cc] sm:$0xf] }
 0x176   :  { %v1512_v4 = vpop.f32.mrf.mxu1  ;;  %v4379_v30 = vor.u32 %v5020_v23, %v4376_v24  ;;  %v4238_v23 = vld [vmem:[%s7455_s7 + $0x128] sm:$0xf]  ;;  %v4987_v24 = vld [vmem:[%s7455_s7 + $0x134] sm:$0xf0] }
 0x177   :  { %v1473_v29 = vpop.f32.mrf.mxu2  ;;  %v1542_v34 = vmax.f32 %v1485_v27, 0.0  ;;  %v4302_v27 = vld [vmem:[%s7455_s7 + $0x1a8] sm:$0xf]  ;;  %v5003_v4 = vld [vmem:[%s7455_s7 + $0x1b4] sm:$0xf0] }
 0x178   :  { %2698 = vmatpush.bf16.msra.mxu0 %v4091_v43  ;;  %2707 = vmatpush.bf16.msra.mxu1 %v4283_v21  ;;  %v5007_v43 = vld [vmem:[%s7455_s7 + $0x1d4] sm:$0xf0]  ;;  %v687_v21 = vperm.slane %v6603_v17, 3 }
 0x179   :  { %v1546_v42 = vpack.c.bf16 %v1542_v34, %v1542_v34  ;;  %v4955_v17 = vld [vmem:[%s7455_s7 + $0x34] sm:$0xf0] }
 0x17a   :  { %v1498_v29 = vadd.f32 %v6726_v38, %v687_v21  ;;  %v4111_v51 = vor.u32 %v4955_v17, %v4110_v25  ;;  %v4094_v38 = vld [vmem:[%s7455_s7 + $0x8] sm:$0xf]  ;;  %v5035_v17 = vld [vmem:[%s7455_s7 + $0x2b4] sm:$0xf0] }
 0x17b   :  { %2660 = vmatmul.bf16.vlgmr.msrb.gmra.mxu1 %v6020_v31  ;;  %2699 = vmatmul.bf16.vlgmr.msra.gmra.mxu0 %v5990_v11  ;;  %v4430_v25 = vld [vmem:[%s7455_s7 + $0x2a8] sm:$0xf] }
 0x17c   :  { %2743 = vmatpush.bf16.msrb.mxu0 %v4207_v55  ;;  %1842 = vmatmul.bf16.vlgmr.msra.gmra.mxu2 %v1546_v42  ;;  %v1486_v47 = vpop.f32.mrf.mxu3  ;;  %v4319_v55 = vor.u32 %v5007_v43, %v4318_v18  ;;  %v1511_v34 = vadd.f32 %v6766_v63, %v1498_v29  ;;  %v4977_v63 = vld [vmem:[%s7455_s7 + $0xec] sm:$0xf]  ;;  %v4571_v18 = vor.u32 %v5068_v7, %v4568_v8  ;;  %v5060_v29 = vld [vmem:[%s7455_s7 + $0x384] sm:$0xf]  ;;  %v4304_v7 = vld [vmem:[%s7455_s7 + $0x1b8] sm:$0xf0] }
 0x17d   :  { %2708 = vmatpush.bf16.msra.mxu1 %v4267_v35  ;;  %2717 = vmatpush.bf16.msra.mxu2 %v4459_v36  ;;  %v4303_v35 = vor.u32 %v5003_v4, %v4302_v27  ;;  %v4951_v36 = vld [vmem:[%s7455_s7 + $0x14] sm:$0xf0]  ;;  %v4160_v27 = vld [vmem:[%s7455_s7 + $0x98] sm:$0xf0] }
 0x17e   :  { %v4095_v45 = vor.u32 %v4951_v36, %v4094_v38  ;;  %v4414_v38 = vld [vmem:[%s7455_s7 + $0x288] sm:$0xf]  ;;  %v5031_v36 = vld [vmem:[%s7455_s7 + $0x294] sm:$0xf0] }
 0x180   :  { %2744 = vmatpush.bf16.msrb.mxu0 %v4191_v37  ;;  %v4286_v37 = vld [vmem:[%s7455_s7 + $0x188] sm:$0xf] }
 0x181   :  { %2709 = vmatpush.bf16.msra.mxu1 %v4251_v32  ;;  %2718 = vmatpush.bf16.msra.mxu2 %v4443_v49  ;;  %v4344_v32 = vld [vmem:[%s7455_s7 + $0x210] sm:$0xf0]  ;;  %v4287_v49 = vor.u32 %v4999_v39, %v4286_v37  ;;  %v4961_v37 = vld [vmem:[%s7455_s7 + $0x6c] sm:$0xf]  ;;  %v4144_v39 = vld [vmem:[%s7455_s7 + $0x78] sm:$0xf0] }
 0x182   :  { %v4347_v1 = vor.u32 %v5012_v46, %v4344_v32  ;;  %v4520_v46 = vld [vmem:[%s7455_s7 + $0x370] sm:$0xf0]  ;;  %v4147_v32 = vor.u32 %v4961_v37, %v4144_v39  ;;  %v5071_v37 = vld [vmem:[%s7455_s7 + $0x3d4] sm:$0xf0] }
 0x184   :  { %2745 = vmatpush.bf16.msrb.mxu0 %v4175_v50  ;;  %v4211_v50 = vor.u32 %v4977_v63, %v4208_v19  ;;  %v5009_v63 = vld [vmem:[%s7455_s7 + $0x1ec] sm:$0xf]  ;;  %v4336_v19 = vld [vmem:[%s7455_s7 + $0x1f8] sm:$0xf0] }
 0x185   :  { %2710 = vmatpush.bf16.msra.mxu1 %v4235_v60  ;;  %2719 = vmatpush.bf16.msra.mxu2 %v4427_v61  ;;  %v5043_v60 = vld [vmem:[%s7455_s7 + $0x2f4] sm:$0xf0] }
 0x186   :  { %v4463_v6 = vor.u32 %v5043_v60, %v4462_v59  ;;  %v5052_v60 = vld [vmem:[%s7455_s7 + $0x344] sm:$0xf] }
 0x188   :  { %2746 = vmatpush.bf16.msrb.mxu0 %v4159_v62  ;;  %v4973_v62 = vld [vmem:[%s7455_s7 + $0xcc] sm:$0xf] }
 0x189   :  { %2711 = vmatpush.bf16.msra.mxu1 %v4219_v9  ;;  %2720 = vmatpush.bf16.msra.mxu2 %v4411_v28  ;;  %v4254_v9 = vld [vmem:[%s7455_s7 + $0x148] sm:$0xf]  ;;  %v4195_v28 = vor.u32 %v4973_v62, %v4192_v0  ;;  %v4131_v62 = vor.u32 %v4957_v52, %v4128_v53  ;;  %v4432_v52 = vld [vmem:[%s7455_s7 + $0x2b8] sm:$0xf0] }
 0x18c   :  { %2747 = vmatpush.bf16.msrb.mxu0 %v4143_v10  ;;  %2712 = vmatmul.bf16.vlgmr.msra.gmra.mxu1 %v6020_v31  ;;  %v4991_v10 = vld [vmem:[%s7455_s7 + $0x154] sm:$0xf0] }
 0x18d   :  { %2756 = vmatpush.bf16.msrb.mxu1 %v4335_v13  ;;  %v1523_v26 = vpop.f32.mrf.mxu2  ;;  %2673 = vmatmul.bf16.vlgmr.msrb.gmra.mxu2 %v6108_v20  ;;  %v5039_v13 = vld [vmem:[%s7455_s7 + $0x2d4] sm:$0xf0]  ;;  %v4255_v43 = vor.u32 %v4991_v10, %v4254_v9  ;;  %v4488_v10 = vld [vmem:[%s7455_s7 + $0x330] sm:$0xf0] }
 0x18e   :  { %2721 = vmatpush.bf16.msra.mxu2 %v4395_v22  ;;  %v1524_v41 = vadd.f32 %v1523_v26, %v1511_v34  ;;  %v4447_v21 = vor.u32 %v5039_v13, %v4446_v12  ;;  %v5064_v22 = vld [vmem:[%s7455_s7 + $0x3a4] sm:$0xf]  ;;  %v4965_v26 = vld [vmem:[%s7455_s7 + $0x8c] sm:$0xf]  ;;  %v4983_v34 = vld [vmem:[%s7455_s7 + $0x114] sm:$0xf0] }
 0x190   :  { %2748 = vmatpush.bf16.msrb.mxu0 %v4127_v40  ;;  %v4552_v40 = vld [vmem:[%s7455_s7 + $0x3b0] sm:$0xf0] }
 0x191   :  { %2757 = vmatpush.bf16.msrb.mxu1 %v4319_v55  ;;  %v4179_v55 = vor.u32 %v4969_v14, %v4176_v15  ;;  %v4555_v4 = vor.u32 %v5064_v22, %v4552_v40  ;;  %v4366_v14 = vld [vmem:[%s7455_s7 + $0x228] sm:$0xf]  ;;  %v5019_v15 = vld [vmem:[%s7455_s7 + $0x234] sm:$0xf0] }
 0x192   :  { %2722 = vmatpush.bf16.msra.mxu2 %v4379_v30  ;;  %v4239_v30 = vor.u32 %v4987_v24, %v4238_v23  ;;  %v4367_v40 = vor.u32 %v5019_v15, %v4366_v14  ;;  %v5044_v23 = vld [vmem:[%s7455_s7 + $0x304] sm:$0xf]  ;;  %v4350_v24 = vld [vmem:[%s7455_s7 + $0x208] sm:$0xf]  ;;  %v4384_v14 = vld [vmem:[%s7455_s7 + $0x258] sm:$0xf0] }
 0x194   :  { %v1536_v42 = vpop.f32.mrf.mxu3  ;;  %2749 = vmatpush.bf16.msrb.mxu0 %v4111_v51  ;;  %v4431_v51 = vor.u32 %v5035_v17, %v4430_v25 }
 0x195   :  { %v1537_v47 = vadd.f32 %v1536_v42, %v1524_v41  ;;  %2758 = vmatpush.bf16.msrb.mxu1 %v4303_v35  ;;  %v1525_v57 = vpop.f32.mrf.mxu2  ;;  %v4163_v35 = vor.u32 %v4965_v26, %v4160_v27  ;;  %v4539_v41 = vor.u32 %v5060_v29, %v4536_v54  ;;  %v4223_v42 = vor.u32 %v4983_v34, %v4222_v33  ;;  %v5015_v26 = vld [vmem:[%s7455_s7 + $0x214] sm:$0xf0]  ;;  %v4590_v27 = vld [vmem:[%s7455_s7 + $0x3e8] sm:$0xf]  ;;  %v4993_v29 = vld [vmem:[%s7455_s7 + $0x16c] sm:$0xf] }
 0x196   :  { %2723 = vmatpush.bf16.msra.mxu2 %v4363_v44  ;;  %v4415_v44 = vor.u32 %v5031_v36, %v4414_v38  ;;  %v4320_v57 = vld [vmem:[%s7455_s7 + $0x1d8] sm:$0xf0]  ;;  %v5041_v54 = vld [vmem:[%s7455_s7 + $0x2ec] sm:$0xf]  ;;  %v4351_v34 = vor.u32 %v5015_v26, %v4350_v24  ;;  %v4574_v36 = vld [vmem:[%s7455_s7 + $0x3c8] sm:$0xf] }
 0x197   :  { %v1543_v61 = vmax.f32 %v1537_v47, 0.0  ;;  %v4339_v47 = vor.u32 %v5009_v63, %v4336_v19  ;;  %v4323_v0 = vor.u32 %v5005_v56, %v4320_v57  ;;  %v4464_v33 = vld [vmem:[%s7455_s7 + $0x2f8] sm:$0xf0]  ;;  %v4989_v63 = vld [vmem:[%s7455_s7 + $0x14c] sm:$0xf] }
 0x198   :  { %2750 = vmatpush.bf16.msrb.mxu0 %v4095_v45  ;;  %v5056_v45 = vld [vmem:[%s7455_s7 + $0x364] sm:$0xf]  ;;  %v4467_v39 = vor.u32 %v5041_v54, %v4464_v33  ;;  %v4256_v19 = vld [vmem:[%s7455_s7 + $0x158] sm:$0xf0]  ;;  %v4542_v57 = vld [vmem:[%s7455_s7 + $0x388] sm:$0xf] }
 0x199   :  { %v1547_v3 = vpack.c.bf16 %v1543_v61, %v1543_v61  ;;  %2759 = vmatpush.bf16.msrb.mxu1 %v4287_v49  ;;  %v4398_v49 = vld [vmem:[%s7455_s7 + $0x268] sm:$0xf]  ;;  %v4523_v58 = vor.u32 %v5056_v45, %v4520_v46  ;;  %v4504_v61 = vld [vmem:[%s7455_s7 + $0x350] sm:$0xf0]  ;;  %v4259_v45 = vor.u32 %v4989_v63, %v4256_v19  ;;  %v5073_v24 = vld [vmem:[%s7455_s7 + $0x3ec] sm:$0xf] }
 0x19a   :  { %2724 = vmatpush.bf16.msra.mxu2 %v4347_v1  ;;  %v4382_v1 = vld [vmem:[%s7455_s7 + $0x248] sm:$0xf]  ;;  %v4507_v8 = vor.u32 %v5052_v60, %v4504_v61  ;;  %v4981_v60 = vld [vmem:[%s7455_s7 + $0x10c] sm:$0xf]  ;;  %v4224_v61 = vld [vmem:[%s7455_s7 + $0x118] sm:$0xf0] }
 0x19b   :  { %1855 = vmatmul.bf16.vlgmr.msra.gmra.mxu3 %v1547_v3  ;;  %2751 = vmatmul.bf16.vlgmr.msrb.gmra.mxu0 %v5990_v11  ;;  %v4953_v3 = vld [vmem:[%s7455_s7 + $0x2c] sm:$0xf]  ;;  %v4558_v46 = vld [vmem:[%s7455_s7 + $0x3a8] sm:$0xf]  ;;  %v4352_v26 = vld [vmem:[%s7455_s7 + $0x218] sm:$0xf0] }
 0x19c   :  { %2795 = vmatpush.bf16.msra.mxu0 %v4211_v50  ;;  %2730 = vmatpush.bf16.msra.mxu3 %v4587_v2  ;;  %v1538_v16 = vpop.f32.mrf.mxu3  ;;  %v5027_v50 = vld [vmem:[%s7455_s7 + $0x274] sm:$0xf0]  ;;  %v5065_v33 = vld [vmem:[%s7455_s7 + $0x3ac] sm:$0xf] }
 0x19d   :  { %2760 = vmatpush.bf16.msrb.mxu1 %v4271_v5  ;;  %2725 = vmatmul.bf16.vlgmr.msra.gmra.mxu2 %v6108_v20  ;;  %v4399_v59 = vor.u32 %v5027_v50, %v4398_v49  ;;  %v5023_v2 = vld [vmem:[%s7455_s7 + $0x254] sm:$0xf0]  ;;  %v4112_v5 = vld [vmem:[%s7455_s7 + $0x38] sm:$0xf0]  ;;  %v4949_v16 = vld [vmem:[%s7455_s7 + $0xc] sm:$0xf] }
 0x19e   :  { %2769 = vmatpush.bf16.msrb.mxu2 %v4463_v6  ;;  %v5001_v6 = vld [vmem:[%s7455_s7 + $0x1ac] sm:$0xf]  ;;  %v4383_v9 = vor.u32 %v5023_v2, %v4382_v1  ;;  %v4115_v12 = vor.u32 %v4953_v3, %v4112_v5  ;;  %v4227_v2 = vor.u32 %v4981_v60, %v4224_v61  ;;  %v4526_v3 = vld [vmem:[%s7455_s7 + $0x368] sm:$0xf]  ;;  %v5059_v5 = vld [vmem:[%s7455_s7 + $0x374] sm:$0xf0] }
 0x19f   :  { %v4307_v13 = vor.u32 %v5001_v6, %v4304_v7  ;;  %v4985_v49 = vld [vmem:[%s7455_s7 + $0x12c] sm:$0xf] }
 0x1a0   :  { %2796 = vmatpush.bf16.msra.mxu0 %v4195_v28  ;;  %2731 = vmatpush.bf16.msra.mxu3 %v4571_v18  ;;  %v5048_v28 = vld [vmem:[%s7455_s7 + $0x324] sm:$0xf]  ;;  %v4096_v18 = vld [vmem:[%s7455_s7 + $0x18] sm:$0xf0]  ;;  %v5033_v50 = vld [vmem:[%s7455_s7 + $0x2ac] sm:$0xf] }
 0x1a1   :  { %2761 = vmatpush.bf16.msrb.mxu1 %v4255_v43  ;;  %v4997_v43 = vld [vmem:[%s7455_s7 + $0x18c] sm:$0xf]  ;;  %v4491_v22 = vor.u32 %v5048_v28, %v4488_v10  ;;  %v4099_v25 = vor.u32 %v4949_v16, %v4096_v18  ;;  %v4510_v28 = vld [vmem:[%s7455_s7 + $0x348] sm:$0xf]  ;;  %v5055_v10 = vld [vmem:[%s7455_s7 + $0x354] sm:$0xf0] }
 0x1a2   :  { %2770 = vmatpush.bf16.msrb.mxu2 %v4447_v21  ;;  %v4288_v21 = vld [vmem:[%s7455_s7 + $0x198] sm:$0xf0]  ;;  %v5025_v7 = vld [vmem:[%s7455_s7 + $0x26c] sm:$0xf]  ;;  %v4511_v15 = vor.u32 %v5055_v10, %v4510_v28  ;;  %v4494_v16 = vld [vmem:[%s7455_s7 + $0x328] sm:$0xf] }
 0x1a3   :  { %v4291_v17 = vor.u32 %v4997_v43, %v4288_v21  ;;  %v5051_v18 = vld [vmem:[%s7455_s7 + $0x334] sm:$0xf0]  ;;  %v5017_v21 = vld [vmem:[%s7455_s7 + $0x22c] sm:$0xf] }
 0x1a4   :  { %2797 = vmatpush.bf16.msra.mxu0 %v4179_v55  ;;  %2732 = vmatpush.bf16.msra.mxu3 %v4555_v4  ;;  %v4472_v55 = vld [vmem:[%s7455_s7 + $0x310] sm:$0xf0]  ;;  %v5075_v4 = vld [vmem:[%s7455_s7 + $0x3f4] sm:$0xf0]  ;;  %v5057_v63 = vld [vmem:[%s7455_s7 + $0x36c] sm:$0xf] }
 0x1a5   :  { %2762 = vmatpush.bf16.msrb.mxu1 %v4239_v30  ;;  %v4272_v30 = vld [vmem:[%s7455_s7 + $0x178] sm:$0xf0]  ;;  %v5077_v28 = vld [vmem:[%s7457_s9 + $0x8] sm:$0xff] }
 0x1a6   :  { %2771 = vmatpush.bf16.msrb.mxu2 %v4431_v51  ;;  %v4475_v51 = vor.u32 %v5044_v23, %v4472_v55  ;;  %v4275_v38 = vor.u32 %v4993_v29, %v4272_v30  ;;  %v5047_v23 = vld [vmem:[%s7455_s7 + $0x314] sm:$0xf0]  ;;  %v5069_v30 = vld [vmem:[%s7455_s7 + $0x3cc] sm:$0xf] }
 0x1a7   :  { %v5089_v10 = vld [vmem:[%s7457_s9 + $0x68] sm:$0xff] }
 0x1a8   :  { %2798 = vmatpush.bf16.msra.mxu0 %v4163_v35  ;;  %2733 = vmatpush.bf16.msra.mxu3 %v4539_v41  ;;  %v4591_v35 = vor.u32 %v5075_v4, %v4590_v27  ;;  %v5037_v41 = vld [vmem:[%s7455_s7 + $0x2cc] sm:$0xf] }
 0x1a9   :  { %2763 = vmatpush.bf16.msrb.mxu1 %v4223_v42  ;;  %v4448_v42 = vld [vmem:[%s7455_s7 + $0x2d8] sm:$0xf0] }
 0x1aa   :  { %2772 = vmatpush.bf16.msrb.mxu2 %v4415_v44  ;;  %v4575_v44 = vor.u32 %v5071_v37, %v4574_v36  ;;  %v5061_v36 = vld [vmem:[%s7455_s7 + $0x38c] sm:$0xf]  ;;  %v4544_v37 = vld [vmem:[%s7455_s7 + $0x398] sm:$0xf0] }
 0x1ab   :  { %2686 = vmatmul.bf16.vlgmr.msrb.gmra.mxu3 %v6157_v48 }
 0x1ac   :  { %2799 = vmatpush.bf16.msra.mxu0 %v4147_v32  ;;  %2734 = vmatpush.bf16.msra.mxu3 %v4523_v58  ;;  %v5067_v32 = vld [vmem:[%s7455_s7 + $0x3b4] sm:$0xf0] }
 0x1ad   :  { %2808 = vmatpush.bf16.msra.mxu1 %v4339_v47  ;;  %v4451_v47 = vor.u32 %v5037_v41, %v4448_v42  ;;  %v4559_v53 = vor.u32 %v5067_v32, %v4558_v46  ;;  %v5063_v58 = vld [vmem:[%s7455_s7 + $0x394] sm:$0xf0]  ;;  %v5053_v42 = vld [vmem:[%s7455_s7 + $0x34c] sm:$0xf]  ;;  %v4496_v32 = vld [vmem:[%s7455_s7 + $0x338] sm:$0xf0] }
 0x1ae   :  { %2764 = vmatmul.bf16.vlgmr.msrb.gmra.mxu1 %v6020_v31  ;;  %2773 = vmatpush.bf16.msrb.mxu2 %v4399_v59  ;;  %v4435_v59 = vor.u32 %v5033_v50, %v4432_v52  ;;  %v4543_v1 = vor.u32 %v5063_v58, %v4542_v57  ;;  %v5049_v46 = vld [vmem:[%s7455_s7 + $0x32c] sm:$0xf]  ;;  %v4480_v52 = vld [vmem:[%s7455_s7 + $0x318] sm:$0xf0] }
 0x1af   :  { %v5045_v50 = vld [vmem:[%s7455_s7 + $0x30c] sm:$0xf]  ;;  %v5083_v58 = vld [vmem:[%s7457_s9 + $0x38] sm:$0xff] }
 0x1b0   :  { %2800 = vmatpush.bf16.msra.mxu0 %v4131_v62  ;;  %2735 = vmatpush.bf16.msra.mxu3 %v4507_v8  ;;  %v5029_v62 = vld [vmem:[%s7455_s7 + $0x28c] sm:$0xf]  ;;  %v4400_v8 = vld [vmem:[%s7455_s7 + $0x278] sm:$0xf0] }
 0x1b1   :  { %2809 = vmatpush.bf16.msra.mxu1 %v4323_v0  ;;  %v4416_v0 = vld [vmem:[%s7455_s7 + $0x298] sm:$0xf0] }
 0x1b2   :  { %2774 = vmatpush.bf16.msrb.mxu2 %v4383_v9  ;;  %v4419_v6 = vor.u32 %v5029_v62, %v4416_v0  ;;  %v4527_v9 = vor.u32 %v5059_v5, %v4526_v3  ;;  %v5081_v62 = vld [vmem:[%s7457_s9 + $0x28] sm:$0xff]  ;;  %v5079_v3 = vld [vmem:[%s7457_s9 + $0x18] sm:$0xff] }
 0x1b3   :  { %v5091_v5 = vld [vmem:[%s7457_s9 + $0x78] sm:$0xff] }
 0x1b4   :  { %2801 = vmatpush.bf16.msra.mxu0 %v4115_v12  ;;  %2736 = vmatpush.bf16.msra.mxu3 %v4491_v22  ;;  %v4403_v12 = vor.u32 %v5025_v7, %v4400_v8  ;;  %v4368_v22 = vld [vmem:[%s7455_s7 + $0x238] sm:$0xf0]  ;;  %v5078_v7 = vld [vmem:[%s7457_s9 + $0x10] sm:$0xff] }
 0x1b5   :  { %2810 = vmatpush.bf16.msra.mxu1 %v4307_v13  ;;  %v5021_v13 = vld [vmem:[%s7455_s7 + $0x24c] sm:$0xf]  ;;  %v4371_v55 = vor.u32 %v5017_v21, %v4368_v22  ;;  %v5090_v8 = vld [vmem:[%s7457_s9 + $0x70] sm:$0xff] }
 0x1b6   :  { %2775 = vmatpush.bf16.msrb.mxu2 %v4367_v40  ;;  %v4387_v43 = vor.u32 %v5021_v13, %v4384_v14  ;;  %v4478_v40 = vld [vmem:[%s7455_s7 + $0x308] sm:$0xf]  ;;  %v5076_v13 = vld [vmem:[%s7457_s9] sm:$0xff]  ;;  %v5086_v21 = vld [vmem:[%s7457_s9 + $0x50] sm:$0xff] }
 0x1b7   :  { %v4479_v27 = vor.u32 %v5047_v23, %v4478_v40  ;;  %v5088_v14 = vld [vmem:[%s7457_s9 + $0x60] sm:$0xff] }
 0x1b8   :  { %2802 = vmatpush.bf16.msra.mxu0 %v4099_v25  ;;  %2737 = vmatpush.bf16.msra.mxu3 %v4475_v51  ;;  %v4592_v25 = vld [vmem:[%s7455_s7 + $0x3f8] sm:$0xf0] }
 0x1b9   :  { %2811 = vmatpush.bf16.msra.mxu1 %v4291_v17  ;;  %v5013_v17 = vld [vmem:[%s7455_s7 + $0x20c] sm:$0xf]  ;;  %v4595_v4 = vor.u32 %v5073_v24, %v4592_v25  ;;  %v4576_v51 = vld [vmem:[%s7455_s7 + $0x3d8] sm:$0xf0] }
 0x1ba   :  { %2776 = vmatpush.bf16.msrb.mxu2 %v4351_v34  ;;  %v4355_v29 = vor.u32 %v5013_v17, %v4352_v26  ;;  %v4579_v54 = vor.u32 %v5069_v30, %v4576_v51  ;;  %v4560_v34 = vld [vmem:[%s7455_s7 + $0x3b8] sm:$0xf0]  ;;  %v5085_v24 = vld [vmem:[%s7457_s9 + $0x48] sm:$0xff]  ;;  %v7378_v26 = vld [vmem:[%s7456_s8] sm:$0xf] }
 0x1bb   :  { %2803 = vmatmul.bf16.vlgmr.msra.gmra.mxu0 %v5990_v11  ;;  %2738 = vmatmul.bf16.vlgmr.msra.gmra.mxu3 %v6157_v48  ;;  %v4240_v11 = vld [vmem:[%s7455_s7 + $0x138] sm:$0xf0]  ;;  %v1991_v30 = vperm.slane %v7378_v26, 0 }
 0x1bc   :  { %2782 = vmatpush.bf16.msrb.mxu3 %v4591_v35  ;;  %v4243_v56 = vor.u32 %v4985_v49, %v4240_v11  ;;  %v4563_v35 = vor.u32 %v5065_v33, %v4560_v34  ;;  %3115 = vmatpush.bf16.msrb.mxu0 %v5083_v58  ;;  %v5097_v33 = vld [vmem:[%s7457_s9 + $0xa8] sm:$0xff] }
 0x1bd   :  { %2812 = vmatpush.bf16.msra.mxu1 %v4275_v38  ;;  %2777 = vmatmul.bf16.vlgmr.msrb.gmra.mxu2 %v6108_v20 }
 0x1be   :  { %2821 = vmatpush.bf16.msra.mxu2 %v4467_v39  ;;  %v4547_v39 = vor.u32 %v5061_v36, %v4544_v37 }
 0x1c0   :  { %2783 = vmatpush.bf16.msrb.mxu3 %v4575_v44  ;;  %v4512_v44 = vld [vmem:[%s7455_s7 + $0x358] sm:$0xf0] }
 0x1c1   :  { %2813 = vmatpush.bf16.msra.mxu1 %v4259_v45  ;;  %v4515_v45 = vor.u32 %v5053_v42, %v4512_v44 }
 0x1c2   :  { %2822 = vmatpush.bf16.msra.mxu2 %v4451_v47  ;;  %v4499_v47 = vor.u32 %v5049_v46, %v4496_v32  ;;  %v1992_v46 = vperm.slane %v7378_v26, 1 }
 0x1c4   :  { %2784 = vmatpush.bf16.msrb.mxu3 %v4559_v53  ;;  %v4483_v53 = vor.u32 %v5045_v50, %v4480_v52 }
 0x1c5   :  { %2814 = vmatpush.bf16.msra.mxu1 %v4243_v56 }
 0x1c6   :  { %2823 = vmatpush.bf16.msra.mxu2 %v4435_v59  ;;  %v5082_v59 = vld [vmem:[%s7457_s9 + $0x30] sm:$0xff] }
 0x1c7   :  { %3116 = vmatpush.bf16.msrb.mxu0 %v5082_v59 }
 0x1c8   :  { %2785 = vmatpush.bf16.msrb.mxu3 %v4543_v1  ;;  %v5080_v1 = vld [vmem:[%s7457_s9 + $0x20] sm:$0xff] }
 0x1c9   :  { %2815 = vmatpush.bf16.msra.mxu1 %v4227_v2 }
 0x1ca   :  { %2824 = vmatpush.bf16.msra.mxu2 %v4419_v6 }
 0x1cb   :  { %3117 = vmatpush.bf16.msrb.mxu0 %v5081_v62 }
 0x1cc   :  { %2786 = vmatpush.bf16.msrb.mxu3 %v4527_v9  ;;  %2816 = vmatmul.bf16.vlgmr.msra.gmra.mxu1 %v6020_v31  ;;  %v4495_v31 = vor.u32 %v5051_v18, %v4494_v16  ;;  %v5109_v16 = vld [vmem:[%s7454_s6] ss:$0 sm:$0xff]  ;;  %v5087_v18 = vld [vmem:[%s7457_s9 + $0x58] sm:$0xff] }
 0x1cd   :  { %3128 = vmatpush.bf16.msrb.mxu1 %v5091_v5  ;;  %v5104_v5 = vld [vmem:[%s7457_s9 + $0xe0] sm:$0xff] }
 0x1ce   :  { %2825 = vmatpush.bf16.msra.mxu2 %v4403_v12 }
 0x1cf   :  { %3118 = vmatpush.bf16.msrb.mxu0 %v5080_v1  ;;  %v5105_v1 = vld [vmem:[%s7457_s9 + $0xe8] sm:$0xff] }
 0x1d0   :  { %2787 = vmatpush.bf16.msrb.mxu3 %v4511_v15 }
 0x1d1   :  { %3129 = vmatpush.bf16.msrb.mxu1 %v5090_v8  ;;  %v5102_v8 = vld [vmem:[%s7457_s9 + $0xd0] sm:$0xff] }
 0x1d2   :  { %2826 = vmatpush.bf16.msra.mxu2 %v4387_v43 }
 0x1d3   :  { %3119 = vmatpush.bf16.msrb.mxu0 %v5079_v3 }
 0x1d4   :  { %2788 = vmatpush.bf16.msrb.mxu3 %v4495_v31 }
 0x1d5   :  { %3130 = vmatpush.bf16.msrb.mxu1 %v5089_v10  ;;  %v5101_v10 = vld [vmem:[%s7457_s9 + $0xc8] sm:$0xff] }
 0x1d6   :  { %2827 = vmatpush.bf16.msra.mxu2 %v4371_v55 }
 0x1d7   :  { %3120 = vmatpush.bf16.msrb.mxu0 %v5078_v7 }
 0x1d8   :  { %2789 = vmatpush.bf16.msrb.mxu3 %v4479_v27  ;;  %v7285_v38 = vpop.f32.mrf.mxu0 }
 0x1d9   :  { %3131 = vmatpush.bf16.msrb.mxu1 %v5088_v14  ;;  %v1818_v22 = vadd.f32 %v5109_v16, %v7285_v38 }
 0x1da   :  { %2828 = vmatpush.bf16.msra.mxu2 %v4355_v29  ;;  %v5099_v29 = vld [vmem:[%s7457_s9 + $0xb8] sm:$0xff] }
 0x1db   :  { %2790 = vmatmul.bf16.vlgmr.msrb.gmra.mxu3 %v6157_v48  ;;  %3121 = vmatpush.bf16.msrb.mxu0 %v5077_v28 }
 0x1dc   :  { %2834 = vmatpush.bf16.msra.mxu3 %v4595_v4  ;;  %v5084_v4 = vld [vmem:[%s7457_s9 + $0x40] sm:$0xff] }
 0x1dd   :  { %2829 = vmatmul.bf16.vlgmr.msra.gmra.mxu2 %v6108_v20  ;;  %v4528_v20 = vld [vmem:[%s7455_s7 + $0x378] sm:$0xf0]  ;;  %3132 = vmatpush.bf16.msrb.mxu1 %v5087_v18 }
 0x1de   :  { %v4531_v19 = vor.u32 %v5057_v63, %v4528_v20  ;;  %3141 = vmatpush.bf16.msrb.mxu2 %v5099_v29  ;;  %v5096_v63 = vld [vmem:[%s7457_s9 + $0xa0] sm:$0xff] }
 0x1df   :  { %3122 = vmatpush.bf16.msrb.mxu0 %v5076_v13 }
 0x1e0   :  { %2835 = vmatpush.bf16.msra.mxu3 %v4579_v54  ;;  %v1819_v41 = vpop.f32.mrf.mxu0  ;;  %v5098_v54 = vld [vmem:[%s7457_s9 + $0xb0] sm:$0xff] }
 0x1e1   :  { %3133 = vmatpush.bf16.msrb.mxu1 %v5086_v21 }
 0x1e2   :  { %3142 = vmatpush.bf16.msrb.mxu2 %v5098_v54 }
 0x1e4   :  { %2836 = vmatpush.bf16.msra.mxu3 %v4563_v35 }
 0x1e5   :  { %3134 = vmatpush.bf16.msrb.mxu1 %v5085_v24 }
 0x1e6   :  { %3143 = vmatpush.bf16.msrb.mxu2 %v5097_v33 }
 0x1e8   :  { %2837 = vmatpush.bf16.msra.mxu3 %v4547_v39  ;;  %v1830_v49 = vpop.f32.mrf.mxu1  ;;  %v7311_v11 = vpop.f32.mrf.mxu0 }
 0x1e9   :  { %v1831_v40 = vadd.f32 %v1830_v49, %v1818_v22  ;;  %3135 = vmatpush.bf16.msrb.mxu1 %v5084_v4  ;;  %v2649_v34 = vadd.f32 %v7311_v11, %v1991_v30  ;;  %v5093_v11 = vld [vmem:[%s7457_s9 + $0x88] sm:$0xff] }
 0x1ea   :  { %3144 = vmatpush.bf16.msrb.mxu2 %v5096_v63 }
 0x1ec   :  { %2838 = vmatpush.bf16.msra.mxu3 %v4531_v19  ;;  %v5095_v19 = vld [vmem:[%s7457_s9 + $0x98] sm:$0xff] }
 0x1ee   :  { %3145 = vmatpush.bf16.msrb.mxu2 %v5095_v19 }
 0x1f0   :  { %2839 = vmatpush.bf16.msra.mxu3 %v4515_v45  ;;  %v1832_v56 = vpop.f32.mrf.mxu1  ;;  %v2650_v57 = vpop.f32.mrf.mxu0  ;;  %v5094_v45 = vld [vmem:[%s7457_s9 + $0x90] sm:$0xff] }
 0x1f1   :  { %v5092_v56 = vld [vmem:[%s7457_s9 + $0x80] sm:$0xff] }
 0x1f2   :  { %3146 = vmatpush.bf16.msrb.mxu2 %v5094_v45 }
 0x1f4   :  { %2840 = vmatpush.bf16.msra.mxu3 %v4499_v47 }
 0x1f6   :  { %3147 = vmatpush.bf16.msrb.mxu2 %v5093_v11 }
 0x1f8   :  { %2841 = vmatpush.bf16.msra.mxu3 %v4483_v53  ;;  %v2661_v60 = vpop.f32.mrf.mxu1  ;;  %v7326_v61 = vpop.f32.mrf.mxu0 }
 0x1f9   :  { %v2662_v36 = vadd.f32 %v2661_v60, %v2649_v34  ;;  %v2701_v49 = vadd.f32 %v7326_v61, %v1992_v46  ;;  %v5107_v60 = vld [vmem:[%s7457_s9 + $0xf8] sm:$0xff] }
 0x1fa   :  { %3148 = vmatpush.bf16.msrb.mxu2 %v5092_v56 }
 0x1fb   :  { %2842 = vmatmul.bf16.vlgmr.msra.gmra.mxu3 %v6157_v48 }
 0x1fc   :  { %3154 = vmatpush.bf16.msrb.mxu3 %v5107_v60 }
 0x1ff   :  { %v1843_v0 = vpop.f32.mrf.mxu2 }
 0x200   :  { %v2663_v48 = vpop.f32.mrf.mxu1  ;;  %v2702_v2 = vpop.f32.mrf.mxu0  ;;  %v1844_v23 = vadd.f32 %v1843_v0, %v1831_v40  ;;  %v5106_v0 = vld [vmem:[%s7457_s9 + $0xf0] sm:$0xff]  ;;  %v1994_v40 = vperm.slane %v7378_v26, 3 }
 0x201   :  { %3155 = vmatpush.bf16.msrb.mxu3 %v5106_v0 }
 0x205   :  { %3156 = vmatpush.bf16.msrb.mxu3 %v5105_v1 }
 0x207   :  { %v1845_v6 = vpop.f32.mrf.mxu2 }
 0x208   :  { %v5103_v6 = vld [vmem:[%s7457_s9 + $0xd8] sm:$0xff] }
 0x209   :  { %v7346_v9 = vpop.f32.mrf.mxu1  ;;  %3157 = vmatpush.bf16.msrb.mxu3 %v5104_v5 }
 0x20a   :  { %v2714_v50 = vadd.f32 %v7346_v9, %v2701_v49  ;;  %v1993_v9 = vperm.slane %v7378_v26, 2 }
 0x20d   :  { %3158 = vmatpush.bf16.msrb.mxu3 %v5103_v6 }
 0x210   :  { %v2674_v12 = vpop.f32.mrf.mxu2 }
 0x211   :  { %v2715_v15 = vpop.f32.mrf.mxu1  ;;  %v2675_v37 = vadd.f32 %v2674_v12, %v2662_v36  ;;  %3159 = vmatpush.bf16.msrb.mxu3 %v5102_v8 }
 0x212   :  { %v5100_v15 = vld [vmem:[%s7457_s9 + $0xc0] sm:$0xff]  ;;  %s5137_s9 = smov [#allocation2]  }
 0x213   :  { %s3173_s23 = sshll.u32 %s5137_s9, 4  ;;  %s3174_s23 = int_to_ptr.vmem [resolvable:$true] %s3173_s23 }
 0x215   :  { %3160 = vmatpush.bf16.msrb.mxu3 %v5101_v10 }
 0x218   :  { %v7366_v43 = vpop.f32.mrf.mxu0  ;;  %v2676_v31 = vpop.f32.mrf.mxu2 }
 0x219   :  { %v2753_v28 = vadd.f32 %v7366_v43, %v1993_v9  ;;  %3161 = vmatpush.bf16.msrb.mxu3 %v5100_v15 }
 0x21e   :  { %v1856_v55 = vpop.f32.mrf.mxu3 }
 0x21f   :  { %v1857_v25 = vadd.f32 %v1856_v55, %v1844_v23 }
 0x220   :  { %v2754_v17 = vpop.f32.mrf.mxu0  ;;  %v2726_v27 = vpop.f32.mrf.mxu2 }
 0x221   :  { %1860 = vst [vmem:[#allocation2] sm:$0x3] %v1857_v25  ;;  %v2727_v52 = vadd.f32 %v2726_v27, %v2714_v50 }
 0x222   :  { %3178 = dma.vmem_to_hbm [thread:$0]  %s3174_s23, 32, %s3176_s26, [#allocation3]  }
 0x226   :  { %v1858_v51 = vpop.f32.mrf.mxu3 }
 0x228   :  { %v2728_v38 = vpop.f32.mrf.mxu2 }
 0x22b   :  { %v2765_v35 = vpop.f32.mrf.mxu1 }
 0x22c   :  { %v2766_v12 = vadd.f32 %v2765_v35, %v2753_v28  ;;  %v5110_v35 = vld [vmem:[%s7458_s10] ss:$0 sm:$0xff] }
 0x22e   :  { %v2687_v39 = vpop.f32.mrf.mxu3 }
 0x22f   :  { %v2688_v20 = vadd.f32 %v2687_v39, %v2675_v37 }
 0x231   :  { %v2847_v41 = vmax.f32 %v2688_v20, 0.0 }
 0x233   :  { %v2767_v42 = vpop.f32.mrf.mxu1  ;;  %v2851_v44 = vpack.c.bf16 %v2847_v41, %v2847_v41 }
 0x235   :  { %3123 = vmatmul.bf16.vlgmr.msrb.gmra.mxu0 %v2851_v44 }
 0x236   :  { %v2689_v32 = vpop.f32.mrf.mxu3 }
 0x238   :  { %v2804_v47 = vpop.f32.mrf.mxu0 }
 0x239   :  { %v2805_v23 = vadd.f32 %v2804_v47, %v1994_v40 }
 0x23e   :  { %v2739_v53 = vpop.f32.mrf.mxu3 }
 0x23f   :  { %v2740_v58 = vadd.f32 %v2739_v53, %v2727_v52 }
 0x240   :  { %v2806_v57 = vpop.f32.mrf.mxu0  ;;  %v2778_v59 = vpop.f32.mrf.mxu2 }
 0x241   :  { %v2848_v61 = vmax.f32 %v2740_v58, 0.0  ;;  %v2779_v13 = vadd.f32 %v2778_v59, %v2766_v12 }
 0x243   :  { %v2852_v62 = vpack.c.bf16 %v2848_v61, %v2848_v61 }
 0x245   :  { %3136 = vmatmul.bf16.vlgmr.msrb.gmra.mxu1 %v2852_v62 }
 0x246   :  { %v2741_v2 = vpop.f32.mrf.mxu3 }
 0x248   :  { %v2780_v3 = vpop.f32.mrf.mxu2 }
 0x249   :  { %v2817_v48 = vpop.f32.mrf.mxu1 }
 0x24a   :  { %v2818_v55 = vadd.f32 %v2817_v48, %v2805_v23 }
 0x251   :  { %v2819_v7 = vpop.f32.mrf.mxu1 }
 0x25e   :  { %v2791_v14 = vpop.f32.mrf.mxu3 }
 0x25f   :  { %v2792_v16 = vadd.f32 %v2791_v14, %v2779_v13 }
 0x260   :  { %v2830_v18 = vpop.f32.mrf.mxu2 }
 0x261   :  { %v2849_v21 = vmax.f32 %v2792_v16, 0.0  ;;  %v2831_v24 = vadd.f32 %v2830_v18, %v2818_v55 }
 0x263   :  { %v2853_v22 = vpack.c.bf16 %v2849_v21, %v2849_v21 }
 0x265   :  { %3149 = vmatmul.bf16.vlgmr.msrb.gmra.mxu2 %v2853_v22 }
 0x266   :  { %v2793_v31 = vpop.f32.mrf.mxu3 }
 0x268   :  { %v2832_v43 = vpop.f32.mrf.mxu2 }
 0x27e   :  { %v2843_v25 = vpop.f32.mrf.mxu3 }
 0x27f   :  { %v2844_v17 = vadd.f32 %v2843_v25, %v2831_v24 }
 0x281   :  { %v2850_v27 = vmax.f32 %v2844_v17, 0.0 }
 0x283   :  { %v2854_v4 = vpack.c.bf16 %v2850_v27, %v2850_v27 }
 0x285   :  { %3162 = vmatmul.bf16.vlgmr.msrb.gmra.mxu3 %v2854_v4 }
 0x286   :  { %v2845_v29 = vpop.f32.mrf.mxu3 }
 0x2b2   :  { %v3124_v30 = vpop.f32.mrf.mxu0 }
 0x2b3   :  { %v3125_v38 = vadd.f32 %v5110_v35, %v3124_v30 }
 0x2ba   :  { %v3126_v26 = vpop.f32.mrf.mxu0 }
 0x2c2   :  { %v3137_v51 = vpop.f32.mrf.mxu1 }
 0x2c3   :  { %v3138_v36 = vadd.f32 %v3137_v51, %v3125_v38 }
 0x2ca   :  { %v3139_v54 = vpop.f32.mrf.mxu1 }
 0x2e8   :  { %v3150_v33 = vpop.f32.mrf.mxu2 }
 0x2e9   :  { %v3151_v37 = vadd.f32 %v3150_v33, %v3138_v36 }
 0x2f0   :  { %v3152_v34 = vpop.f32.mrf.mxu2 }
 0x308   :  { %v3163_v39 = vpop.f32.mrf.mxu3 }
 0x309   :  { %v3164_v63 = vadd.f32 %v3163_v39, %v3151_v37 }
 0x30b   :  { %3167 = vst [vmem:[%s7460_s12] sm:$0x3] %v3164_v63 }
 0x310   :  { %v3165_v20 = vpop.f32.mrf.mxu3 }
 0x311   :  { %5135 = dma.done.wait [#allocation3], 32  }
 0x312   :  { %5136 = vsyncadd [#allocation3], 4294967264 }
 0x313   :  { %3187 = vsyncpa [#allocation3], 1 }

</bundles_post_ra>
